<compile_context>
chip_gen: v7x
topology: tpu7x:2x2x1
jax: 0.10.0
libtpu: 0.0.40
codegen_flags: <defaults>
</compile_context>

<pallas_src>
import math

import jax
import jax.numpy as jnp
import numpy as np
from jax.experimental import pallas as pl
from jax.experimental.pallas import tpu as pltpu

# ----------------------------------------------------------------------------
# Fixed PNet geometry (12x12 proposal crops).
# ----------------------------------------------------------------------------
H_IN = 12
W_IN = 12
C_IN = 3
C1, C2, C3 = 10, 16, 32
H1 = W1 = 10                      # after conv1 (3x3 valid)
HP = WP = 5                       # after maxpool 2x2 stride 2 (10 even -> exact)
H2 = W2 = 3                       # after conv2
X_FLAT = H_IN * W_IN * C_IN       # 432
Y1_FLAT = H1 * W1 * C1            # 1000
POOL_PAD = 256                    # per-quarter lane pad (>= HP*WP*C1 = 250, 128-aligned)
Y2_FLAT = H2 * W2 * C2            # 144
HEAD_DIMS = (2, 4, 10)            # conv4_1 / conv4_2 / conv4_3
HEAD_USED = sum(HEAD_DIMS)        # 16
HEAD_LANES = 128                  # lane-dense output slab width
MAX_TILE_N = 256                  # M per grid step (fills 2x256x256 MXU on v6e/v7x)


# ----------------------------------------------------------------------------
# Fused kernel: whole forward for one batch tile, everything VMEM/vreg resident.
# ----------------------------------------------------------------------------
def _pnet_kernel(x_ref, w1_ref, s_ref, w2_ref, w3_ref, wh_ref,
                 b1_ref, b2_ref, b3_ref, bh_ref, alpha_ref, o_ref):
    a1 = alpha_ref[0]
    a2 = alpha_ref[1]
    a3 = alpha_ref[2]

    def mm(a, b):
        return jnp.dot(a, b, preferred_element_type=jnp.float32)

    def prelu(y, a):
        return jnp.where(y >= 0.0, y, a * y)

    # conv1 (3x3, 3->10) + PReLU: one flattened-Toeplitz matmul for the whole tile.
    y1 = prelu(mm(x_ref[...], w1_ref[...]) + b1_ref[...], a1)            # (TN, 1000)

    # maxpool 2x2/2 (ceil; 10 is even -> exact): one selection matmul, then max over
    # the four 256-lane-aligned quarters (pad lanes are exact zeros; conv2 pad rows=0).
    p4 = mm(y1, s_ref[...])                                              # (TN, 1024)
    p1 = jnp.maximum(
        jnp.maximum(p4[:, 0 * POOL_PAD:1 * POOL_PAD],
                    p4[:, 1 * POOL_PAD:2 * POOL_PAD]),
        jnp.maximum(p4[:, 2 * POOL_PAD:3 * POOL_PAD],
                    p4[:, 3 * POOL_PAD:4 * POOL_PAD]))                   # (TN, 256)

    # conv2 (3x3, 10->16) + PReLU.
    y2 = prelu(mm(p1, w2_ref[...]) + b2_ref[...], a2)                    # (TN, 144)

    # conv3 (3x3, 16->32) + PReLU.
    y3 = prelu(mm(y2, w3_ref[...]) + b3_ref[...], a3)                    # (TN, 32)

    # fused 1x1 heads -> lane-dense (TN, 128) slab, one unmasked store per grid step.
    o_ref[...] = mm(y3, wh_ref[...]) + bh_ref[...]


def _pnet_pallas_call(n_pad, tile_n):
    def const2d(shape):
        return pl.BlockSpec(shape, lambda i: (0, 0))   # VMEM-resident across grid steps

    return pl.pallas_call(
        _pnet_kernel,
        out_shape=jax.ShapeDtypeStruct((n_pad, HEAD_LANES), jnp.float32),
        grid=(n_pad // tile_n,),
        in_specs=[
            pl.BlockSpec((tile_n, X_FLAT), lambda i: (i, 0)),   # x: tiled over batch
            const2d((X_FLAT, Y1_FLAT)),                         # conv1 Toeplitz
            const2d((Y1_FLAT, 4 * POOL_PAD)),                   # pool selection
            const2d((POOL_PAD, Y2_FLAT)),                       # conv2 Toeplitz (padded)
            const2d((Y2_FLAT, C3)),                             # conv3 Toeplitz
            const2d((C3, HEAD_LANES)),                          # fused 1x1 heads
            const2d((1, Y1_FLAT)),                              # b1 (tiled per position)
            const2d((1, Y2_FLAT)),                              # b2
            const2d((1, C3)),                                   # b3
            const2d((1, HEAD_LANES)),                           # fused head bias
            pl.BlockSpec(memory_space=pltpu.MemorySpace.SMEM),  # PReLU alphas
        ],
        out_specs=pl.BlockSpec((tile_n, HEAD_LANES), lambda i: (i, 0)),
        compiler_params=pltpu.CompilerParams(
            dimension_semantics=("parallel",)),
    )


def _round_up(a, b):
    return ((a + b - 1) // b) * b


@jax.jit
def pnet_forward(x_nchw, prep):
    """x_nchw: (N, 3, 12, 12) f32 -> (class (N,2), bbox (N,4), landmark (N,10))."""
    n = x_nchw.shape[0]
    x2d = (jnp.transpose(x_nchw, (0, 2, 3, 1))      # NCHW -> NHWC
           .astype(jnp.float32)
           .reshape(n, X_FLAT))                     # per-sample (h, w, c) flattened
    tile_n = min(MAX_TILE_N, _round_up(n, 8))
    n_pad = _round_up(n, tile_n)
    if n_pad != n:
        x2d = jnp.pad(x2d, ((0, n_pad - n), (0, 0)))
    heads = _pnet_pallas_call(n_pad, tile_n)(
        x2d, prep["w1"], prep["s"], prep["w2"], prep["w3"], prep["wh"],
        prep["b1"], prep["b2"], prep["b3"], prep["bh"], prep["alphas"])
    return heads[:n, 0:2], heads[:n, 2:6], heads[:n, 6:HEAD_USED]


# ----------------------------------------------------------------------------
# Parameter init (matches the PyTorch module) and one-time host-side packing.
# ----------------------------------------------------------------------------
def init_params(key):
    """kaiming_normal_(fan_out, relu) conv weights, PyTorch-default uniform biases,
    shared PReLU alpha = 0.25 per layer (nn.PReLU() default)."""
    def kaiming_w(k, cout, cin, kh, kw):
        std = math.sqrt(2.0 / (cout * kh * kw))
        return jax.random.normal(k, (cout, cin, kh, kw), jnp.float32) * std

    def default_b(k, cout, cin, kh, kw):
        bound = 1.0 / math.sqrt(cin * kh * kw)
        return jax.random.uniform(k, (cout,), jnp.float32, -bound, bound)

    ks = jax.random.split(key, 12)
    p = {}
    p["w1"], p["b1"] = kaiming_w(ks[0], 10, 3, 3, 3), default_b(ks[1], 10, 3, 3, 3)
    p["w2"], p["b2"] = kaiming_w(ks[2], 16, 10, 3, 3), default_b(ks[3], 16, 10, 3, 3)
    p["w3"], p["b3"] = kaiming_w(ks[4], 32, 16, 3, 3), default_b(ks[5], 32, 16, 3, 3)
    p["w4_1"], p["b4_1"] = kaiming_w(ks[6], 2, 32, 1, 1), default_b(ks[7], 2, 32, 1, 1)
    p["w4_2"], p["b4_2"] = kaiming_w(ks[8], 4, 32, 1, 1), default_b(ks[9], 4, 32, 1, 1)
    p["w4_3"], p["b4_3"] = kaiming_w(ks[10], 10, 32, 1, 1), default_b(ks[11], 10, 32, 1, 1)
    p["a1"] = jnp.array(0.25, jnp.float32)
    p["a2"] = jnp.array(0.25, jnp.float32)
    p["a3"] = jnp.array(0.25, jnp.float32)
    return p


def prepare_params(p):
    """One-time host (numpy) packing of PyTorch-layout params into the kernel layout."""

    def toeplitz_full(w, hi, wi, ho, wo):
        """(Cout,Cin,K,K) conv weight -> (hi*wi*cin, ho*wo*cout) flattened Toeplitz so
        that the whole valid conv is a single matmul on (h,w,c)-flattened activations."""
        w = np.asarray(w, np.float32)
        cout, cin, kh, kw = w.shape
        mat = np.zeros((hi * wi * cin, ho * wo * cout), np.float32)
        for oh in range(ho):
            for ow in range(wo):
                ob = (oh * wo + ow) * cout
                for dh in range(kh):
                    for dw in range(kw):
                        ib = ((oh + dh) * wi + (ow + dw)) * cin
                        mat[ib:ib + cin, ob:ob + cout] = w[:, :, dh, dw].T  # [cin, cout]
        return mat

    prep = {}
    prep["w1"] = jnp.asarray(toeplitz_full(p["w1"], H_IN, W_IN, H1, W1))   # (432, 1000)

    # Pool selection: four 0/1 quarters (one per 2x2 window offset), each padded to
    # 256 lanes so the in-kernel max uses 128-aligned slices.
    s = np.zeros((Y1_FLAT, 4 * POOL_PAD), np.float32)
    for q, (dh, dw) in enumerate(((0, 0), (0, 1), (1, 0), (1, 1))):
        for ph in range(HP):
            for pw in range(WP):
                for c in range(C1):
                    row = ((2 * ph + dh) * W1 + (2 * pw + dw)) * C1 + c
                    col = q * POOL_PAD + (ph * WP + pw) * C1 + c
                    s[row, col] = 1.0
    prep["s"] = jnp.asarray(s)                                             # (1000, 1024)

    w2 = toeplitz_full(p["w2"], HP, WP, H2, W2)                            # (250, 144)
    w2p = np.zeros((POOL_PAD, w2.shape[1]), np.float32)
    w2p[:w2.shape[0]] = w2                                                 # pad rows = 0
    prep["w2"] = jnp.asarray(w2p)                                          # (256, 144)

    prep["w3"] = jnp.asarray(toeplitz_full(p["w3"], H2, W2, 1, 1))         # (144, 32)

    # Fused 1x1 heads, zero-padded to a 128-lane slab: [class | bbox | landmark | 0].
    wh = np.zeros((C3, HEAD_LANES), np.float32)
    bh = np.zeros((1, HEAD_LANES), np.float32)
    off = 0
    for wk, bk in (("w4_1", "b4_1"), ("w4_2", "b4_2"), ("w4_3", "b4_3")):
        w = np.asarray(p[wk], np.float32)[:, :, 0, 0]                      # (cout_h, 32)
        wh[:, off:off + w.shape[0]] = w.T
        bh[0, off:off + w.shape[0]] = np.asarray(p[bk], np.float32)
        off += w.shape[0]
    prep["wh"] = jnp.asarray(wh)
    prep["bh"] = jnp.asarray(bh)

    # Biases tiled to the (1, Hout*Wout*Cout) flattened lane layout of each conv output.
    prep["b1"] = jnp.asarray(np.tile(np.asarray(p["b1"], np.float32), H1 * W1)[None, :])
    prep["b2"] = jnp.asarray(np.tile(np.asarray(p["b2"], np.float32), H2 * W2)[None, :])
    prep["b3"] = jnp.asarray(np.asarray(p["b3"], np.float32)[None, :])

    # All three shared PReLU alphas in one small SMEM vector.
    prep["alphas"] = jnp.stack([p["a1"], p["a2"], p["a3"]]).astype(jnp.float32)
    return prep


# ----------------------------------------------------------------------------
# Pure-XLA reference (no Pallas) for the in-script sanity check.
# ----------------------------------------------------------------------------
def pnet_reference(x_nchw, p):
    dn = ("NHWC", "HWIO", "NHWC")

    def conv(y, w, b):
        wj = jnp.transpose(w, (2, 3, 1, 0))          # OIHW -> HWIO
        out = jax.lax.conv_general_dilated(
            y, wj, window_strides=(1, 1), padding="VALID", dimension_numbers=dn,
            precision=jax.lax.Precision.HIGHEST)
        return out + b[None, None, None, :]

    def prelu(y, a):
        return jnp.maximum(y, 0.0) + a * jnp.minimum(y, 0.0)

    x = jnp.transpose(x_nchw, (0, 2, 3, 1)).astype(jnp.float32)
    y = prelu(conv(x, p["w1"], p["b1"]), p["a1"])
    y = jax.lax.reduce_window(y, -jnp.inf, jax.lax.max,
                              (1, 2, 2, 1), (1, 2, 2, 1), "VALID")
    y = prelu(conv(y, p["w2"], p["b2"]), p["a2"])
    y = prelu(conv(y, p["w3"], p["b3"]), p["a3"])
    heads = [conv(y, p[wk], p[bk])[:, 0, 0, :]
             for wk, bk in (("w4_1", "b4_1"), ("w4_2", "b4_2"), ("w4_3", "b4_3"))]
    return tuple(heads)


if __name__ == "__main__":
    key = jax.random.PRNGKey(0)
    k_param, k_x1, k_x2 = jax.random.split(key, 3)
    params = init_params(k_param)
    prep = prepare_params(params)            # one-time host-side weight packing

    # Canonical small test: batch=2, 12x12 PNet crops (matches the double squeeze(2)).
    x = jax.random.normal(k_x1, (2, 3, 12, 12), dtype=jnp.float32)
    class_out, bbox_out, landmark_out = pnet_forward(x, prep)
    jax.block_until_ready((class_out, bbox_out, landmark_out))
    assert class_out.shape == (2, 2)
    assert bbox_out.shape == (2, 4)
    assert landmark_out.shape == (2, 10)
    ref = pnet_reference(x, params)
    for got, want in zip((class_out, bbox_out, landmark_out), ref):
        # Loose tol: kernel uses default (reduced-precision) MXU passes vs HIGHEST ref.
        assert jnp.allclose(got, want, atol=1e-1, rtol=1e-1), \
            float(jnp.max(jnp.abs(got - want)))

    # Larger batch: exercises batch padding + a multi-step parallel grid (2 x 256 tiles).
    xb = jax.random.normal(k_x2, (300, 3, 12, 12), dtype=jnp.float32)
    outs = pnet_forward(xb, prep)
    jax.block_until_ready(outs)
    refb = pnet_reference(xb, params)
    for got, want in zip(outs, refb):
        assert got.shape == want.shape
        assert jnp.allclose(got, want, atol=1e-1, rtol=1e-1), \
            float(jnp.max(jnp.abs(got - want)))

    print("KERNEL_OK")
</pallas_src>

<mosaic_0001>
module attributes {stable_mosaic.version = 11 : i64} {
  func.func @_pnet_kernel(%arg0: i32, %arg1: memref<8x432xf32, #tpu.memory_space<vmem>>, %arg2: memref<432x1000xf32, #tpu.memory_space<vmem>>, %arg3: memref<1000x1024xf32, #tpu.memory_space<vmem>>, %arg4: memref<256x144xf32, #tpu.memory_space<vmem>>, %arg5: memref<144x32xf32, #tpu.memory_space<vmem>>, %arg6: memref<32x128xf32, #tpu.memory_space<vmem>>, %arg7: memref<1x1000xf32, #tpu.memory_space<vmem>>, %arg8: memref<1x144xf32, #tpu.memory_space<vmem>>, %arg9: memref<1x32xf32, #tpu.memory_space<vmem>>, %arg10: memref<1x128xf32, #tpu.memory_space<vmem>>, %arg11: memref<3xf32, #tpu.memory_space<smem>>, %arg12: memref<8x128xf32, #tpu.memory_space<vmem>>) attributes {dimension_semantics = [#tpu.dimension_semantics<parallel>], iteration_bounds = array<i64: 1>, scalar_prefetch = 0 : i64, scratch_operands = 0 : i64, tpu.core_type = #tpu.core_type<tc>, window_params = [{transform_indices = @transform_0, window_bounds = array<i64: 8, 432>}, {pipeline_mode = #tpu.pipeline_mode<synchronous>, transform_indices = @transform_1, window_bounds = array<i64: 432, 1000>}, {pipeline_mode = #tpu.pipeline_mode<synchronous>, transform_indices = @transform_2, window_bounds = array<i64: 1000, 1024>}, {pipeline_mode = #tpu.pipeline_mode<synchronous>, transform_indices = @transform_3, window_bounds = array<i64: 256, 144>}, {pipeline_mode = #tpu.pipeline_mode<synchronous>, transform_indices = @transform_4, window_bounds = array<i64: 144, 32>}, {pipeline_mode = #tpu.pipeline_mode<synchronous>, transform_indices = @transform_5, window_bounds = array<i64: 32, 128>}, {pipeline_mode = #tpu.pipeline_mode<synchronous>, transform_indices = @transform_6, window_bounds = array<i64: 1, 1000>}, {pipeline_mode = #tpu.pipeline_mode<synchronous>, transform_indices = @transform_7, window_bounds = array<i64: 1, 144>}, {pipeline_mode = #tpu.pipeline_mode<synchronous>, transform_indices = @transform_8, window_bounds = array<i64: 1, 32>}, {pipeline_mode = #tpu.pipeline_mode<synchronous>, transform_indices = @transform_9, window_bounds = array<i64: 1, 128>}, {transform_indices = @transform_10, window_bounds = array<i64: 3>}, {transform_indices = @transform_11, window_bounds = array<i64: 8, 128>}]} {
    %c0 = arith.constant 0 : index
    %0 = memref.load %arg11[%c0] : memref<3xf32, #tpu.memory_space<smem>>
    %c1 = arith.constant 1 : index
    %1 = memref.load %arg11[%c1] : memref<3xf32, #tpu.memory_space<smem>>
    %c2 = arith.constant 2 : index
    %2 = memref.load %arg11[%c2] : memref<3xf32, #tpu.memory_space<smem>>
    %c0_0 = arith.constant 0 : index
    %c0_1 = arith.constant 0 : index
    %3 = vector.load %arg1[%c0_0, %c0_1] : memref<8x432xf32, #tpu.memory_space<vmem>>, vector<8x432xf32>
    %c0_2 = arith.constant 0 : index
    %c0_3 = arith.constant 0 : index
    %4 = vector.load %arg2[%c0_2, %c0_3] : memref<432x1000xf32, #tpu.memory_space<vmem>>, vector<432x1000xf32>
    %cst = arith.constant dense<0.000000e+00> : vector<8x1000xf32>
    %5 = tpu.matmul %3, %4, %cst {dimension_numbers = #tpu.dot_dimension_numbers<[1], [0], [0], [1], [0, 0, 1, 1], [], []>} : vector<8x432xf32>, vector<432x1000xf32>, vector<8x1000xf32> -> vector<8x1000xf32>
    %c0_4 = arith.constant 0 : index
    %c0_5 = arith.constant 0 : index
    %6 = vector.load %arg7[%c0_4, %c0_5] : memref<1x1000xf32, #tpu.memory_space<vmem>>, vector<1x1000xf32>
    %7 = vector.broadcast %6 : vector<1x1000xf32> to vector<8x1000xf32>
    %8 = arith.addf %5, %7 : vector<8x1000xf32>
    %cst_6 = arith.constant 0.000000e+00 : f32
    %9 = vector.broadcast %cst_6 : f32 to vector<8x1000xf32>
    %10 = arith.cmpf oge, %8, %9 : vector<8x1000xf32>
    %11 = vector.broadcast %0 : f32 to vector<8x1000xf32>
    %12 = arith.mulf %11, %8 : vector<8x1000xf32>
    %13 = arith.select %10, %8, %12 : vector<8x1000xi1>, vector<8x1000xf32>
    %c0_7 = arith.constant 0 : index
    %c0_8 = arith.constant 0 : index
    %14 = vector.load %arg3[%c0_7, %c0_8] : memref<1000x1024xf32, #tpu.memory_space<vmem>>, vector<1000x1024xf32>
    %cst_9 = arith.constant dense<0.000000e+00> : vector<8x1024xf32>
    %15 = tpu.matmul %13, %14, %cst_9 {dimension_numbers = #tpu.dot_dimension_numbers<[1], [0], [0], [1], [0, 0, 1, 1], [], []>} : vector<8x1000xf32>, vector<1000x1024xf32>, vector<8x1024xf32> -> vector<8x1024xf32>
    %16 = vector.extract_strided_slice %15 {offsets = [0, 0], sizes = [8, 256], strides = [1, 1]} : vector<8x1024xf32> to vector<8x256xf32>
    %17 = vector.extract_strided_slice %15 {offsets = [0, 256], sizes = [8, 256], strides = [1, 1]} : vector<8x1024xf32> to vector<8x256xf32>
    %18 = arith.maximumf %16, %17 : vector<8x256xf32>
    %19 = vector.extract_strided_slice %15 {offsets = [0, 512], sizes = [8, 256], strides = [1, 1]} : vector<8x1024xf32> to vector<8x256xf32>
    %20 = vector.extract_strided_slice %15 {offsets = [0, 768], sizes = [8, 256], strides = [1, 1]} : vector<8x1024xf32> to vector<8x256xf32>
    %21 = arith.maximumf %19, %20 : vector<8x256xf32>
    %22 = arith.maximumf %18, %21 : vector<8x256xf32>
    %c0_10 = arith.constant 0 : index
    %c0_11 = arith.constant 0 : index
    %23 = vector.load %arg4[%c0_10, %c0_11] : memref<256x144xf32, #tpu.memory_space<vmem>>, vector<256x144xf32>
    %cst_12 = arith.constant dense<0.000000e+00> : vector<8x144xf32>
    %24 = tpu.matmul %22, %23, %cst_12 {dimension_numbers = #tpu.dot_dimension_numbers<[1], [0], [0], [1], [0, 0, 1, 1], [], []>} : vector<8x256xf32>, vector<256x144xf32>, vector<8x144xf32> -> vector<8x144xf32>
    %c0_13 = arith.constant 0 : index
    %c0_14 = arith.constant 0 : index
    %25 = vector.load %arg8[%c0_13, %c0_14] : memref<1x144xf32, #tpu.memory_space<vmem>>, vector<1x144xf32>
    %26 = vector.broadcast %25 : vector<1x144xf32> to vector<8x144xf32>
    %27 = arith.addf %24, %26 : vector<8x144xf32>
    %cst_15 = arith.constant 0.000000e+00 : f32
    %28 = vector.broadcast %cst_15 : f32 to vector<8x144xf32>
    %29 = arith.cmpf oge, %27, %28 : vector<8x144xf32>
    %30 = vector.broadcast %1 : f32 to vector<8x144xf32>
    %31 = arith.mulf %30, %27 : vector<8x144xf32>
    %32 = arith.select %29, %27, %31 : vector<8x144xi1>, vector<8x144xf32>
    %c0_16 = arith.constant 0 : index
    %c0_17 = arith.constant 0 : index
    %33 = vector.load %arg5[%c0_16, %c0_17] : memref<144x32xf32, #tpu.memory_space<vmem>>, vector<144x32xf32>
    %cst_18 = arith.constant dense<0.000000e+00> : vector<8x32xf32>
    %34 = tpu.matmul %32, %33, %cst_18 {dimension_numbers = #tpu.dot_dimension_numbers<[1], [0], [0], [1], [0, 0, 1, 1], [], []>} : vector<8x144xf32>, vector<144x32xf32>, vector<8x32xf32> -> vector<8x32xf32>
    %c0_19 = arith.constant 0 : index
    %c0_20 = arith.constant 0 : index
    %35 = vector.load %arg9[%c0_19, %c0_20] : memref<1x32xf32, #tpu.memory_space<vmem>>, vector<1x32xf32>
    %36 = vector.broadcast %35 : vector<1x32xf32> to vector<8x32xf32>
    %37 = arith.addf %34, %36 : vector<8x32xf32>
    %cst_21 = arith.constant 0.000000e+00 : f32
    %38 = vector.broadcast %cst_21 : f32 to vector<8x32xf32>
    %39 = arith.cmpf oge, %37, %38 : vector<8x32xf32>
    %40 = vector.broadcast %2 : f32 to vector<8x32xf32>
    %41 = arith.mulf %40, %37 : vector<8x32xf32>
    %42 = arith.select %39, %37, %41 : vector<8x32xi1>, vector<8x32xf32>
    %c0_22 = arith.constant 0 : index
    %c0_23 = arith.constant 0 : index
    %43 = vector.load %arg6[%c0_22, %c0_23] : memref<32x128xf32, #tpu.memory_space<vmem>>, vector<32x128xf32>
    %cst_24 = arith.constant dense<0.000000e+00> : vector<8x128xf32>
    %44 = tpu.matmul %42, %43, %cst_24 {dimension_numbers = #tpu.dot_dimension_numbers<[1], [0], [0], [1], [0, 0, 1, 1], [], []>} : vector<8x32xf32>, vector<32x128xf32>, vector<8x128xf32> -> vector<8x128xf32>
    %c0_25 = arith.constant 0 : index
    %c0_26 = arith.constant 0 : index
    %45 = vector.load %arg10[%c0_25, %c0_26] : memref<1x128xf32, #tpu.memory_space<vmem>>, vector<1x128xf32>
    %46 = vector.broadcast %45 : vector<1x128xf32> to vector<8x128xf32>
    %47 = arith.addf %44, %46 : vector<8x128xf32>
    %c0_27 = arith.constant 0 : index
    %c0_28 = arith.constant 0 : index
    %48 = vector.load %arg12[%c0_27, %c0_28] : memref<8x128xf32, #tpu.memory_space<vmem>>, vector<8x128xf32>
    tpu.vector_store %arg12[%c0_27, %c0_28], %47 {strides = array<i32>} : memref<8x128xf32, #tpu.memory_space<vmem>>, vector<8x128xf32>,
    return
  }
  func.func @transform_0(%arg0: i32) -> (i32, i32) {
    %c0_i32 = arith.constant 0 : i32
    %c0_i32_0 = arith.constant 0 : i32
    return %arg0, %c0_i32 : i32, i32
  }
  func.func @transform_1(%arg0: i32) -> (i32, i32) {
    %c0_i32 = arith.constant 0 : i32
    %c0_i32_0 = arith.constant 0 : i32
    %c0_i32_1 = arith.constant 0 : i32
    return %c0_i32, %c0_i32_0 : i32, i32
  }
  func.func @transform_2(%arg0: i32) -> (i32, i32) {
    %c0_i32 = arith.constant 0 : i32
    %c0_i32_0 = arith.constant 0 : i32
    %c0_i32_1 = arith.constant 0 : i32
    return %c0_i32, %c0_i32_0 : i32, i32
  }
  func.func @transform_3(%arg0: i32) -> (i32, i32) {
    %c0_i32 = arith.constant 0 : i32
    %c0_i32_0 = arith.constant 0 : i32
    %c0_i32_1 = arith.constant 0 : i32
    return %c0_i32, %c0_i32_0 : i32, i32
  }
  func.func @transform_4(%arg0: i32) -> (i32, i32) {
    %c0_i32 = arith.constant 0 : i32
    %c0_i32_0 = arith.constant 0 : i32
    %c0_i32_1 = arith.constant 0 : i32
    return %c0_i32, %c0_i32_0 : i32, i32
  }
  func.func @transform_5(%arg0: i32) -> (i32, i32) {
    %c0_i32 = arith.constant 0 : i32
    %c0_i32_0 = arith.constant 0 : i32
    %c0_i32_1 = arith.constant 0 : i32
    return %c0_i32, %c0_i32_0 : i32, i32
  }
  func.func @transform_6(%arg0: i32) -> (i32, i32) {
    %c0_i32 = arith.constant 0 : i32
    %c0_i32_0 = arith.constant 0 : i32
    %c0_i32_1 = arith.constant 0 : i32
    return %c0_i32, %c0_i32_0 : i32, i32
  }
  func.func @transform_7(%arg0: i32) -> (i32, i32) {
    %c0_i32 = arith.constant 0 : i32
    %c0_i32_0 = arith.constant 0 : i32
    %c0_i32_1 = arith.constant 0 : i32
    return %c0_i32, %c0_i32_0 : i32, i32
  }
  func.func @transform_8(%arg0: i32) -> (i32, i32) {
    %c0_i32 = arith.constant 0 : i32
    %c0_i32_0 = arith.constant 0 : i32
    %c0_i32_1 = arith.constant 0 : i32
    return %c0_i32, %c0_i32_0 : i32, i32
  }
  func.func @transform_9(%arg0: i32) -> (i32, i32) {
    %c0_i32 = arith.constant 0 : i32
    %c0_i32_0 = arith.constant 0 : i32
    %c0_i32_1 = arith.constant 0 : i32
    return %c0_i32, %c0_i32_0 : i32, i32
  }
  func.func @transform_10(%arg0: i32) -> i32 {
    %c0_i32 = arith.constant 0 : i32
    %c0_i32_0 = arith.constant 0 : i32
    return %c0_i32 : i32
  }
  func.func @transform_11(%arg0: i32) -> (i32, i32) {
    %c0_i32 = arith.constant 0 : i32
    %c0_i32_0 = arith.constant 0 : i32
    return %arg0, %c0_i32 : i32, i32
  }
}

</mosaic_0001>

<bundles_post_ra>
// kernel: pnet_forward.1
= control target key start
LH: loop header
LB: loop body
LE: loop exit
PB: predicated region body
PF: predicated region fallthrough
CT: control target
= control target key end

     0   :  { %16 = vsyncpa [#allocation3], 0  ;;  %s6104_s0 = inlined_call_operand.vmem [shape: f32[8,432], index: 0, kind: input, shape index: {}]   ;;  %s6105_s1 = inlined_call_operand.hbm [shape: f32[432,1000], index: 1, kind: input, shape index: {}]   ;;  %s6106_s2 = inlined_call_operand.hbm [shape: f32[1000,1024], index: 2, kind: input, shape index: {}]   ;;  %s6107_s3 = inlined_call_operand.vmem [shape: f32[256,144], index: 3, kind: input, shape index: {}]   ;;  %s6108_s4 = inlined_call_operand.vmem [shape: f32[144,32], index: 4, kind: input, shape index: {}]   ;;  %s6109_s5 = inlined_call_operand.hbm [shape: f32[32,128], index: 5, kind: input, shape index: {}]   ;;  %s6110_s6 = inlined_call_operand.hbm [shape: f32[1,1000], index: 6, kind: input, shape index: {}]   ;;  %s6111_s7 = inlined_call_operand.hbm [shape: f32[1,144], index: 7, kind: input, shape index: {}]   ;;  %s6112_s8 = inlined_call_operand.hbm [shape: f32[1,32], index: 8, kind: input, shape index: {}]   ;;  %s6113_s9 = inlined_call_operand.hbm [shape: f32[1,128], index: 9, kind: input, shape index: {}]   ;;  %s6114_s10 = inlined_call_operand.hbm [shape: f32[3], index: 10, kind: input, shape index: {}]   ;;  %s6115_s11 = inlined_call_operand.vmem [shape: f32[8,128], index: 11, kind: output, shape index: {}]  }
   0x1   :  { %17 = vsyncpa [#allocation6], 0 }
   0x2   :  { %18 = vsyncpa [#allocation9], 0 }
   0x3   :  { %19 = vsyncpa [#allocation12], 0 }
   0x4   :  { %20 = vsyncpa [#allocation4], 0  ;;  %s5493_s17 = smov [#allocation5]   ;;  %s5494_s19 = smov [#allocation8]  }
   0x5   :  { %s40_s18 = sshll.u32 %s5493_s17, 4  ;;  %s69_s20 = sshll.u32 %s5494_s19, 4  ;;  %s41_s18 = int_to_ptr.vmem [resolvable:$true] %s40_s18  ;;  %s70_s20 = int_to_ptr.vmem [resolvable:$true] %s69_s20 }
   0x6   :  { %s5319_s23 = scalar_lea.hbm %s6106_s2, 128000 }
   0x7   :  { %p5320_p0 = scmp.ne.s32.totalorder %s6106_s2, %s5319_s23  ;;  %p5323_p1 = scmp.lt.u32.totalorder %s5319_s23, %s6106_s2 }
   0x9   :  { %p5325_p2 = pnand %p5323_p1, %p5320_p0 }
   0xb   :  { %5328 = shalt.err (!%p5325_p2)
}
   0xc   :  { %s5329_s28 = scalar_lea.vmem %s41_s18, 128000  ;;  %p5334_p4 = scmp.lt.s32.totalorder %s41_s18, %s41_s18 }
   0xd   :  { %p5330_p3 = scmp.ne.s32.totalorder %s41_s18, %s5329_s28  ;;  %p5335_p5 = scmp.lt.s32.totalorder %s5329_s28, %s5329_s28 }
   0xf   :  { %p5336_p6 = por %p5335_p5, %p5334_p4 }
  0x11   :  { %p5337_p7 = pnand %p5336_p6, %p5330_p3 }
  0x13   :  { %5340 = shalt.err (!%p5337_p7)
}
  0x14   :  { %s5495_s29 = smov 1024   ;;  %s5496_s30 = smov 64  }
  0x15   :  { %46 = dma.hbm_to_vmem [thread:$0]  %s6106_s2, 128000, %s41_s18, [#allocation6], %s5495_s29, %s5495_s29, %s5496_s30  }
  0x16   :  { %s5341_s16 = scalar_lea.hbm %s6110_s6, 128 }
  0x17   :  { %p5342_p8 = scmp.ne.s32.totalorder %s6110_s6, %s5341_s16  ;;  %p5345_p9 = scmp.lt.u32.totalorder %s5341_s16, %s6110_s6 }
  0x19   :  { %p5347_p10 = pnand %p5345_p9, %p5342_p8 }
  0x1b   :  { %5350 = shalt.err (!%p5347_p10)
}
  0x1c   :  { %s5351_s23 = scalar_lea.vmem %s70_s20, 128  ;;  %p5356_p12 = scmp.lt.s32.totalorder %s70_s20, %s70_s20 }
  0x1d   :  { %p5352_p11 = scmp.ne.s32.totalorder %s70_s20, %s5351_s23  ;;  %p5357_p13 = scmp.lt.s32.totalorder %s5351_s23, %s5351_s23 }
  0x1f   :  { %p5358_p0 = por %p5357_p13, %p5356_p12 }
  0x21   :  { %p5359_p1 = pnand %p5358_p0, %p5352_p11 }
  0x23   :  { %5362 = shalt.err (!%p5359_p1)
}
  0x24   :  { %72 = dma.hbm_to_vmem [thread:$0]  %s6110_s6, 128, %s70_s20, [#allocation9]  }
  0x25   :  { %s5497_s24 = smov [#allocation11]   ;;  %s5498_s26 = smov [#allocation2]  }
  0x26   :  { %s89_s25 = sshll.u32 %s5497_s24, 4  ;;  %s28_s27 = sshll.u32 %s5498_s26, 4  ;;  %s90_s25 = int_to_ptr.vmem [resolvable:$true] %s89_s25  ;;  %s5595_s27 = int_to_ptr.vmem [resolvable:$true] %s28_s27 }
  0x27   :  { %s5363_s13 = scalar_lea.hbm %s6112_s8, 16 }
  0x28   :  { %p5364_p2 = scmp.ne.s32.totalorder %s6112_s8, %s5363_s13  ;;  %p5367_p3 = scmp.lt.u32.totalorder %s5363_s13, %s6112_s8 }
  0x2a   :  { %p5369_p4 = pnand %p5367_p3, %p5364_p2 }
  0x2c   :  { %5372 = shalt.err (!%p5369_p4)
}
  0x2d   :  { %s5373_s6 = scalar_lea.vmem %s90_s25, 16  ;;  %s5377_s20 = scalar_lea.vmem %s90_s25, 32 }
  0x2e   :  { %p5374_p5 = scmp.ne.s32.totalorder %s90_s25, %s5373_s6  ;;  %p5378_p6 = scmp.lt.s32.totalorder %s90_s25, %s90_s25 }
  0x2f   :  { %p5379_p7 = scmp.lt.s32.totalorder %s5377_s20, %s5373_s6 }
  0x31   :  { %p5380_p8 = por %p5379_p7, %p5378_p6 }
  0x33   :  { %p5381_p9 = pnand %p5380_p8, %p5374_p5 }
  0x35   :  { %5384 = shalt.err (!%p5381_p9)
}
  0x36   :  { %92 = dma.hbm_to_vmem [thread:$0]  %s6112_s8, 16, %s90_s25, [#allocation12]  }
  0x37   :  { %s5385_s2 = scalar_lea.hbm %s6105_s1, 55296 }
  0x38   :  { %p5386_p10 = scmp.ne.s32.totalorder %s6105_s1, %s5385_s2  ;;  %p5389_p11 = scmp.lt.u32.totalorder %s5385_s2, %s6105_s1 }
  0x3a   :  { %p5391_p12 = pnand %p5389_p11, %p5386_p10 }
  0x3c   :  { %5394 = shalt.err (!%p5391_p12)
}
  0x3d   :  { %s5395_s12 = scalar_lea.vmem %s5595_s27, 55296  ;;  %p5400_p0 = scmp.lt.s32.totalorder %s5595_s27, %s5595_s27 }
  0x3e   :  { %p5396_p13 = scmp.ne.s32.totalorder %s5595_s27, %s5395_s12  ;;  %p5401_p1 = scmp.lt.s32.totalorder %s5395_s12, %s5395_s12 }
  0x40   :  { %p5402_p2 = por %p5401_p1, %p5400_p0 }
  0x42   :  { %p5403_p3 = pnand %p5402_p2, %p5396_p13 }
  0x44   :  { %5406 = shalt.err (!%p5403_p3)
}
  0x45   :  { %34 = dma.hbm_to_vmem [thread:$0]  %s6105_s1, 55296, %s5595_s27, [#allocation3], %s5495_s29, %s5495_s29, %s5496_s30  }
  0x46   :  { %s5499_s13 = smov [#allocation7]   ;;  %s5407_s17 = scalar_lea.hbm %s6109_s5, 512 }
  0x47   :  { %s56_s14 = sshll.u32 %s5499_s13, 4  ;;  %p5408_p4 = scmp.ne.s32.totalorder %s6109_s5, %s5407_s17  ;;  %s57_s14 = int_to_ptr.vmem [resolvable:$true] %s56_s14 }
  0x48   :  { %p5411_p5 = scmp.lt.u32.totalorder %s5407_s17, %s6109_s5 }
  0x4a   :  { %p5413_p6 = pnand %p5411_p5, %p5408_p4 }
  0x4c   :  { %5416 = shalt.err (!%p5413_p6)
}
  0x4d   :  { %s5417_s22 = scalar_lea.vmem %s57_s14, 512  ;;  %p5422_p8 = scmp.lt.s32.totalorder %s57_s14, %s57_s14 }
  0x4e   :  { %p5418_p7 = scmp.ne.s32.totalorder %s57_s14, %s5417_s22  ;;  %p5423_p9 = scmp.lt.s32.totalorder %s5417_s22, %s5417_s22 }
  0x50   :  { %p5424_p10 = por %p5423_p9, %p5422_p8 }
  0x52   :  { %p5425_p11 = pnand %p5424_p10, %p5418_p7 }
  0x54   :  { %5428 = shalt.err (!%p5425_p11)
}
  0x55   :  { %s5500_s1 = smov 128   ;;  %s5501_s29 = smov 8  }
  0x56   :  { %62 = dma.hbm_to_vmem [thread:$0]  %s6109_s5, 512, %s57_s14, [#allocation6], %s5500_s1, %s5500_s1, %s5501_s29  }
  0x57   :  { %s5502_s23 = smov [#allocation10]   ;;  %s5503_s18 = smov [#allocation13]  }
  0x58   :  { %s79_s2 = sshll.u32 %s5502_s23, 4  ;;  %s99_s24 = sshll.u32 %s5503_s18, 4  ;;  %s80_s2 = int_to_ptr.vmem [resolvable:$true] %s79_s2  ;;  %s100_s24 = int_to_ptr.vmem [resolvable:$true] %s99_s24 }
  0x59   :  { %s5429_s12 = scalar_lea.hbm %s6111_s7, 32 }
  0x5a   :  { %p5430_p12 = scmp.ne.s32.totalorder %s6111_s7, %s5429_s12  ;;  %p5433_p13 = scmp.lt.u32.totalorder %s5429_s12, %s6111_s7 }
  0x5c   :  { %p5435_p0 = pnand %p5433_p13, %p5430_p12 }
  0x5e   :  { %5438 = shalt.err (!%p5435_p0)
}
  0x5f   :  { %s5439_s5 = scalar_lea.vmem %s80_s2, 32  ;;  %p5444_p2 = scmp.lt.s32.totalorder %s80_s2, %s80_s2 }
  0x60   :  { %p5440_p1 = scmp.ne.s32.totalorder %s80_s2, %s5439_s5  ;;  %p5445_p3 = scmp.lt.s32.totalorder %s5439_s5, %s5439_s5 }
  0x62   :  { %p5446_p4 = por %p5445_p3, %p5444_p2 }
  0x64   :  { %p5447_p5 = pnand %p5446_p4, %p5440_p1 }
  0x66   :  { %5450 = shalt.err (!%p5447_p5)
}
  0x67   :  { %82 = dma.hbm_to_vmem [thread:$0]  %s6111_s7, 32, %s80_s2, [#allocation9]  }
  0x68   :  { %s5451_s20 = scalar_lea.hbm %s6113_s9, 16 }
  0x69   :  { %p5452_p6 = scmp.ne.s32.totalorder %s6113_s9, %s5451_s20  ;;  %p5455_p7 = scmp.lt.u32.totalorder %s5451_s20, %s6113_s9 }
  0x6b   :  { %p5457_p8 = pnand %p5455_p7, %p5452_p6 }
  0x6d   :  { %5460 = shalt.err (!%p5457_p8)
}
  0x6e   :  { %s5461_s29 = scalar_lea.vmem %s100_s24, 16  ;;  %s5465_s30 = scalar_lea.vmem %s100_s24, 32 }
  0x6f   :  { %p5462_p9 = scmp.ne.s32.totalorder %s100_s24, %s5461_s29  ;;  %p5466_p10 = scmp.lt.s32.totalorder %s100_s24, %s100_s24 }
  0x70   :  { %p5467_p11 = scmp.lt.s32.totalorder %s5465_s30, %s5461_s29 }
  0x72   :  { %p5468_p12 = por %p5467_p11, %p5466_p10 }
  0x74   :  { %p5469_p13 = pnand %p5468_p12, %p5462_p9 }
  0x76   :  { %5472 = shalt.err (!%p5469_p13)
}
  0x77   :  { %102 = dma.hbm_to_vmem [thread:$0]  %s6113_s9, 16, %s100_s24, [#allocation12]  }
  0x78   :  { %s5473_s18 = scalar_lea.hbm %s6114_s10, 16 }
  0x79   :  { %p5474_p0 = scmp.ne.s32.totalorder %s6114_s10, %s5473_s18  ;;  %p5477_p1 = scmp.lt.u32.totalorder %s5473_s18, %s6114_s10 }
  0x7b   :  { %p5479_p2 = pnand %p5477_p1, %p5474_p0 }
  0x7d   :  { %5482 = shalt.err (!%p5479_p2)
}
  0x7e   :  { %s5504_s25 = smov [#allocation14]  }
  0x7f   :  { %110 = dma.hbm_to_smem %s6114_s10, 16, %s5504_s25, [#allocation4]  }
  0x80   :  { %5483 = dma.done.wait [#allocation3], 55296  }
  0x81   :  { %5484 = vsyncadd [#allocation3], 4294912000 }
  0x82   :  { %5485 = dma.done.wait [#allocation6], 128512  }
  0x83   :  { %5486 = vsyncadd [#allocation6], 4294838784 }
  0x84   :  { %5487 = dma.done.wait [#allocation9], 160  }
  0x85   :  { %5488 = vsyncadd [#allocation9], 4294967136 }
  0x86   :  { %5489 = dma.done.wait [#allocation12], 32  }
  0x87   :  { %5490 = vsyncadd [#allocation12], 4294967264 }
  0x88   :  { %5491 = dma.done.wait [#allocation4], 16  }
  0x89   :  { %5492 = vsyncadd [#allocation4], 4294967280 }
  0x8a   :  { %135 = sfence }
  0x8b   :  { %v144_v0 = vld [vmem:[#allocation2 + $0x8] sm:$0xff]  ;;  %v146_v2 = vld [vmem:[#allocation2 + $0x18] sm:$0xff]  ;;  %v143_v5 = vld [vmem:[#allocation2] sm:$0xff]  ;;  %vm617_vm0 = vcmask 392192   ;;  %vm2214_vm8 = vcmask 850944   ;;  %s3712_s5 = sld [smem:[#allocation14 + $0x1]] }
  0x8c   :  { %v152_v1 = vld [vmem:[#allocation2 + $0x48] sm:$0xff]  ;;  %v154_v4 = vld [vmem:[#allocation2 + $0x58] sm:$0xff]  ;;  %v151_v6 = vld [vmem:[#allocation2 + $0x40] sm:$0xff]  ;;  %vm3539_vm12 = vcmask 130048   ;;  %vm5506_vm13 = vmmov 0   ;;  %vm3628_vm15 = vcmask 261120  }
  0x8d   :  { %v3742_v3 = vpack.c.bf16 %v152_v1, %v144_v0  ;;  %v3850_v7 = vpack.c.bf16 %v154_v4, %v146_v2  ;;  %v3744_v8 = vpack.c.bf16 %v151_v6, %v143_v5  ;;  %v145_v9 = vld [vmem:[#allocation2 + $0x10] sm:$0xff]  ;;  %v160_v11 = vld [vmem:[#allocation2 + $0x88] sm:$0xff]  ;;  %v162_v14 = vld [vmem:[#allocation2 + $0x98] sm:$0xff] }
  0x8e   :  { %v153_v10 = vld [vmem:[#allocation2 + $0x50] sm:$0xff]  ;;  %v168_v13 = vld [vmem:[#allocation2 + $0xc8] sm:$0xff]  ;;  %v170_v15 = vld [vmem:[#allocation2 + $0xd8] sm:$0xff] }
  0x8f   :  { %3743 = vmatprep.subr.bf16.mxu0 %v3742_v3  ;;  %v3852_v12 = vpack.c.bf16 %v153_v10, %v145_v9  ;;  %3851 = vmatprep.subr.bf16.mxu1 %v3850_v7  ;;  %v3746_v16 = vpack.c.bf16 %v168_v13, %v160_v11  ;;  %v3854_v17 = vpack.c.bf16 %v170_v15, %v162_v14  ;;  %v159_v18 = vld [vmem:[#allocation2 + $0x80] sm:$0xff]  ;;  %v161_v20 = vld [vmem:[#allocation2 + $0x90] sm:$0xff]  ;;  %v176_v23 = vld [vmem:[#allocation2 + $0x108] sm:$0xff] }
  0x90   :  { %3745 = vmatpush1.bf16.msra.mxu0 %v3744_v8  ;;  %v167_v19 = vld [vmem:[#allocation2 + $0xc0] sm:$0xff]  ;;  %v169_v22 = vld [vmem:[#allocation2 + $0xd0] sm:$0xff]  ;;  %v184_v24 = vld [vmem:[#allocation2 + $0x148] sm:$0xff] }
  0x91   :  { %3853 = vmatpush1.bf16.msra.mxu1 %v3852_v12  ;;  %v3748_v21 = vpack.c.bf16 %v167_v19, %v159_v18  ;;  %3747 = vmatprep.subr.bf16.mxu0 %v3746_v16  ;;  %v3856_v25 = vpack.c.bf16 %v169_v22, %v161_v20  ;;  %v3750_v26 = vpack.c.bf16 %v184_v24, %v176_v23  ;;  %v178_v27 = vld [vmem:[#allocation2 + $0x118] sm:$0xff]  ;;  %v175_v29 = vld [vmem:[#allocation2 + $0x100] sm:$0xff]  ;;  %v177_v32 = vld [vmem:[#allocation2 + $0x110] sm:$0xff] }
  0x92   :  { %3855 = vmatprep.subr.bf16.mxu1 %v3854_v17  ;;  %v186_v28 = vld [vmem:[#allocation2 + $0x158] sm:$0xff]  ;;  %v183_v31 = vld [vmem:[#allocation2 + $0x140] sm:$0xff]  ;;  %v185_v33 = vld [vmem:[#allocation2 + $0x150] sm:$0xff] }
  0x93   :  { %v3858_v30 = vpack.c.bf16 %v186_v28, %v178_v27  ;;  %v3752_v34 = vpack.c.bf16 %v183_v31, %v175_v29  ;;  %v192_v35 = vld [vmem:[#allocation2 + $0x188] sm:$0xff]  ;;  %v194_v37 = vld [vmem:[#allocation2 + $0x198] sm:$0xff]  ;;  %v3860_v38 = vpack.c.bf16 %v185_v33, %v177_v32  ;;  %v191_v41 = vld [vmem:[#allocation2 + $0x180] sm:$0xff] }
  0x94   :  { %3749 = vmatpush1.bf16.msra.mxu0 %v3748_v21  ;;  %v200_v36 = vld [vmem:[#allocation2 + $0x1c8] sm:$0xff]  ;;  %v202_v40 = vld [vmem:[#allocation2 + $0x1d8] sm:$0xff]  ;;  %v199_v42 = vld [vmem:[#allocation2 + $0x1c0] sm:$0xff] }
  0x95   :  { %3857 = vmatpush1.bf16.msra.mxu1 %v3856_v25  ;;  %3751 = vmatprep.subr.bf16.mxu0 %v3750_v26  ;;  %v3754_v39 = vpack.c.bf16 %v200_v36, %v192_v35  ;;  %v3862_v43 = vpack.c.bf16 %v202_v40, %v194_v37  ;;  %v193_v44 = vld [vmem:[#allocation2 + $0x190] sm:$0xff]  ;;  %v208_v46 = vld [vmem:[#allocation2 + $0x208] sm:$0xff]  ;;  %v210_v48 = vld [vmem:[#allocation2 + $0x218] sm:$0xff]  ;;  %v3756_v50 = vpack.c.bf16 %v199_v42, %v191_v41 }
  0x96   :  { %3859 = vmatprep.subr.bf16.mxu1 %v3858_v30  ;;  %v201_v45 = vld [vmem:[#allocation2 + $0x1d0] sm:$0xff]  ;;  %v216_v47 = vld [vmem:[#allocation2 + $0x248] sm:$0xff]  ;;  %v218_v49 = vld [vmem:[#allocation2 + $0x258] sm:$0xff] }
  0x97   :  { %v3864_v51 = vpack.c.bf16 %v201_v45, %v193_v44  ;;  %v3758_v52 = vpack.c.bf16 %v216_v47, %v208_v46  ;;  %v207_v53 = vld [vmem:[#allocation2 + $0x200] sm:$0xff]  ;;  %v209_v55 = vld [vmem:[#allocation2 + $0x210] sm:$0xff]  ;;  %v3866_v56 = vpack.c.bf16 %v218_v49, %v210_v48  ;;  %v224_v58 = vld [vmem:[#allocation2 + $0x288] sm:$0xff] }
  0x98   :  { %3753 = vmatpush1.bf16.msra.mxu0 %v3752_v34  ;;  %v215_v54 = vld [vmem:[#allocation2 + $0x240] sm:$0xff]  ;;  %v217_v57 = vld [vmem:[#allocation2 + $0x250] sm:$0xff]  ;;  %v232_v59 = vld [vmem:[#allocation2 + $0x2c8] sm:$0xff] }
  0x99   :  { %3861 = vmatpush1.bf16.msra.mxu1 %v3860_v38  ;;  %3755 = vmatprep.subr.bf16.mxu0 %v3754_v39  ;;  %v226_v60 = vld [vmem:[#allocation2 + $0x298] sm:$0xff]  ;;  %v3760_v62 = vpack.c.bf16 %v215_v54, %v207_v53  ;;  %v3868_v63 = vpack.c.bf16 %v217_v57, %v209_v55  ;;  %v3762_v0 = vpack.c.bf16 %v232_v59, %v224_v58  ;;  %v223_v1 = vld [vmem:[#allocation2 + $0x280] sm:$0xff]  ;;  %v225_v3 = vld [vmem:[#allocation2 + $0x290] sm:$0xff] }
  0x9a   :  { %3863 = vmatprep.subr.bf16.mxu1 %v3862_v43  ;;  %v234_v61 = vld [vmem:[#allocation2 + $0x2d8] sm:$0xff]  ;;  %v231_v2 = vld [vmem:[#allocation2 + $0x2c0] sm:$0xff]  ;;  %v233_v5 = vld [vmem:[#allocation2 + $0x2d0] sm:$0xff] }
  0x9b   :  { %v3870_v4 = vpack.c.bf16 %v234_v61, %v226_v60  ;;  %v240_v6 = vld [vmem:[#allocation2 + $0x308] sm:$0xff]  ;;  %v242_v8 = vld [vmem:[#allocation2 + $0x318] sm:$0xff]  ;;  %v3764_v10 = vpack.c.bf16 %v231_v2, %v223_v1  ;;  %v3872_v11 = vpack.c.bf16 %v233_v5, %v225_v3  ;;  %v239_v13 = vld [vmem:[#allocation2 + $0x300] sm:$0xff] }
  0x9c   :  { %3757 = vmatpush1.bf16.msra.mxu0 %v3756_v50  ;;  %v248_v7 = vld [vmem:[#allocation2 + $0x348] sm:$0xff]  ;;  %v250_v9 = vld [vmem:[#allocation2 + $0x358] sm:$0xff]  ;;  %v247_v14 = vld [vmem:[#allocation2 + $0x340] sm:$0xff] }
  0x9d   :  { %3865 = vmatpush1.bf16.msra.mxu1 %v3864_v51  ;;  %3759 = vmatprep.subr.bf16.mxu0 %v3758_v52  ;;  %v3766_v12 = vpack.c.bf16 %v248_v7, %v240_v6  ;;  %v241_v15 = vld [vmem:[#allocation2 + $0x310] sm:$0xff]  ;;  %v3874_v16 = vpack.c.bf16 %v250_v9, %v242_v8  ;;  %v256_v18 = vld [vmem:[#allocation2 + $0x388] sm:$0xff]  ;;  %v258_v20 = vld [vmem:[#allocation2 + $0x398] sm:$0xff]  ;;  %v3768_v22 = vpack.c.bf16 %v247_v14, %v239_v13 }
  0x9e   :  { %3867 = vmatprep.subr.bf16.mxu1 %v3866_v56  ;;  %v249_v17 = vld [vmem:[#allocation2 + $0x350] sm:$0xff]  ;;  %v264_v19 = vld [vmem:[#allocation2 + $0x3c8] sm:$0xff]  ;;  %v266_v21 = vld [vmem:[#allocation2 + $0x3d8] sm:$0xff] }
  0x9f   :  { %v3876_v23 = vpack.c.bf16 %v249_v17, %v241_v15  ;;  %v3770_v24 = vpack.c.bf16 %v264_v19, %v256_v18  ;;  %v255_v25 = vld [vmem:[#allocation2 + $0x380] sm:$0xff]  ;;  %v257_v27 = vld [vmem:[#allocation2 + $0x390] sm:$0xff]  ;;  %v3878_v28 = vpack.c.bf16 %v266_v21, %v258_v20  ;;  %v272_v30 = vld [vmem:[#allocation2 + $0x408] sm:$0xff] }
  0xa0   :  { %3761 = vmatpush1.bf16.msra.mxu0 %v3760_v62  ;;  %v263_v26 = vld [vmem:[#allocation2 + $0x3c0] sm:$0xff]  ;;  %v265_v29 = vld [vmem:[#allocation2 + $0x3d0] sm:$0xff]  ;;  %v280_v31 = vld [vmem:[#allocation2 + $0x448] sm:$0xff] }
  0xa1   :  { %3869 = vmatpush1.bf16.msra.mxu1 %v3868_v63  ;;  %3763 = vmatprep.subr.bf16.mxu0 %v3762_v0  ;;  %v274_v32 = vld [vmem:[#allocation2 + $0x418] sm:$0xff]  ;;  %v3772_v34 = vpack.c.bf16 %v263_v26, %v255_v25  ;;  %v3880_v35 = vpack.c.bf16 %v265_v29, %v257_v27  ;;  %v3774_v36 = vpack.c.bf16 %v280_v31, %v272_v30  ;;  %v271_v37 = vld [vmem:[#allocation2 + $0x400] sm:$0xff]  ;;  %v273_v39 = vld [vmem:[#allocation2 + $0x410] sm:$0xff] }
  0xa2   :  { %3871 = vmatprep.subr.bf16.mxu1 %v3870_v4  ;;  %v282_v33 = vld [vmem:[#allocation2 + $0x458] sm:$0xff]  ;;  %v279_v38 = vld [vmem:[#allocation2 + $0x440] sm:$0xff]  ;;  %v281_v41 = vld [vmem:[#allocation2 + $0x450] sm:$0xff] }
  0xa3   :  { %v3882_v40 = vpack.c.bf16 %v282_v33, %v274_v32  ;;  %v288_v42 = vld [vmem:[#allocation2 + $0x488] sm:$0xff]  ;;  %v290_v44 = vld [vmem:[#allocation2 + $0x498] sm:$0xff]  ;;  %v3776_v46 = vpack.c.bf16 %v279_v38, %v271_v37  ;;  %v3884_v47 = vpack.c.bf16 %v281_v41, %v273_v39  ;;  %v287_v49 = vld [vmem:[#allocation2 + $0x480] sm:$0xff] }
  0xa4   :  { %3765 = vmatpush1.bf16.msra.mxu0 %v3764_v10  ;;  %v296_v43 = vld [vmem:[#allocation2 + $0x4c8] sm:$0xff]  ;;  %v298_v45 = vld [vmem:[#allocation2 + $0x4d8] sm:$0xff]  ;;  %v295_v50 = vld [vmem:[#allocation2 + $0x4c0] sm:$0xff] }
  0xa5   :  { %3873 = vmatpush1.bf16.msra.mxu1 %v3872_v11  ;;  %3767 = vmatprep.subr.bf16.mxu0 %v3766_v12  ;;  %v3778_v48 = vpack.c.bf16 %v296_v43, %v288_v42  ;;  %v289_v51 = vld [vmem:[#allocation2 + $0x490] sm:$0xff]  ;;  %v3886_v52 = vpack.c.bf16 %v298_v45, %v290_v44  ;;  %v304_v54 = vld [vmem:[#allocation2 + $0x508] sm:$0xff]  ;;  %v306_v56 = vld [vmem:[#allocation2 + $0x518] sm:$0xff]  ;;  %v3780_v58 = vpack.c.bf16 %v295_v50, %v287_v49 }
  0xa6   :  { %3875 = vmatprep.subr.bf16.mxu1 %v3874_v16  ;;  %v297_v53 = vld [vmem:[#allocation2 + $0x4d0] sm:$0xff]  ;;  %v312_v55 = vld [vmem:[#allocation2 + $0x548] sm:$0xff]  ;;  %v314_v57 = vld [vmem:[#allocation2 + $0x558] sm:$0xff] }
  0xa7   :  { %v3888_v59 = vpack.c.bf16 %v297_v53, %v289_v51  ;;  %v3782_v60 = vpack.c.bf16 %v312_v55, %v304_v54  ;;  %v303_v61 = vld [vmem:[#allocation2 + $0x500] sm:$0xff]  ;;  %v305_v63 = vld [vmem:[#allocation2 + $0x510] sm:$0xff]  ;;  %v3890_v0 = vpack.c.bf16 %v314_v57, %v306_v56  ;;  %v320_v2 = vld [vmem:[#allocation2 + $0x588] sm:$0xff] }
  0xa8   :  { %3769 = vmatpush1.bf16.msra.mxu0 %v3768_v22  ;;  %v311_v62 = vld [vmem:[#allocation2 + $0x540] sm:$0xff]  ;;  %v313_v1 = vld [vmem:[#allocation2 + $0x550] sm:$0xff]  ;;  %v328_v3 = vld [vmem:[#allocation2 + $0x5c8] sm:$0xff] }
  0xa9   :  { %3877 = vmatpush1.bf16.msra.mxu1 %v3876_v23  ;;  %3771 = vmatprep.subr.bf16.mxu0 %v3770_v24  ;;  %v322_v4 = vld [vmem:[#allocation2 + $0x598] sm:$0xff]  ;;  %v3784_v6 = vpack.c.bf16 %v311_v62, %v303_v61  ;;  %v319_v7 = vld [vmem:[#allocation2 + $0x580] sm:$0xff]  ;;  %v3892_v8 = vpack.c.bf16 %v313_v1, %v305_v63  ;;  %v3786_v9 = vpack.c.bf16 %v328_v3, %v320_v2  ;;  %v321_v11 = vld [vmem:[#allocation2 + $0x590] sm:$0xff] }
  0xaa   :  { %3879 = vmatprep.subr.bf16.mxu1 %v3878_v28  ;;  %v330_v5 = vld [vmem:[#allocation2 + $0x5d8] sm:$0xff]  ;;  %v327_v10 = vld [vmem:[#allocation2 + $0x5c0] sm:$0xff]  ;;  %v329_v12 = vld [vmem:[#allocation2 + $0x5d0] sm:$0xff] }
  0xab   :  { %v3894_v13 = vpack.c.bf16 %v330_v5, %v322_v4  ;;  %v336_v14 = vld [vmem:[#allocation2 + $0x608] sm:$0xff]  ;;  %v338_v17 = vld [vmem:[#allocation2 + $0x618] sm:$0xff]  ;;  %v3788_v19 = vpack.c.bf16 %v327_v10, %v319_v7  ;;  %v3896_v20 = vpack.c.bf16 %v329_v12, %v321_v11  ;;  %v335_v22 = vld [vmem:[#allocation2 + $0x600] sm:$0xff] }
  0xac   :  { %3773 = vmatpush1.bf16.msra.mxu0 %v3772_v34  ;;  %v344_v15 = vld [vmem:[#allocation2 + $0x648] sm:$0xff]  ;;  %v346_v18 = vld [vmem:[#allocation2 + $0x658] sm:$0xff]  ;;  %v343_v23 = vld [vmem:[#allocation2 + $0x640] sm:$0xff] }
  0xad   :  { %3881 = vmatpush1.bf16.msra.mxu1 %v3880_v35  ;;  %3775 = vmatprep.subr.bf16.mxu0 %v3774_v36  ;;  %v5680_v16 = vld [vmem:[%s6104_s0 + $0x8] sm:$0xff]  ;;  %v3790_v21 = vpack.c.bf16 %v344_v15, %v336_v14  ;;  %v337_v24 = vld [vmem:[#allocation2 + $0x610] sm:$0xff]  ;;  %v3898_v25 = vpack.c.bf16 %v346_v18, %v338_v17  ;;  %v354_v29 = vld [vmem:[#allocation2 + $0x698] sm:$0xff]  ;;  %v3792_v31 = vpack.c.bf16 %v343_v23, %v335_v22 }
  0xae   :  { %3883 = vmatprep.subr.bf16.mxu1 %v3882_v40  ;;  %685 = vmatprep.mubr.f32.mxu0 %v5680_v16  ;;  %v345_v26 = vld [vmem:[#allocation2 + $0x650] sm:$0xff]  ;;  %v352_v27 = vld [vmem:[#allocation2 + $0x688] sm:$0xff]  ;;  %v362_v30 = vld [vmem:[#allocation2 + $0x6d8] sm:$0xff] }
  0xaf   :  { %827 = vmatprep.mubr.f32.mxu1 %v5680_v16  ;;  %v360_v28 = vld [vmem:[#allocation2 + $0x6c8] sm:$0xff]  ;;  %v3900_v32 = vpack.c.bf16 %v345_v26, %v337_v24  ;;  %v351_v34 = vld [vmem:[#allocation2 + $0x680] sm:$0xff]  ;;  %v353_v36 = vld [vmem:[#allocation2 + $0x690] sm:$0xff]  ;;  %v3902_v37 = vpack.c.bf16 %v362_v30, %v354_v29 }
  0xb0   :  { %3777 = vmatpush1.bf16.msra.mxu0 %v3776_v46  ;;  %v3794_v33 = vpack.c.bf16 %v360_v28, %v352_v27  ;;  %v359_v35 = vld [vmem:[#allocation2 + $0x6c0] sm:$0xff]  ;;  %v361_v38 = vld [vmem:[#allocation2 + $0x6d0] sm:$0xff]  ;;  %v368_v39 = vld [vmem:[#allocation2 + $0x708] sm:$0xff] }
  0xb1   :  { %3885 = vmatpush1.bf16.msra.mxu1 %v3884_v47  ;;  %3779 = vmatprep.subr.bf16.mxu0 %v3778_v48  ;;  %v376_v40 = vld [vmem:[#allocation2 + $0x748] sm:$0xff]  ;;  %v370_v41 = vld [vmem:[#allocation2 + $0x718] sm:$0xff]  ;;  %v3796_v43 = vpack.c.bf16 %v359_v35, %v351_v34  ;;  %v3904_v44 = vpack.c.bf16 %v361_v38, %v353_v36  ;;  %v367_v46 = vld [vmem:[#allocation2 + $0x700] sm:$0xff] }
  0xb2   :  { %3887 = vmatprep.subr.bf16.mxu1 %v3886_v52  ;;  %v378_v42 = vld [vmem:[#allocation2 + $0x758] sm:$0xff]  ;;  %v3798_v45 = vpack.c.bf16 %v376_v40, %v368_v39  ;;  %v375_v47 = vld [vmem:[#allocation2 + $0x740] sm:$0xff]  ;;  %v369_v48 = vld [vmem:[#allocation2 + $0x710] sm:$0xff] }
  0xb3   :  { %v3906_v49 = vpack.c.bf16 %v378_v42, %v370_v41  ;;  %v377_v50 = vld [vmem:[#allocation2 + $0x750] sm:$0xff]  ;;  %v384_v51 = vld [vmem:[#allocation2 + $0x788] sm:$0xff]  ;;  %v386_v53 = vld [vmem:[#allocation2 + $0x798] sm:$0xff]  ;;  %v3800_v55 = vpack.c.bf16 %v375_v47, %v367_v46 }
  0xb4   :  { %3781 = vmatpush1.bf16.msra.mxu0 %v3780_v58  ;;  %v392_v52 = vld [vmem:[#allocation2 + $0x7c8] sm:$0xff]  ;;  %v394_v54 = vld [vmem:[#allocation2 + $0x7d8] sm:$0xff]  ;;  %v3908_v56 = vpack.c.bf16 %v377_v50, %v369_v48  ;;  %v383_v58 = vld [vmem:[#allocation2 + $0x780] sm:$0xff] }
  0xb5   :  { %3889 = vmatpush1.bf16.msra.mxu1 %v3888_v59  ;;  %3783 = vmatprep.subr.bf16.mxu0 %v3782_v60  ;;  %v3802_v57 = vpack.c.bf16 %v392_v52, %v384_v51  ;;  %v391_v59 = vld [vmem:[#allocation2 + $0x7c0] sm:$0xff]  ;;  %v385_v60 = vld [vmem:[#allocation2 + $0x790] sm:$0xff]  ;;  %v3910_v61 = vpack.c.bf16 %v394_v54, %v386_v53  ;;  %v400_v63 = vld [vmem:[#allocation2 + $0x808] sm:$0xff] }
  0xb6   :  { %3891 = vmatprep.subr.bf16.mxu1 %v3890_v0  ;;  %v393_v62 = vld [vmem:[#allocation2 + $0x7d0] sm:$0xff]  ;;  %v408_v0 = vld [vmem:[#allocation2 + $0x848] sm:$0xff]  ;;  %v402_v1 = vld [vmem:[#allocation2 + $0x818] sm:$0xff]  ;;  %v3804_v3 = vpack.c.bf16 %v391_v59, %v383_v58 }
  0xb7   :  { %v410_v2 = vld [vmem:[#allocation2 + $0x858] sm:$0xff]  ;;  %v3912_v4 = vpack.c.bf16 %v393_v62, %v385_v60  ;;  %v3806_v5 = vpack.c.bf16 %v408_v0, %v400_v63  ;;  %v407_v7 = vld [vmem:[#allocation2 + $0x840] sm:$0xff]  ;;  %v409_v10 = vld [vmem:[#allocation2 + $0x850] sm:$0xff] }
  0xb8   :  { %3785 = vmatpush1.bf16.msra.mxu0 %v3784_v6  ;;  %v399_v6 = vld [vmem:[#allocation2 + $0x800] sm:$0xff]  ;;  %v416_v11 = vld [vmem:[#allocation2 + $0x888] sm:$0xff]  ;;  %v426_v14 = vld [vmem:[#allocation2 + $0x8d8] sm:$0xff] }
  0xb9   :  { %3893 = vmatpush1.bf16.msra.mxu1 %v3892_v8  ;;  %3787 = vmatprep.subr.bf16.mxu0 %v3786_v9  ;;  %v401_v8 = vld [vmem:[#allocation2 + $0x810] sm:$0xff]  ;;  %v3914_v9 = vpack.c.bf16 %v410_v2, %v402_v1  ;;  %v424_v12 = vld [vmem:[#allocation2 + $0x8c8] sm:$0xff]  ;;  %v5687_v15 = vld [vmem:[%s6104_s0] sm:$0xff]  ;;  %v3808_v17 = vpack.c.bf16 %v407_v7, %v399_v6 }
  0xba   :  { %3895 = vmatprep.subr.bf16.mxu1 %v3894_v13  ;;  %v418_v13 = vld [vmem:[#allocation2 + $0x898] sm:$0xff]  ;;  %v3916_v18 = vpack.c.bf16 %v409_v10, %v401_v8  ;;  %v417_v22 = vld [vmem:[#allocation2 + $0x890] sm:$0xff]  ;;  %v440_v26 = vld [vmem:[#allocation2 + $0x948] sm:$0xff] }
  0xbb   :  { %v3918_v23 = vpack.c.bf16 %v426_v14, %v418_v13  ;;  %v425_v24 = vld [vmem:[#allocation2 + $0x8d0] sm:$0xff]  ;;  %v434_v27 = vld [vmem:[#allocation2 + $0x918] sm:$0xff]  ;;  %v456_v38 = vld [vmem:[#allocation2 + $0x9c8] sm:$0xff] }
  0xbc   :  { %3789 = vmatpush1.bf16.msra.mxu0 %v3788_v19  ;;  %v3810_v19 = vpack.c.bf16 %v424_v12, %v416_v11  ;;  %v442_v28 = vld [vmem:[#allocation2 + $0x958] sm:$0xff]  ;;  %v3920_v30 = vpack.c.bf16 %v425_v24, %v417_v22  ;;  %v433_v34 = vld [vmem:[#allocation2 + $0x910] sm:$0xff]  ;;  %v455_v46 = vld [vmem:[#allocation2 + $0x9c0] sm:$0xff] }
  0xbd   :  { %3897 = vmatpush1.bf16.msra.mxu1 %v3896_v20  ;;  %3791 = vmatprep.subr.bf16.mxu0 %v3790_v21  ;;  %v415_v20 = vld [vmem:[#allocation2 + $0x880] sm:$0xff]  ;;  %v3922_v35 = vpack.c.bf16 %v442_v28, %v434_v27  ;;  %v441_v36 = vld [vmem:[#allocation2 + $0x950] sm:$0xff]  ;;  %v450_v39 = vld [vmem:[#allocation2 + $0x998] sm:$0xff] }
  0xbe   :  { %3899 = vmatprep.subr.bf16.mxu1 %v3898_v25  ;;  %v423_v21 = vld [vmem:[#allocation2 + $0x8c0] sm:$0xff]  ;;  %v432_v25 = vld [vmem:[#allocation2 + $0x908] sm:$0xff]  ;;  %v458_v40 = vld [vmem:[#allocation2 + $0x9d8] sm:$0xff] }
  0xbf   :  { %v3812_v29 = vpack.c.bf16 %v423_v21, %v415_v20  ;;  %v5694_v42 = vld [vmem:[%s6104_s0 + $0x18] sm:$0xff]  ;;  %v449_v47 = vld [vmem:[#allocation2 + $0x990] sm:$0xff]  ;;  %v3926_v48 = vpack.c.bf16 %v458_v40, %v450_v39  ;;  %v464_v50 = vld [vmem:[#allocation2 + $0xa08] sm:$0xff] }
  0xc0   :  { %3793 = vmatpush1.bf16.msra.mxu0 %v3792_v31  ;;  %v3814_v31 = vpack.c.bf16 %v440_v26, %v432_v25  ;;  %v472_v51 = vld [vmem:[#allocation2 + $0xa48] sm:$0xff]  ;;  %v466_v52 = vld [vmem:[#allocation2 + $0xa18] sm:$0xff]  ;;  %v471_v58 = vld [vmem:[#allocation2 + $0xa40] sm:$0xff] }
  0xc1   :  { %3901 = vmatpush1.bf16.msra.mxu1 %v3900_v32  ;;  %3795 = vmatprep.subr.bf16.mxu0 %v3794_v33  ;;  %v431_v32 = vld [vmem:[#allocation2 + $0x900] sm:$0xff]  ;;  %v474_v53 = vld [vmem:[#allocation2 + $0xa58] sm:$0xff]  ;;  %v465_v59 = vld [vmem:[#allocation2 + $0xa10] sm:$0xff] }
  0xc2   :  { %3903 = vmatprep.subr.bf16.mxu1 %v3902_v37  ;;  %v439_v33 = vld [vmem:[#allocation2 + $0x940] sm:$0xff]  ;;  %v448_v37 = vld [vmem:[#allocation2 + $0x988] sm:$0xff]  ;;  %v3930_v60 = vpack.c.bf16 %v474_v53, %v466_v52  ;;  %v482_v0 = vld [vmem:[#allocation2 + $0xa98] sm:$0xff] }
  0xc3   :  { %v3816_v41 = vpack.c.bf16 %v439_v33, %v431_v32  ;;  %v480_v62 = vld [vmem:[#allocation2 + $0xa88] sm:$0xff]  ;;  %v490_v1 = vld [vmem:[#allocation2 + $0xad8] sm:$0xff]  ;;  %v487_v6 = vld [vmem:[#allocation2 + $0xac0] sm:$0xff] }
  0xc4   :  { %3797 = vmatpush1.bf16.msra.mxu0 %v3796_v43  ;;  %v3924_v43 = vpack.c.bf16 %v441_v36, %v433_v34  ;;  %v488_v63 = vld [vmem:[#allocation2 + $0xac8] sm:$0xff]  ;;  %v481_v7 = vld [vmem:[#allocation2 + $0xa90] sm:$0xff]  ;;  %v3934_v8 = vpack.c.bf16 %v490_v1, %v482_v0  ;;  %v498_v12 = vld [vmem:[#allocation2 + $0xb18] sm:$0xff] }
  0xc5   :  { %3905 = vmatpush1.bf16.msra.mxu1 %v3904_v44  ;;  %3799 = vmatprep.subr.bf16.mxu0 %v3798_v45  ;;  %v3818_v44 = vpack.c.bf16 %v456_v38, %v448_v37  ;;  %v447_v45 = vld [vmem:[#allocation2 + $0x980] sm:$0xff]  ;;  %v496_v10 = vld [vmem:[#allocation2 + $0xb08] sm:$0xff]  ;;  %v506_v13 = vld [vmem:[#allocation2 + $0xb58] sm:$0xff] }
  0xc6   :  { %3907 = vmatprep.subr.bf16.mxu1 %v3906_v49  ;;  %v457_v49 = vld [vmem:[#allocation2 + $0x9d0] sm:$0xff]  ;;  %v3820_v54 = vpack.c.bf16 %v455_v46, %v447_v45  ;;  %v504_v11 = vld [vmem:[#allocation2 + $0xb48] sm:$0xff]  ;;  %v503_v20 = vld [vmem:[#allocation2 + $0xb40] sm:$0xff]  ;;  %v3938_v22 = vpack.c.bf16 %v506_v13, %v498_v12 }
  0xc7   :  { %v497_v21 = vld [vmem:[#allocation2 + $0xb10] sm:$0xff]  ;;  %v512_v24 = vld [vmem:[#allocation2 + $0xb88] sm:$0xff]  ;;  %v514_v26 = vld [vmem:[#allocation2 + $0xb98] sm:$0xff] }
  0xc8   :  { %3801 = vmatpush1.bf16.msra.mxu0 %v3800_v55  ;;  %v3928_v55 = vpack.c.bf16 %v457_v49, %v449_v47  ;;  %v520_v25 = vld [vmem:[#allocation2 + $0xbc8] sm:$0xff]  ;;  %v522_v27 = vld [vmem:[#allocation2 + $0xbd8] sm:$0xff]  ;;  %v519_v32 = vld [vmem:[#allocation2 + $0xbc0] sm:$0xff] }
  0xc9   :  { %3909 = vmatpush1.bf16.msra.mxu1 %v3908_v56  ;;  %3803 = vmatprep.subr.bf16.mxu0 %v3802_v57  ;;  %v3822_v56 = vpack.c.bf16 %v472_v51, %v464_v50  ;;  %v463_v57 = vld [vmem:[#allocation2 + $0xa00] sm:$0xff]  ;;  %v513_v33 = vld [vmem:[#allocation2 + $0xb90] sm:$0xff]  ;;  %v3942_v34 = vpack.c.bf16 %v522_v27, %v514_v26  ;;  %v528_v36 = vld [vmem:[#allocation2 + $0xc08] sm:$0xff] }
  0xca   :  { %3911 = vmatprep.subr.bf16.mxu1 %v3910_v61  ;;  %v473_v61 = vld [vmem:[#allocation2 + $0xa50] sm:$0xff]  ;;  %v3824_v2 = vpack.c.bf16 %v471_v58, %v463_v57  ;;  %v536_v37 = vld [vmem:[#allocation2 + $0xc48] sm:$0xff]  ;;  %v530_v38 = vld [vmem:[#allocation2 + $0xc18] sm:$0xff] }
  0xcb   :  { %v538_v39 = vld [vmem:[#allocation2 + $0xc58] sm:$0xff]  ;;  %v535_v45 = vld [vmem:[#allocation2 + $0xc40] sm:$0xff]  ;;  %v529_v46 = vld [vmem:[#allocation2 + $0xc10] sm:$0xff] }
  0xcc   :  { %3805 = vmatpush1.bf16.msra.mxu0 %v3804_v3  ;;  %v3932_v3 = vpack.c.bf16 %v473_v61, %v465_v59  ;;  %v3946_v47 = vpack.c.bf16 %v538_v39, %v530_v38  ;;  %v544_v49 = vld [vmem:[#allocation2 + $0xc88] sm:$0xff]  ;;  %v546_v51 = vld [vmem:[#allocation2 + $0xc98] sm:$0xff]  ;;  %v551_v57 = vld [vmem:[#allocation2 + $0xcc0] sm:$0xff] }
  0xcd   :  { %3913 = vmatpush1.bf16.msra.mxu1 %v3912_v4  ;;  %3807 = vmatprep.subr.bf16.mxu0 %v3806_v5  ;;  %v3826_v4 = vpack.c.bf16 %v488_v63, %v480_v62  ;;  %v479_v5 = vld [vmem:[#allocation2 + $0xa80] sm:$0xff]  ;;  %v552_v50 = vld [vmem:[#allocation2 + $0xcc8] sm:$0xff]  ;;  %v554_v52 = vld [vmem:[#allocation2 + $0xcd8] sm:$0xff] }
  0xce   :  { %3915 = vmatprep.subr.bf16.mxu1 %v3914_v9  ;;  %v489_v9 = vld [vmem:[#allocation2 + $0xad0] sm:$0xff]  ;;  %v3828_v14 = vpack.c.bf16 %v487_v6, %v479_v5  ;;  %v3950_v59 = vpack.c.bf16 %v554_v52, %v546_v51  ;;  %v560_v61 = vld [vmem:[#allocation2 + $0xd08] sm:$0xff]  ;;  %v562_v63 = vld [vmem:[#allocation2 + $0xd18] sm:$0xff] }
  0xcf   :  { %686 = vmatmul.mubr.f32.vlgmr.msra.gmra.mrb[0].mxu0 %v5687_v15  ;;  %v545_v58 = vld [vmem:[#allocation2 + $0xc90] sm:$0xff]  ;;  %v568_v62 = vld [vmem:[#allocation2 + $0xd48] sm:$0xff]  ;;  %v570_v0 = vld [vmem:[#allocation2 + $0xd58] sm:$0xff] }
  0xd0   :  { %3809 = vmatpush1.bf16.msra.mxu0 %v3808_v17  ;;  %828 = vmatmul.mubr.f32.vlgmr.msra.gmra.mrb[0].mxu1 %v5687_v15  ;;  %v3936_v17 = vpack.c.bf16 %v489_v9, %v481_v7  ;;  %v567_v5 = vld [vmem:[#allocation2 + $0xd40] sm:$0xff]  ;;  %v561_v6 = vld [vmem:[#allocation2 + $0xd10] sm:$0xff]  ;;  %v3954_v7 = vpack.c.bf16 %v570_v0, %v562_v63  ;;  %v148_v9 = vld [vmem:[#allocation2 + $0x28] sm:$0xff] }
  0xd1   :  { %3917 = vmatpush1.bf16.msra.mxu1 %v3916_v18  ;;  %3811 = vmatprep.subr.bf16.mxu0 %v3810_v19  ;;  %v3830_v18 = vpack.c.bf16 %v504_v11, %v496_v10  ;;  %v495_v19 = vld [vmem:[#allocation2 + $0xb00] sm:$0xff]  ;;  %v156_v10 = vld [vmem:[#allocation2 + $0x68] sm:$0xff]  ;;  %v150_v11 = vld [vmem:[#allocation2 + $0x38] sm:$0xff] }
  0xd2   :  { %3919 = vmatprep.subr.bf16.mxu1 %v3918_v23  ;;  %3714 = vmatprep.mubr.msk.f32.mxu0 %vm617_vm0, %v5694_v42  ;;  %v505_v23 = vld [vmem:[#allocation2 + $0xb50] sm:$0xff]  ;;  %v3832_v28 = vpack.c.bf16 %v503_v20, %v495_v19  ;;  %v158_v12 = vld [vmem:[#allocation2 + $0x78] sm:$0xff]  ;;  %v155_v19 = vld [vmem:[#allocation2 + $0x60] sm:$0xff] }
  0xd3   :  { %3715 = vmatprep.mubr.msk.f32.mxu1 %vm617_vm0, %v5694_v42  ;;  %v149_v20 = vld [vmem:[#allocation2 + $0x30] sm:$0xff]  ;;  %v174_v26 = vld [vmem:[#allocation2 + $0xf8] sm:$0xff] }
  0xd4   :  { %3813 = vmatpush1.bf16.msra.mxu0 %v3812_v29  ;;  %v3940_v29 = vpack.c.bf16 %v505_v23, %v497_v21  ;;  %v4066_v21 = vpack.c.bf16 %v158_v12, %v150_v11  ;;  %v164_v23 = vld [vmem:[#allocation2 + $0xa8] sm:$0xff]  ;;  %v5703_v27 = vld [vmem:[%s6104_s0 + $0x10] sm:$0xff]  ;;  %v182_v38 = vld [vmem:[#allocation2 + $0x138] sm:$0xff]  ;;  %s136_s0 = sld [smem:[#allocation14]] }
  0xd5   :  { %3921 = vmatpush1.bf16.msra.mxu1 %v3920_v30  ;;  %3815 = vmatprep.subr.bf16.mxu0 %v3814_v31  ;;  %v3834_v30 = vpack.c.bf16 %v520_v25, %v512_v24  ;;  %v511_v31 = vld [vmem:[#allocation2 + $0xb80] sm:$0xff]  ;;  %v172_v24 = vld [vmem:[#allocation2 + $0xe8] sm:$0xff]  ;;  %v166_v25 = vld [vmem:[#allocation2 + $0xb8] sm:$0xff] }
  0xd6   :  { %3923 = vmatprep.subr.bf16.mxu1 %v3922_v35  ;;  %v521_v35 = vld [vmem:[#allocation2 + $0xbd0] sm:$0xff]  ;;  %v3836_v40 = vpack.c.bf16 %v519_v32, %v511_v31  ;;  %v163_v31 = vld [vmem:[#allocation2 + $0xa0] sm:$0xff]  ;;  %v190_v39 = vld [vmem:[#allocation2 + $0x178] sm:$0xff] }
  0xd7   :  { %v171_v32 = vld [vmem:[#allocation2 + $0xe0] sm:$0xff]  ;;  %v198_v51 = vld [vmem:[#allocation2 + $0x1b8] sm:$0xff] }
  0xd8   :  { %3817 = vmatpush1.bf16.msra.mxu0 %v3816_v41  ;;  %v3944_v41 = vpack.c.bf16 %v521_v35, %v513_v33  ;;  %v165_v33 = vld [vmem:[#allocation2 + $0xb0] sm:$0xff]  ;;  %v206_v52 = vld [vmem:[#allocation2 + $0x1f8] sm:$0xff] }
  0xd9   :  { %3925 = vmatpush1.bf16.msra.mxu1 %v3924_v43  ;;  %3819 = vmatprep.subr.bf16.mxu0 %v3818_v44  ;;  %v3838_v43 = vpack.c.bf16 %v536_v37, %v528_v36  ;;  %v527_v44 = vld [vmem:[#allocation2 + $0xc00] sm:$0xff]  ;;  %v173_v35 = vld [vmem:[#allocation2 + $0xf0] sm:$0xff]  ;;  %v180_v36 = vld [vmem:[#allocation2 + $0x128] sm:$0xff] }
  0xda   :  { %3927 = vmatprep.subr.bf16.mxu1 %v3926_v48  ;;  %v537_v48 = vld [vmem:[#allocation2 + $0xc50] sm:$0xff]  ;;  %v3840_v53 = vpack.c.bf16 %v535_v45, %v527_v44  ;;  %v188_v37 = vld [vmem:[#allocation2 + $0x168] sm:$0xff]  ;;  %v179_v44 = vld [vmem:[#allocation2 + $0x120] sm:$0xff] }
  0xdb   :  { %v187_v45 = vld [vmem:[#allocation2 + $0x160] sm:$0xff]  ;;  %v214_v63 = vld [vmem:[#allocation2 + $0x238] sm:$0xff] }
  0xdc   :  { %3821 = vmatpush1.bf16.msra.mxu0 %v3820_v54  ;;  %v3948_v54 = vpack.c.bf16 %v537_v48, %v529_v46  ;;  %v181_v46 = vld [vmem:[#allocation2 + $0x130] sm:$0xff]  ;;  %v222_v0 = vld [vmem:[#allocation2 + $0x278] sm:$0xff] }
  0xdd   :  { %3929 = vmatpush1.bf16.msra.mxu1 %v3928_v55  ;;  %3823 = vmatprep.subr.bf16.mxu0 %v3822_v56  ;;  %v3842_v55 = vpack.c.bf16 %v552_v50, %v544_v49  ;;  %v543_v56 = vld [vmem:[#allocation2 + $0xc80] sm:$0xff]  ;;  %v189_v48 = vld [vmem:[#allocation2 + $0x170] sm:$0xff]  ;;  %v196_v49 = vld [vmem:[#allocation2 + $0x1a8] sm:$0xff] }
  0xde   :  { %3931 = vmatprep.subr.bf16.mxu1 %v3930_v60  ;;  %v553_v60 = vld [vmem:[#allocation2 + $0xcd0] sm:$0xff]  ;;  %v3844_v1 = vpack.c.bf16 %v551_v57, %v543_v56  ;;  %v204_v50 = vld [vmem:[#allocation2 + $0x1e8] sm:$0xff]  ;;  %v195_v56 = vld [vmem:[#allocation2 + $0x1a0] sm:$0xff] }
  0xdf   :  { %v203_v57 = vld [vmem:[#allocation2 + $0x1e0] sm:$0xff]  ;;  %v238_v11 = vld [vmem:[#allocation2 + $0x2f8] sm:$0xff] }
  0xe0   :  { %3825 = vmatpush1.bf16.msra.mxu0 %v3824_v2  ;;  %v3952_v2 = vpack.c.bf16 %v553_v60, %v545_v58  ;;  %v197_v58 = vld [vmem:[#allocation2 + $0x1b0] sm:$0xff] }
  0xe1   :  { %3933 = vmatpush1.bf16.msra.mxu1 %v3932_v3  ;;  %3827 = vmatprep.subr.bf16.mxu0 %v3826_v4  ;;  %v3846_v3 = vpack.c.bf16 %v568_v62, %v560_v61  ;;  %v559_v4 = vld [vmem:[#allocation2 + $0xd00] sm:$0xff]  ;;  %v205_v60 = vld [vmem:[#allocation2 + $0x1f0] sm:$0xff]  ;;  %v212_v61 = vld [vmem:[#allocation2 + $0x228] sm:$0xff] }
  0xe2   :  { %3935 = vmatprep.subr.bf16.mxu1 %v3934_v8  ;;  %v569_v8 = vld [vmem:[#allocation2 + $0xd50] sm:$0xff]  ;;  %v3848_v13 = vpack.c.bf16 %v567_v5, %v559_v4  ;;  %v220_v62 = vld [vmem:[#allocation2 + $0x268] sm:$0xff]  ;;  %v219_v4 = vld [vmem:[#allocation2 + $0x260] sm:$0xff] }
  0xe3   :  { %v213_v5 = vld [vmem:[#allocation2 + $0x230] sm:$0xff] }
  0xe4   :  { %3829 = vmatpush1.bf16.msra.mxu0 %v3828_v14  ;;  %v3956_v14 = vpack.c.bf16 %v569_v8, %v561_v6  ;;  %v4082_v6 = vpack.c.bf16 %v222_v0, %v214_v63  ;;  %v228_v8 = vld [vmem:[#allocation2 + $0x2a8] sm:$0xff]  ;;  %v302_v63 = vld [vmem:[#allocation2 + $0x4f8] sm:$0xff] }
  0xe5   :  { %3937 = vmatpush1.bf16.msra.mxu1 %v3936_v17  ;;  %3831 = vmatprep.subr.bf16.mxu0 %v3830_v18  ;;  %v3958_v17 = vpack.c.bf16 %v156_v10, %v148_v9  ;;  %v147_v18 = vld [vmem:[#allocation2 + $0x20] sm:$0xff]  ;;  %v236_v9 = vld [vmem:[#allocation2 + $0x2e8] sm:$0xff]  ;;  %v230_v10 = vld [vmem:[#allocation2 + $0x2b8] sm:$0xff] }
  0xe6   :  { %3939 = vmatprep.subr.bf16.mxu1 %v3938_v22  ;;  %v157_v22 = vld [vmem:[#allocation2 + $0x70] sm:$0xff] }
  0xe8   :  { %3833 = vmatpush1.bf16.msra.mxu0 %v3832_v28  ;;  %v3960_v28 = vpack.c.bf16 %v155_v19, %v147_v18  ;;  %v235_v18 = vld [vmem:[#allocation2 + $0x2e0] sm:$0xff]  ;;  %v229_v19 = vld [vmem:[#allocation2 + $0x2b0] sm:$0xff] }
  0xe9   :  { %3941 = vmatpush1.bf16.msra.mxu1 %v3940_v29  ;;  %3835 = vmatprep.subr.bf16.mxu0 %v3834_v30  ;;  %v4068_v29 = vpack.c.bf16 %v157_v22, %v149_v20  ;;  %v3962_v30 = vpack.c.bf16 %v172_v24, %v164_v23  ;;  %v4086_v20 = vpack.c.bf16 %v238_v11, %v230_v10  ;;  %v244_v22 = vld [vmem:[#allocation2 + $0x328] sm:$0xff]  ;;  %v246_v24 = vld [vmem:[#allocation2 + $0x338] sm:$0xff] }
  0xea   :  { %3943 = vmatprep.subr.bf16.mxu1 %v3942_v34  ;;  %v4070_v34 = vpack.c.bf16 %v174_v26, %v166_v25  ;;  %v252_v23 = vld [vmem:[#allocation2 + $0x368] sm:$0xff]  ;;  %v254_v25 = vld [vmem:[#allocation2 + $0x378] sm:$0xff] }
  0xeb   :  { %v318_v10 = vld [vmem:[#allocation2 + $0x578] sm:$0xff] }
  0xec   :  { %3837 = vmatpush1.bf16.msra.mxu0 %v3836_v40  ;;  %v3964_v40 = vpack.c.bf16 %v171_v32, %v163_v31  ;;  %v251_v31 = vld [vmem:[#allocation2 + $0x360] sm:$0xff]  ;;  %v245_v32 = vld [vmem:[#allocation2 + $0x330] sm:$0xff] }
  0xed   :  { %3945 = vmatpush1.bf16.msra.mxu1 %v3944_v41  ;;  %3839 = vmatprep.subr.bf16.mxu0 %v3838_v43  ;;  %v4072_v41 = vpack.c.bf16 %v173_v35, %v165_v33  ;;  %v3966_v43 = vpack.c.bf16 %v188_v37, %v180_v36  ;;  %v4090_v33 = vpack.c.bf16 %v254_v25, %v246_v24  ;;  %v260_v35 = vld [vmem:[#allocation2 + $0x3a8] sm:$0xff]  ;;  %v262_v37 = vld [vmem:[#allocation2 + $0x3b8] sm:$0xff] }
  0xee   :  { %3947 = vmatprep.subr.bf16.mxu1 %v3946_v47  ;;  %v4074_v47 = vpack.c.bf16 %v190_v39, %v182_v38  ;;  %v268_v36 = vld [vmem:[#allocation2 + $0x3e8] sm:$0xff]  ;;  %v270_v38 = vld [vmem:[#allocation2 + $0x3f8] sm:$0xff] }
  0xef   :  { %v334_v24 = vld [vmem:[#allocation2 + $0x5f8] sm:$0xff] }
  0xf0   :  { %3841 = vmatpush1.bf16.msra.mxu0 %v3840_v53  ;;  %v3968_v53 = vpack.c.bf16 %v187_v45, %v179_v44  ;;  %v267_v44 = vld [vmem:[#allocation2 + $0x3e0] sm:$0xff]  ;;  %v261_v45 = vld [vmem:[#allocation2 + $0x3b0] sm:$0xff] }
  0xf1   :  { %3949 = vmatpush1.bf16.msra.mxu1 %v3948_v54  ;;  %3843 = vmatprep.subr.bf16.mxu0 %v3842_v55  ;;  %v4076_v54 = vpack.c.bf16 %v189_v48, %v181_v46  ;;  %v3970_v55 = vpack.c.bf16 %v204_v50, %v196_v49  ;;  %v4094_v46 = vpack.c.bf16 %v270_v38, %v262_v37  ;;  %v276_v48 = vld [vmem:[#allocation2 + $0x428] sm:$0xff]  ;;  %v278_v50 = vld [vmem:[#allocation2 + $0x438] sm:$0xff] }
  0xf2   :  { %3951 = vmatprep.subr.bf16.mxu1 %v3950_v59  ;;  %v4078_v59 = vpack.c.bf16 %v206_v52, %v198_v51  ;;  %v284_v49 = vld [vmem:[#allocation2 + $0x468] sm:$0xff]  ;;  %v286_v51 = vld [vmem:[#allocation2 + $0x478] sm:$0xff] }
  0xf3   :  { %v350_v37 = vld [vmem:[#allocation2 + $0x678] sm:$0xff] }
  0xf4   :  { %3845 = vmatpush1.bf16.msra.mxu0 %v3844_v1  ;;  %v3972_v1 = vpack.c.bf16 %v203_v57, %v195_v56  ;;  %v283_v56 = vld [vmem:[#allocation2 + $0x460] sm:$0xff]  ;;  %v277_v57 = vld [vmem:[#allocation2 + $0x430] sm:$0xff] }
  0xf5   :  { %3953 = vmatpush1.bf16.msra.mxu1 %v3952_v2  ;;  %3847 = vmatprep.subr.bf16.mxu0 %v3846_v3  ;;  %v3974_v2 = vpack.c.bf16 %v220_v62, %v212_v61  ;;  %v211_v3 = vld [vmem:[#allocation2 + $0x220] sm:$0xff]  ;;  %v300_v61 = vld [vmem:[#allocation2 + $0x4e8] sm:$0xff]  ;;  %v294_v62 = vld [vmem:[#allocation2 + $0x4b8] sm:$0xff] }
  0xf6   :  { %3955 = vmatprep.subr.bf16.mxu1 %v3954_v7  ;;  %v221_v7 = vld [vmem:[#allocation2 + $0x270] sm:$0xff]  ;;  %v3976_v12 = vpack.c.bf16 %v219_v4, %v211_v3  ;;  %v299_v3 = vld [vmem:[#allocation2 + $0x4e0] sm:$0xff] }
  0xf7   :  { %v293_v4 = vld [vmem:[#allocation2 + $0x4b0] sm:$0xff] }
  0xf8   :  { %3849 = vmatpush1.bf16.msra.mxu0 %v3848_v13  ;;  %v4084_v13 = vpack.c.bf16 %v221_v7, %v213_v5  ;;  %v4102_v5 = vpack.c.bf16 %v302_v63, %v294_v62  ;;  %v308_v7 = vld [vmem:[#allocation2 + $0x528] sm:$0xff]  ;;  %v382_v62 = vld [vmem:[#allocation2 + $0x778] sm:$0xff] }
  0xf9   :  { %3957 = vmatpush1.bf16.msra.mxu1 %v3956_v14  ;;  %3959 = vmatprep.subr.bf16.mxu0 %v3958_v17  ;;  %v3978_v14 = vpack.c.bf16 %v236_v9, %v228_v8  ;;  %v227_v17 = vld [vmem:[#allocation2 + $0x2a0] sm:$0xff]  ;;  %v316_v8 = vld [vmem:[#allocation2 + $0x568] sm:$0xff]  ;;  %v310_v9 = vld [vmem:[#allocation2 + $0x538] sm:$0xff] }
  0xfa   :  { %4067 = vmatprep.subr.bf16.mxu1 %v4066_v21  ;;  %v237_v21 = vld [vmem:[#allocation2 + $0x2f0] sm:$0xff]  ;;  %v3980_v26 = vpack.c.bf16 %v235_v18, %v227_v17  ;;  %v315_v17 = vld [vmem:[#allocation2 + $0x560] sm:$0xff] }
  0xfb   :  { %757 = vmatmul.mubr.f32.vlgmr.msra.gmra.mrb[0].mxu0 %v5703_v27  ;;  %v309_v18 = vld [vmem:[#allocation2 + $0x530] sm:$0xff] }
  0xfc   :  { %899 = vmatmul.mubr.f32.vlgmr.msra.gmra.mrb[0].mxu1 %v5703_v27  ;;  %3961 = vmatpush1.bf16.msra.mxu0 %v3960_v28  ;;  %v4088_v28 = vpack.c.bf16 %v237_v21, %v229_v19  ;;  %v4106_v19 = vpack.c.bf16 %v318_v10, %v310_v9  ;;  %v324_v21 = vld [vmem:[#allocation2 + $0x5a8] sm:$0xff]  ;;  %v398_v9 = vld [vmem:[#allocation2 + $0x7f8] sm:$0xff] }
  0xfd   :  { %4069 = vmatpush1.bf16.msra.mxu1 %v4068_v29  ;;  %3963 = vmatprep.subr.bf16.mxu0 %v3962_v30  ;;  %v3982_v29 = vpack.c.bf16 %v252_v23, %v244_v22  ;;  %v243_v30 = vld [vmem:[#allocation2 + $0x320] sm:$0xff]  ;;  %v332_v22 = vld [vmem:[#allocation2 + $0x5e8] sm:$0xff]  ;;  %v326_v23 = vld [vmem:[#allocation2 + $0x5b8] sm:$0xff] }
  0xfe   :  { %4071 = vmatprep.subr.bf16.mxu1 %v4070_v34  ;;  %969 = vmatprep.mubr.f32.mxu0 %v5680_v16  ;;  %v253_v34 = vld [vmem:[#allocation2 + $0x370] sm:$0xff]  ;;  %v3984_v39 = vpack.c.bf16 %v251_v31, %v243_v30  ;;  %v331_v30 = vld [vmem:[#allocation2 + $0x5e0] sm:$0xff] }
  0xff   :  { %1111 = vmatprep.mubr.f32.mxu1 %v5680_v16  ;;  %v4080_v16 = vpack.c.bf16 %v205_v60, %v197_v58  ;;  %v4098_v58 = vpack.c.bf16 %v286_v51, %v278_v50  ;;  %v292_v60 = vld [vmem:[#allocation2 + $0x4a8] sm:$0xff]  ;;  %v325_v31 = vld [vmem:[#allocation2 + $0x5b0] sm:$0xff]  ;;  %v366_v50 = vld [vmem:[#allocation2 + $0x6f8] sm:$0xff] }
 0x100   :  { %3965 = vmatpush1.bf16.msra.mxu0 %v3964_v40  ;;  %v4092_v40 = vpack.c.bf16 %v253_v34, %v245_v32  ;;  %v4110_v32 = vpack.c.bf16 %v334_v24, %v326_v23  ;;  %v340_v34 = vld [vmem:[#allocation2 + $0x628] sm:$0xff]  ;;  %v414_v23 = vld [vmem:[#allocation2 + $0x878] sm:$0xff] }
 0x101   :  { %4073 = vmatpush1.bf16.msra.mxu1 %v4072_v41  ;;  %3967 = vmatprep.subr.bf16.mxu0 %v3966_v43  ;;  %v3986_v41 = vpack.c.bf16 %v268_v36, %v260_v35  ;;  %v259_v43 = vld [vmem:[#allocation2 + $0x3a0] sm:$0xff]  ;;  %v348_v35 = vld [vmem:[#allocation2 + $0x668] sm:$0xff]  ;;  %v342_v36 = vld [vmem:[#allocation2 + $0x638] sm:$0xff] }
 0x102   :  { %4075 = vmatprep.subr.bf16.mxu1 %v4074_v47  ;;  %v269_v47 = vld [vmem:[#allocation2 + $0x3f0] sm:$0xff]  ;;  %v3988_v52 = vpack.c.bf16 %v267_v44, %v259_v43  ;;  %v347_v43 = vld [vmem:[#allocation2 + $0x660] sm:$0xff] }
 0x103   :  { %v341_v44 = vld [vmem:[#allocation2 + $0x630] sm:$0xff] }
 0x104   :  { %3969 = vmatpush1.bf16.msra.mxu0 %v3968_v53  ;;  %v4096_v53 = vpack.c.bf16 %v269_v47, %v261_v45  ;;  %v4114_v45 = vpack.c.bf16 %v350_v37, %v342_v36  ;;  %v356_v47 = vld [vmem:[#allocation2 + $0x6a8] sm:$0xff]  ;;  %v430_v36 = vld [vmem:[#allocation2 + $0x8f8] sm:$0xff] }
 0x105   :  { %4077 = vmatpush1.bf16.msra.mxu1 %v4076_v54  ;;  %3971 = vmatprep.subr.bf16.mxu0 %v3970_v55  ;;  %v3990_v54 = vpack.c.bf16 %v284_v49, %v276_v48  ;;  %v275_v55 = vld [vmem:[#allocation2 + $0x420] sm:$0xff]  ;;  %v364_v48 = vld [vmem:[#allocation2 + $0x6e8] sm:$0xff]  ;;  %v358_v49 = vld [vmem:[#allocation2 + $0x6b8] sm:$0xff] }
 0x106   :  { %4079 = vmatprep.subr.bf16.mxu1 %v4078_v59  ;;  %v285_v59 = vld [vmem:[#allocation2 + $0x470] sm:$0xff]  ;;  %v3992_v0 = vpack.c.bf16 %v283_v56, %v275_v55  ;;  %v363_v55 = vld [vmem:[#allocation2 + $0x6e0] sm:$0xff] }
 0x107   :  { %v357_v56 = vld [vmem:[#allocation2 + $0x6b0] sm:$0xff] }
 0x108   :  { %3973 = vmatpush1.bf16.msra.mxu0 %v3972_v1  ;;  %v4100_v1 = vpack.c.bf16 %v285_v59, %v277_v57  ;;  %v4118_v57 = vpack.c.bf16 %v366_v50, %v358_v49  ;;  %v372_v59 = vld [vmem:[#allocation2 + $0x728] sm:$0xff]  ;;  %v446_v49 = vld [vmem:[#allocation2 + $0x978] sm:$0xff] }
 0x109   :  { %4081 = vmatpush1.bf16.msra.mxu1 %v4080_v16  ;;  %3975 = vmatprep.subr.bf16.mxu0 %v3974_v2  ;;  %v3994_v16 = vpack.c.bf16 %v300_v61, %v292_v60  ;;  %v291_v2 = vld [vmem:[#allocation2 + $0x4a0] sm:$0xff]  ;;  %v380_v60 = vld [vmem:[#allocation2 + $0x768] sm:$0xff]  ;;  %v374_v61 = vld [vmem:[#allocation2 + $0x738] sm:$0xff] }
 0x10a   :  { %4083 = vmatprep.subr.bf16.mxu1 %v4082_v6  ;;  %v301_v6 = vld [vmem:[#allocation2 + $0x4f0] sm:$0xff]  ;;  %v3996_v11 = vpack.c.bf16 %v299_v3, %v291_v2  ;;  %v379_v2 = vld [vmem:[#allocation2 + $0x760] sm:$0xff] }
 0x10b   :  { %v373_v3 = vld [vmem:[#allocation2 + $0x730] sm:$0xff] }
 0x10c   :  { %3977 = vmatpush1.bf16.msra.mxu0 %v3976_v12  ;;  %v4104_v12 = vpack.c.bf16 %v301_v6, %v293_v4  ;;  %v4122_v4 = vpack.c.bf16 %v382_v62, %v374_v61  ;;  %v388_v6 = vld [vmem:[#allocation2 + $0x7a8] sm:$0xff]  ;;  %v462_v61 = vld [vmem:[#allocation2 + $0x9f8] sm:$0xff] }
 0x10d   :  { %4085 = vmatpush1.bf16.msra.mxu1 %v4084_v13  ;;  %3979 = vmatprep.subr.bf16.mxu0 %v3978_v14  ;;  %v3998_v13 = vpack.c.bf16 %v316_v8, %v308_v7  ;;  %v307_v14 = vld [vmem:[#allocation2 + $0x520] sm:$0xff]  ;;  %v396_v7 = vld [vmem:[#allocation2 + $0x7e8] sm:$0xff]  ;;  %v390_v8 = vld [vmem:[#allocation2 + $0x7b8] sm:$0xff] }
 0x10e   :  { %4087 = vmatprep.subr.bf16.mxu1 %v4086_v20  ;;  %v317_v20 = vld [vmem:[#allocation2 + $0x570] sm:$0xff]  ;;  %v4000_v25 = vpack.c.bf16 %v315_v17, %v307_v14  ;;  %v395_v14 = vld [vmem:[#allocation2 + $0x7e0] sm:$0xff] }
 0x10f   :  { %v389_v17 = vld [vmem:[#allocation2 + $0x7b0] sm:$0xff] }
 0x110   :  { %3981 = vmatpush1.bf16.msra.mxu0 %v3980_v26  ;;  %v4108_v26 = vpack.c.bf16 %v317_v20, %v309_v18  ;;  %v4126_v18 = vpack.c.bf16 %v398_v9, %v390_v8  ;;  %v404_v20 = vld [vmem:[#allocation2 + $0x828] sm:$0xff] }
 0x111   :  { %4089 = vmatpush1.bf16.msra.mxu1 %v4088_v28  ;;  %3983 = vmatprep.subr.bf16.mxu0 %v3982_v29  ;;  %v4002_v28 = vpack.c.bf16 %v332_v22, %v324_v21  ;;  %v323_v29 = vld [vmem:[#allocation2 + $0x5a0] sm:$0xff]  ;;  %v412_v21 = vld [vmem:[#allocation2 + $0x868] sm:$0xff]  ;;  %v406_v22 = vld [vmem:[#allocation2 + $0x838] sm:$0xff] }
 0x112   :  { %4091 = vmatprep.subr.bf16.mxu1 %v4090_v33  ;;  %v333_v33 = vld [vmem:[#allocation2 + $0x5f0] sm:$0xff]  ;;  %v4004_v38 = vpack.c.bf16 %v331_v30, %v323_v29  ;;  %v411_v29 = vld [vmem:[#allocation2 + $0x860] sm:$0xff] }
 0x113   :  { %v405_v30 = vld [vmem:[#allocation2 + $0x830] sm:$0xff] }
 0x114   :  { %3985 = vmatpush1.bf16.msra.mxu0 %v3984_v39  ;;  %v4112_v39 = vpack.c.bf16 %v333_v33, %v325_v31  ;;  %v4130_v31 = vpack.c.bf16 %v414_v23, %v406_v22  ;;  %v420_v33 = vld [vmem:[#allocation2 + $0x8a8] sm:$0xff] }
 0x115   :  { %4093 = vmatpush1.bf16.msra.mxu1 %v4092_v40  ;;  %3987 = vmatprep.subr.bf16.mxu0 %v3986_v41  ;;  %v4006_v40 = vpack.c.bf16 %v348_v35, %v340_v34  ;;  %v339_v41 = vld [vmem:[#allocation2 + $0x620] sm:$0xff]  ;;  %v428_v34 = vld [vmem:[#allocation2 + $0x8e8] sm:$0xff]  ;;  %v422_v35 = vld [vmem:[#allocation2 + $0x8b8] sm:$0xff] }
 0x116   :  { %4095 = vmatprep.subr.bf16.mxu1 %v4094_v46  ;;  %v349_v46 = vld [vmem:[#allocation2 + $0x670] sm:$0xff]  ;;  %v4008_v51 = vpack.c.bf16 %v347_v43, %v339_v41  ;;  %v427_v41 = vld [vmem:[#allocation2 + $0x8e0] sm:$0xff] }
 0x117   :  { %v421_v43 = vld [vmem:[#allocation2 + $0x8b0] sm:$0xff] }
 0x118   :  { %3989 = vmatpush1.bf16.msra.mxu0 %v3988_v52  ;;  %v4116_v52 = vpack.c.bf16 %v349_v46, %v341_v44  ;;  %v4134_v44 = vpack.c.bf16 %v430_v36, %v422_v35  ;;  %v436_v46 = vld [vmem:[#allocation2 + $0x928] sm:$0xff] }
 0x119   :  { %4097 = vmatpush1.bf16.msra.mxu1 %v4096_v53  ;;  %3991 = vmatprep.subr.bf16.mxu0 %v3990_v54  ;;  %v4010_v53 = vpack.c.bf16 %v364_v48, %v356_v47  ;;  %v355_v54 = vld [vmem:[#allocation2 + $0x6a0] sm:$0xff]  ;;  %v444_v47 = vld [vmem:[#allocation2 + $0x968] sm:$0xff]  ;;  %v438_v48 = vld [vmem:[#allocation2 + $0x938] sm:$0xff] }
 0x11a   :  { %4099 = vmatprep.subr.bf16.mxu1 %v4098_v58  ;;  %v365_v58 = vld [vmem:[#allocation2 + $0x6f0] sm:$0xff]  ;;  %v4012_v63 = vpack.c.bf16 %v363_v55, %v355_v54  ;;  %v443_v54 = vld [vmem:[#allocation2 + $0x960] sm:$0xff] }
 0x11b   :  { %v437_v55 = vld [vmem:[#allocation2 + $0x930] sm:$0xff] }
 0x11c   :  { %3993 = vmatpush1.bf16.msra.mxu0 %v3992_v0  ;;  %v4120_v0 = vpack.c.bf16 %v365_v58, %v357_v56  ;;  %v4138_v56 = vpack.c.bf16 %v446_v49, %v438_v48  ;;  %v452_v58 = vld [vmem:[#allocation2 + $0x9a8] sm:$0xff] }
 0x11d   :  { %4101 = vmatpush1.bf16.msra.mxu1 %v4100_v1  ;;  %3995 = vmatprep.subr.bf16.mxu0 %v3994_v16  ;;  %v4014_v1 = vpack.c.bf16 %v380_v60, %v372_v59  ;;  %v371_v16 = vld [vmem:[#allocation2 + $0x720] sm:$0xff]  ;;  %v460_v59 = vld [vmem:[#allocation2 + $0x9e8] sm:$0xff]  ;;  %v454_v60 = vld [vmem:[#allocation2 + $0x9b8] sm:$0xff] }
 0x11e   :  { %4103 = vmatprep.subr.bf16.mxu1 %v4102_v5  ;;  %v381_v5 = vld [vmem:[#allocation2 + $0x770] sm:$0xff]  ;;  %v4016_v10 = vpack.c.bf16 %v379_v2, %v371_v16  ;;  %v4142_v2 = vpack.c.bf16 %v462_v61, %v454_v60 }
 0x11f   :  { %v453_v16 = vld [vmem:[#allocation2 + $0x9b0] sm:$0xff] }
 0x120   :  { %3997 = vmatpush1.bf16.msra.mxu0 %v3996_v11  ;;  %v4124_v11 = vpack.c.bf16 %v381_v5, %v373_v3  ;;  %v461_v3 = vld [vmem:[#allocation2 + $0x9f0] sm:$0xff]  ;;  %v476_v5 = vld [vmem:[#allocation2 + $0xa68] sm:$0xff] }
 0x121   :  { %4105 = vmatpush1.bf16.msra.mxu1 %v4104_v12  ;;  %3999 = vmatprep.subr.bf16.mxu0 %v3998_v13  ;;  %v4018_v12 = vpack.c.bf16 %v396_v7, %v388_v6  ;;  %v387_v13 = vld [vmem:[#allocation2 + $0x7a0] sm:$0xff]  ;;  %v470_v6 = vld [vmem:[#allocation2 + $0xa38] sm:$0xff] }
 0x122   :  { %4107 = vmatprep.subr.bf16.mxu1 %v4106_v19  ;;  %v397_v19 = vld [vmem:[#allocation2 + $0x7f0] sm:$0xff]  ;;  %v4020_v24 = vpack.c.bf16 %v395_v14, %v387_v13  ;;  %v478_v7 = vld [vmem:[#allocation2 + $0xa78] sm:$0xff] }
 0x123   :  { %v4146_v13 = vpack.c.bf16 %v478_v7, %v470_v6  ;;  %v477_v14 = vld [vmem:[#allocation2 + $0xa70] sm:$0xff] }
 0x124   :  { %4001 = vmatpush1.bf16.msra.mxu0 %v4000_v25  ;;  %v4128_v25 = vpack.c.bf16 %v397_v19, %v389_v17  ;;  %v484_v17 = vld [vmem:[#allocation2 + $0xaa8] sm:$0xff]  ;;  %v486_v19 = vld [vmem:[#allocation2 + $0xab8] sm:$0xff] }
 0x125   :  { %4109 = vmatpush1.bf16.msra.mxu1 %v4108_v26  ;;  %4003 = vmatprep.subr.bf16.mxu0 %v4002_v28  ;;  %v4022_v26 = vpack.c.bf16 %v412_v21, %v404_v20  ;;  %v403_v28 = vld [vmem:[#allocation2 + $0x820] sm:$0xff]  ;;  %v494_v20 = vld [vmem:[#allocation2 + $0xaf8] sm:$0xff] }
 0x126   :  { %4111 = vmatprep.subr.bf16.mxu1 %v4110_v32  ;;  %v413_v32 = vld [vmem:[#allocation2 + $0x870] sm:$0xff]  ;;  %v4024_v37 = vpack.c.bf16 %v411_v29, %v403_v28  ;;  %v4150_v28 = vpack.c.bf16 %v494_v20, %v486_v19 }
 0x127   :  { %v493_v29 = vld [vmem:[#allocation2 + $0xaf0] sm:$0xff] }
 0x128   :  { %4005 = vmatpush1.bf16.msra.mxu0 %v4004_v38  ;;  %v4132_v38 = vpack.c.bf16 %v413_v32, %v405_v30  ;;  %v500_v30 = vld [vmem:[#allocation2 + $0xb28] sm:$0xff]  ;;  %v502_v32 = vld [vmem:[#allocation2 + $0xb38] sm:$0xff] }
 0x129   :  { %4113 = vmatpush1.bf16.msra.mxu1 %v4112_v39  ;;  %4007 = vmatprep.subr.bf16.mxu0 %v4006_v40  ;;  %v4026_v39 = vpack.c.bf16 %v428_v34, %v420_v33  ;;  %v419_v40 = vld [vmem:[#allocation2 + $0x8a0] sm:$0xff]  ;;  %v510_v33 = vld [vmem:[#allocation2 + $0xb78] sm:$0xff] }
 0x12a   :  { %4115 = vmatprep.subr.bf16.mxu1 %v4114_v45  ;;  %v429_v45 = vld [vmem:[#allocation2 + $0x8f0] sm:$0xff]  ;;  %v4028_v50 = vpack.c.bf16 %v427_v41, %v419_v40  ;;  %v4154_v40 = vpack.c.bf16 %v510_v33, %v502_v32 }
 0x12b   :  { %v509_v41 = vld [vmem:[#allocation2 + $0xb70] sm:$0xff] }
 0x12c   :  { %4009 = vmatpush1.bf16.msra.mxu0 %v4008_v51  ;;  %v4136_v51 = vpack.c.bf16 %v429_v45, %v421_v43  ;;  %v516_v43 = vld [vmem:[#allocation2 + $0xba8] sm:$0xff]  ;;  %v518_v45 = vld [vmem:[#allocation2 + $0xbb8] sm:$0xff] }
 0x12d   :  { %4117 = vmatpush1.bf16.msra.mxu1 %v4116_v52  ;;  %4011 = vmatprep.subr.bf16.mxu0 %v4010_v53  ;;  %v4030_v52 = vpack.c.bf16 %v444_v47, %v436_v46  ;;  %v435_v53 = vld [vmem:[#allocation2 + $0x920] sm:$0xff]  ;;  %v526_v46 = vld [vmem:[#allocation2 + $0xbf8] sm:$0xff] }
 0x12e   :  { %4119 = vmatprep.subr.bf16.mxu1 %v4118_v57  ;;  %v445_v57 = vld [vmem:[#allocation2 + $0x970] sm:$0xff] }
 0x12f   :  { %v4140_v62 = vpack.c.bf16 %v445_v57, %v437_v55  ;;  %v532_v55 = vld [vmem:[#allocation2 + $0xc28] sm:$0xff]  ;;  %v534_v57 = vld [vmem:[#allocation2 + $0xc38] sm:$0xff] }
 0x130   :  { %4013 = vmatpush1.bf16.msra.mxu0 %v4012_v63  ;;  %v4034_v63 = vpack.c.bf16 %v460_v59, %v452_v58  ;;  %v542_v58 = vld [vmem:[#allocation2 + $0xc78] sm:$0xff] }
 0x131   :  { %4121 = vmatpush1.bf16.msra.mxu1 %v4120_v0  ;;  %4015 = vmatprep.subr.bf16.mxu0 %v4014_v1  ;;  %v451_v0 = vld [vmem:[#allocation2 + $0x9a0] sm:$0xff] }
 0x132   :  { %4123 = vmatprep.subr.bf16.mxu1 %v4122_v4  ;;  %v459_v1 = vld [vmem:[#allocation2 + $0x9e0] sm:$0xff]  ;;  %v468_v4 = vld [vmem:[#allocation2 + $0xa28] sm:$0xff] }
 0x133   :  { %v4036_v8 = vpack.c.bf16 %v459_v1, %v451_v0  ;;  %v4038_v9 = vpack.c.bf16 %v476_v5, %v468_v4  ;;  %v4162_v0 = vpack.c.bf16 %v542_v58, %v534_v57  ;;  %v541_v1 = vld [vmem:[#allocation2 + $0xc70] sm:$0xff]  ;;  %v558_v4 = vld [vmem:[#allocation2 + $0xcf8] sm:$0xff] }
 0x134   :  { %4017 = vmatpush1.bf16.msra.mxu0 %v4016_v10  ;;  %v467_v10 = vld [vmem:[#allocation2 + $0xa20] sm:$0xff] }
 0x135   :  { %4125 = vmatpush1.bf16.msra.mxu1 %v4124_v11  ;;  %4019 = vmatprep.subr.bf16.mxu0 %v4018_v12  ;;  %v475_v11 = vld [vmem:[#allocation2 + $0xa60] sm:$0xff]  ;;  %v469_v12 = vld [vmem:[#allocation2 + $0xa30] sm:$0xff] }
 0x136   :  { %4127 = vmatprep.subr.bf16.mxu1 %v4126_v18  ;;  %v492_v18 = vld [vmem:[#allocation2 + $0xae8] sm:$0xff]  ;;  %v4040_v21 = vpack.c.bf16 %v475_v11, %v467_v10  ;;  %v4148_v22 = vpack.c.bf16 %v477_v14, %v469_v12  ;;  %v557_v11 = vld [vmem:[#allocation2 + $0xcf0] sm:$0xff]  ;;  %v566_v14 = vld [vmem:[#allocation2 + $0xd38] sm:$0xff] }
 0x137   :  { %v4042_v23 = vpack.c.bf16 %v492_v18, %v484_v17  ;;  %v564_v12 = vld [vmem:[#allocation2 + $0xd28] sm:$0xff]  ;;  %v574_v17 = vld [vmem:[#allocation2 + $0xd78] sm:$0xff] }
 0x138   :  { %4021 = vmatpush1.bf16.msra.mxu0 %v4020_v24  ;;  %v483_v24 = vld [vmem:[#allocation2 + $0xaa0] sm:$0xff] }
 0x139   :  { %4129 = vmatpush1.bf16.msra.mxu1 %v4128_v25  ;;  %4023 = vmatprep.subr.bf16.mxu0 %v4022_v26  ;;  %v491_v25 = vld [vmem:[#allocation2 + $0xae0] sm:$0xff]  ;;  %v485_v26 = vld [vmem:[#allocation2 + $0xab0] sm:$0xff] }
 0x13a   :  { %4131 = vmatprep.subr.bf16.mxu1 %v4130_v31  ;;  %v508_v31 = vld [vmem:[#allocation2 + $0xb68] sm:$0xff]  ;;  %v4044_v34 = vpack.c.bf16 %v491_v25, %v483_v24  ;;  %v4152_v35 = vpack.c.bf16 %v493_v29, %v485_v26  ;;  %v4170_v24 = vpack.c.bf16 %v574_v17, %v566_v14  ;;  %v573_v25 = vld [vmem:[#allocation2 + $0xd70] sm:$0xff]  ;;  %v1217_v29 = vld [vmem:[#allocation5 + $0x18] sm:$0xff] }
 0x13b   :  { %970 = vmatmul.mubr.f32.vlgmr.msra.gmra.mrb[2].mxu0 %v5687_v15  ;;  %v4046_v36 = vpack.c.bf16 %v508_v31, %v500_v30  ;;  %v1215_v26 = vld [vmem:[#allocation5 + $0x8] sm:$0xff]  ;;  %v1225_v30 = vld [vmem:[#allocation5 + $0x58] sm:$0xff]  ;;  %v1278_v17 = vld [vmem:[#allocation5 + $0x200] sm:$0xff] }
 0x13c   :  { %4025 = vmatpush1.bf16.msra.mxu0 %v4024_v37  ;;  %1112 = vmatmul.mubr.f32.vlgmr.msra.gmra.mrb[2].mxu1 %v5687_v15  ;;  %v4032_v15 = vpack.c.bf16 %v443_v54, %v435_v53  ;;  %v499_v37 = vld [vmem:[#allocation2 + $0xb20] sm:$0xff]  ;;  %v4158_v53 = vpack.c.bf16 %v526_v46, %v518_v45  ;;  %v525_v54 = vld [vmem:[#allocation2 + $0xbf0] sm:$0xff] }
 0x13d   :  { %4133 = vmatpush1.bf16.msra.mxu1 %v4132_v38  ;;  %4027 = vmatprep.subr.bf16.mxu0 %v4026_v39  ;;  %v507_v38 = vld [vmem:[#allocation2 + $0xb60] sm:$0xff]  ;;  %v501_v39 = vld [vmem:[#allocation2 + $0xb30] sm:$0xff] }
 0x13e   :  { %4135 = vmatprep.subr.bf16.mxu1 %v4134_v44  ;;  %3716 = vmatprep.mubr.msk.f32.mxu0 %vm617_vm0, %v5694_v42  ;;  %v524_v44 = vld [vmem:[#allocation2 + $0xbe8] sm:$0xff]  ;;  %v4048_v47 = vpack.c.bf16 %v507_v38, %v499_v37  ;;  %v4156_v48 = vpack.c.bf16 %v509_v41, %v501_v39  ;;  %v4422_v37 = vpack.c.bf16 %v1225_v30, %v1217_v29  ;;  %v1224_v38 = vld [vmem:[#allocation5 + $0x50] sm:$0xff]  ;;  %v1233_v41 = vld [vmem:[#allocation5 + $0x98] sm:$0xff] }
 0x13f   :  { %3717 = vmatprep.mubr.msk.f32.mxu1 %vm617_vm0, %v5694_v42  ;;  %v4144_v42 = vpack.c.bf16 %v461_v3, %v453_v16  ;;  %v4050_v49 = vpack.c.bf16 %v524_v44, %v516_v43  ;;  %v548_v16 = vld [vmem:[#allocation2 + $0xca8] sm:$0xff]  ;;  %v550_v3 = vld [vmem:[#allocation2 + $0xcb8] sm:$0xff]  ;;  %v1294_v30 = vld [vmem:[#allocation5 + $0x280] sm:$0xff] }
 0x140   :  { %4029 = vmatpush1.bf16.msra.mxu0 %v4028_v50  ;;  %v515_v50 = vld [vmem:[#allocation2 + $0xba0] sm:$0xff]  ;;  %v4166_v10 = vpack.c.bf16 %v558_v4, %v550_v3  ;;  %v1231_v39 = vld [vmem:[#allocation5 + $0x88] sm:$0xff]  ;;  %v1241_v43 = vld [vmem:[#allocation5 + $0xd8] sm:$0xff] }
 0x141   :  { %4137 = vmatpush1.bf16.msra.mxu1 %v4136_v51  ;;  %4031 = vmatprep.subr.bf16.mxu0 %v4030_v52  ;;  %v523_v51 = vld [vmem:[#allocation2 + $0xbe0] sm:$0xff]  ;;  %v517_v52 = vld [vmem:[#allocation2 + $0xbb0] sm:$0xff] }
 0x142   :  { %4139 = vmatprep.subr.bf16.mxu1 %v4138_v56  ;;  %v540_v56 = vld [vmem:[#allocation2 + $0xc68] sm:$0xff]  ;;  %v4052_v59 = vpack.c.bf16 %v523_v51, %v515_v50  ;;  %v4160_v60 = vpack.c.bf16 %v525_v54, %v517_v52  ;;  %v4426_v50 = vpack.c.bf16 %v1241_v43, %v1233_v41  ;;  %v1240_v51 = vld [vmem:[#allocation5 + $0xd0] sm:$0xff]  ;;  %v1249_v54 = vld [vmem:[#allocation5 + $0x118] sm:$0xff] }
 0x143   :  { %v4054_v61 = vpack.c.bf16 %v540_v56, %v532_v55  ;;  %v1247_v52 = vld [vmem:[#allocation5 + $0x108] sm:$0xff]  ;;  %v1257_v55 = vld [vmem:[#allocation5 + $0x158] sm:$0xff]  ;;  %v1262_v4 = vld [vmem:[#allocation5 + $0x180] sm:$0xff] }
 0x144   :  { %4033 = vmatpush1.bf16.msra.mxu0 %v4032_v15  ;;  %v531_v15 = vld [vmem:[#allocation2 + $0xc20] sm:$0xff] }
 0x145   :  { %4141 = vmatpush1.bf16.msra.mxu1 %v4140_v62  ;;  %4035 = vmatprep.subr.bf16.mxu0 %v4034_v63  ;;  %v539_v62 = vld [vmem:[#allocation2 + $0xc60] sm:$0xff]  ;;  %v533_v63 = vld [vmem:[#allocation2 + $0xc30] sm:$0xff] }
 0x146   :  { %4143 = vmatprep.subr.bf16.mxu1 %v4142_v2  ;;  %v556_v2 = vld [vmem:[#allocation2 + $0xce8] sm:$0xff]  ;;  %v4056_v5 = vpack.c.bf16 %v539_v62, %v531_v15  ;;  %v4164_v6 = vpack.c.bf16 %v541_v1, %v533_v63  ;;  %v4430_v15 = vpack.c.bf16 %v1257_v55, %v1249_v54  ;;  %v1256_v62 = vld [vmem:[#allocation5 + $0x150] sm:$0xff]  ;;  %v1265_v1 = vld [vmem:[#allocation5 + $0x198] sm:$0xff] }
 0x147   :  { %v4058_v7 = vpack.c.bf16 %v556_v2, %v548_v16  ;;  %v1263_v63 = vld [vmem:[#allocation5 + $0x188] sm:$0xff]  ;;  %v1273_v16 = vld [vmem:[#allocation5 + $0x1d8] sm:$0xff]  ;;  %v1310_v43 = vld [vmem:[#allocation5 + $0x300] sm:$0xff] }
 0x148   :  { %4037 = vmatpush1.bf16.msra.mxu0 %v4036_v8  ;;  %v547_v8 = vld [vmem:[#allocation2 + $0xca0] sm:$0xff] }
 0x149   :  { %4145 = vmatpush1.bf16.msra.mxu1 %v4144_v42  ;;  %4039 = vmatprep.subr.bf16.mxu0 %v4038_v9  ;;  %v555_v42 = vld [vmem:[#allocation2 + $0xce0] sm:$0xff]  ;;  %v549_v9 = vld [vmem:[#allocation2 + $0xcb0] sm:$0xff] }
 0x14a   :  { %4147 = vmatprep.subr.bf16.mxu1 %v4146_v13  ;;  %v572_v13 = vld [vmem:[#allocation2 + $0xd68] sm:$0xff]  ;;  %v4060_v18 = vpack.c.bf16 %v555_v42, %v547_v8  ;;  %v4168_v19 = vpack.c.bf16 %v557_v11, %v549_v9  ;;  %v1272_v8 = vld [vmem:[#allocation5 + $0x1d0] sm:$0xff]  ;;  %v1289_v11 = vld [vmem:[#allocation5 + $0x258] sm:$0xff] }
 0x14b   :  { %v4062_v20 = vpack.c.bf16 %v572_v13, %v564_v12  ;;  %v1279_v42 = vld [vmem:[#allocation5 + $0x208] sm:$0xff]  ;;  %v1326_v55 = vld [vmem:[#allocation5 + $0x380] sm:$0xff] }
 0x14c   :  { %4041 = vmatpush1.bf16.msra.mxu0 %v4040_v21  ;;  %v563_v21 = vld [vmem:[#allocation2 + $0xd20] sm:$0xff]  ;;  %v1287_v9 = vld [vmem:[#allocation5 + $0x248] sm:$0xff] }
 0x14d   :  { %4149 = vmatpush1.bf16.msra.mxu1 %v4148_v22  ;;  %4043 = vmatprep.subr.bf16.mxu0 %v4042_v23  ;;  %v571_v22 = vld [vmem:[#allocation2 + $0xd60] sm:$0xff]  ;;  %v565_v23 = vld [vmem:[#allocation2 + $0xd30] sm:$0xff]  ;;  %v4190_v14 = vpack.c.bf16 %v1287_v9, %v1279_v42 }
 0x14e   :  { %4151 = vmatprep.subr.bf16.mxu1 %v4150_v28  ;;  %v1223_v28 = vld [vmem:[#allocation5 + $0x48] sm:$0xff]  ;;  %v4064_v31 = vpack.c.bf16 %v571_v22, %v563_v21  ;;  %v4172_v32 = vpack.c.bf16 %v573_v25, %v565_v23  ;;  %v1288_v21 = vld [vmem:[#allocation5 + $0x250] sm:$0xff]  ;;  %v1305_v25 = vld [vmem:[#allocation5 + $0x2d8] sm:$0xff] }
 0x14f   :  { %v4174_v33 = vpack.c.bf16 %v1223_v28, %v1215_v26  ;;  %v1295_v22 = vld [vmem:[#allocation5 + $0x288] sm:$0xff] }
 0x150   :  { %4045 = vmatpush1.bf16.msra.mxu0 %v4044_v34  ;;  %v1214_v34 = vld [vmem:[#allocation5] sm:$0xff]  ;;  %v1303_v23 = vld [vmem:[#allocation5 + $0x2c8] sm:$0xff] }
 0x151   :  { %4153 = vmatpush1.bf16.msra.mxu1 %v4152_v35  ;;  %4047 = vmatprep.subr.bf16.mxu0 %v4046_v36  ;;  %v1222_v35 = vld [vmem:[#allocation5 + $0x40] sm:$0xff]  ;;  %v1216_v36 = vld [vmem:[#allocation5 + $0x10] sm:$0xff]  ;;  %v4194_v29 = vpack.c.bf16 %v1303_v23, %v1295_v22 }
 0x152   :  { %4155 = vmatprep.subr.bf16.mxu1 %v4154_v40  ;;  %v1239_v40 = vld [vmem:[#allocation5 + $0xc8] sm:$0xff]  ;;  %v4176_v44 = vpack.c.bf16 %v1222_v35, %v1214_v34  ;;  %v4424_v45 = vpack.c.bf16 %v1224_v38, %v1216_v36  ;;  %v1304_v34 = vld [vmem:[#allocation5 + $0x2d0] sm:$0xff]  ;;  %v1321_v38 = vld [vmem:[#allocation5 + $0x358] sm:$0xff] }
 0x153   :  { %v4178_v46 = vpack.c.bf16 %v1239_v40, %v1231_v39  ;;  %v1311_v35 = vld [vmem:[#allocation5 + $0x308] sm:$0xff] }
 0x154   :  { %4049 = vmatpush1.bf16.msra.mxu0 %v4048_v47  ;;  %v1230_v47 = vld [vmem:[#allocation5 + $0x80] sm:$0xff]  ;;  %v1319_v36 = vld [vmem:[#allocation5 + $0x348] sm:$0xff] }
 0x155   :  { %4157 = vmatpush1.bf16.msra.mxu1 %v4156_v48  ;;  %4051 = vmatprep.subr.bf16.mxu0 %v4050_v49  ;;  %v1238_v48 = vld [vmem:[#allocation5 + $0xc0] sm:$0xff]  ;;  %v1232_v49 = vld [vmem:[#allocation5 + $0x90] sm:$0xff]  ;;  %v4198_v41 = vpack.c.bf16 %v1319_v36, %v1311_v35 }
 0x156   :  { %4159 = vmatprep.subr.bf16.mxu1 %v4158_v53  ;;  %v1255_v53 = vld [vmem:[#allocation5 + $0x148] sm:$0xff]  ;;  %v4180_v56 = vpack.c.bf16 %v1238_v48, %v1230_v47  ;;  %v4428_v57 = vpack.c.bf16 %v1240_v51, %v1232_v49  ;;  %v1320_v47 = vld [vmem:[#allocation5 + $0x350] sm:$0xff]  ;;  %v1337_v51 = vld [vmem:[#allocation5 + $0x3d8] sm:$0xff] }
 0x157   :  { %v4182_v58 = vpack.c.bf16 %v1255_v53, %v1247_v52  ;;  %v1327_v48 = vld [vmem:[#allocation5 + $0x388] sm:$0xff] }
 0x158   :  { %4053 = vmatpush1.bf16.msra.mxu0 %v4052_v59  ;;  %v1246_v59 = vld [vmem:[#allocation5 + $0x100] sm:$0xff]  ;;  %v1335_v49 = vld [vmem:[#allocation5 + $0x3c8] sm:$0xff] }
 0x159   :  { %4161 = vmatpush1.bf16.msra.mxu1 %v4160_v60  ;;  %4055 = vmatprep.subr.bf16.mxu0 %v4054_v61  ;;  %v1254_v60 = vld [vmem:[#allocation5 + $0x140] sm:$0xff]  ;;  %v1248_v61 = vld [vmem:[#allocation5 + $0x110] sm:$0xff]  ;;  %v4202_v54 = vpack.c.bf16 %v1335_v49, %v1327_v48 }
 0x15a   :  { %4163 = vmatprep.subr.bf16.mxu1 %v4162_v0  ;;  %v1271_v0 = vld [vmem:[#allocation5 + $0x1c8] sm:$0xff]  ;;  %v4184_v2 = vpack.c.bf16 %v1254_v60, %v1246_v59  ;;  %v1336_v59 = vld [vmem:[#allocation5 + $0x3d0] sm:$0xff] }
 0x15b   :  { %v4186_v3 = vpack.c.bf16 %v1271_v0, %v1263_v63  ;;  %v1343_v60 = vld [vmem:[#allocation5 + $0x408] sm:$0xff] }
 0x15c   :  { %4057 = vmatpush1.bf16.msra.mxu0 %v4056_v5  ;;  %v1270_v5 = vld [vmem:[#allocation5 + $0x1c0] sm:$0xff] }
 0x15d   :  { %4165 = vmatpush1.bf16.msra.mxu1 %v4164_v6  ;;  %4059 = vmatprep.subr.bf16.mxu0 %v4058_v7  ;;  %v1264_v6 = vld [vmem:[#allocation5 + $0x190] sm:$0xff]  ;;  %v4434_v7 = vpack.c.bf16 %v1273_v16, %v1265_v1  ;;  %v4188_v12 = vpack.c.bf16 %v1270_v5, %v1262_v4  ;;  %v1342_v16 = vld [vmem:[#allocation5 + $0x400] sm:$0xff]  ;;  %v1359_v5 = vld [vmem:[#allocation5 + $0x488] sm:$0xff] }
 0x15e   :  { %4167 = vmatprep.subr.bf16.mxu1 %v4166_v10  ;;  %v1281_v10 = vld [vmem:[#allocation5 + $0x218] sm:$0xff]  ;;  %v4436_v13 = vpack.c.bf16 %v1272_v8, %v1264_v6  ;;  %v1352_v4 = vld [vmem:[#allocation5 + $0x450] sm:$0xff]  ;;  %v1367_v6 = vld [vmem:[#allocation5 + $0x4c8] sm:$0xff] }
 0x15f   :  { %v1369_v8 = vld [vmem:[#allocation5 + $0x4d8] sm:$0xff] }
 0x160   :  { %4061 = vmatpush1.bf16.msra.mxu0 %v4060_v18  ;;  %v1286_v18 = vld [vmem:[#allocation5 + $0x240] sm:$0xff] }
 0x161   :  { %4169 = vmatpush1.bf16.msra.mxu1 %v4168_v19  ;;  %4063 = vmatprep.subr.bf16.mxu0 %v4062_v20  ;;  %v1280_v19 = vld [vmem:[#allocation5 + $0x210] sm:$0xff]  ;;  %v4438_v20 = vpack.c.bf16 %v1289_v11, %v1281_v10  ;;  %v4192_v26 = vpack.c.bf16 %v1286_v18, %v1278_v17  ;;  %v4210_v10 = vpack.c.bf16 %v1367_v6, %v1359_v5  ;;  %v1358_v11 = vld [vmem:[#allocation5 + $0x480] sm:$0xff]  ;;  %v1375_v18 = vld [vmem:[#allocation5 + $0x508] sm:$0xff] }
 0x162   :  { %4171 = vmatprep.subr.bf16.mxu1 %v4170_v24  ;;  %v1297_v24 = vld [vmem:[#allocation5 + $0x298] sm:$0xff]  ;;  %v4440_v28 = vpack.c.bf16 %v1288_v21, %v1280_v19  ;;  %v1368_v17 = vld [vmem:[#allocation5 + $0x4d0] sm:$0xff]  ;;  %v1383_v19 = vld [vmem:[#allocation5 + $0x548] sm:$0xff] }
 0x163   :  { %v1385_v21 = vld [vmem:[#allocation5 + $0x558] sm:$0xff] }
 0x164   :  { %4065 = vmatpush1.bf16.msra.mxu0 %v4064_v31  ;;  %v1302_v31 = vld [vmem:[#allocation5 + $0x2c0] sm:$0xff] }
 0x165   :  { %4173 = vmatpush1.bf16.msra.mxu1 %v4172_v32  ;;  %4175 = vmatprep.subr.bf16.mxu0 %v4174_v33  ;;  %v1296_v32 = vld [vmem:[#allocation5 + $0x290] sm:$0xff]  ;;  %v4442_v33 = vpack.c.bf16 %v1305_v25, %v1297_v24  ;;  %v4196_v39 = vpack.c.bf16 %v1302_v31, %v1294_v30  ;;  %v4214_v24 = vpack.c.bf16 %v1383_v19, %v1375_v18  ;;  %v1374_v25 = vld [vmem:[#allocation5 + $0x500] sm:$0xff]  ;;  %v1391_v31 = vld [vmem:[#allocation5 + $0x588] sm:$0xff] }
 0x166   :  { %4423 = vmatprep.subr.bf16.mxu1 %v4422_v37  ;;  %v1313_v37 = vld [vmem:[#allocation5 + $0x318] sm:$0xff]  ;;  %v4444_v40 = vpack.c.bf16 %v1304_v34, %v1296_v32  ;;  %v1384_v30 = vld [vmem:[#allocation5 + $0x550] sm:$0xff]  ;;  %v1399_v32 = vld [vmem:[#allocation5 + $0x5c8] sm:$0xff] }
 0x167   :  { %1041 = vmatmul.mubr.f32.vlgmr.msra.gmra.mrb[2].mxu0 %v5703_v27  ;;  %v1401_v34 = vld [vmem:[#allocation5 + $0x5d8] sm:$0xff] }
 0x168   :  { %1183 = vmatmul.mubr.f32.vlgmr.msra.gmra.mrb[2].mxu1 %v5703_v27  ;;  %4177 = vmatpush1.bf16.msra.mxu0 %v4176_v44  ;;  %v4432_v27 = vpack.c.bf16 %v1256_v62, %v1248_v61  ;;  %v1318_v44 = vld [vmem:[#allocation5 + $0x340] sm:$0xff]  ;;  %v1351_v61 = vld [vmem:[#allocation5 + $0x448] sm:$0xff]  ;;  %v1353_v62 = vld [vmem:[#allocation5 + $0x458] sm:$0xff] }
 0x169   :  { %4425 = vmatpush1.bf16.msra.mxu1 %v4424_v45  ;;  %4179 = vmatprep.subr.bf16.mxu0 %v4178_v46  ;;  %v1312_v45 = vld [vmem:[#allocation5 + $0x310] sm:$0xff]  ;;  %v4446_v46 = vpack.c.bf16 %v1321_v38, %v1313_v37  ;;  %v4200_v52 = vpack.c.bf16 %v1318_v44, %v1310_v43  ;;  %v4206_v1 = vpack.c.bf16 %v1351_v61, %v1343_v60  ;;  %v1390_v38 = vld [vmem:[#allocation5 + $0x580] sm:$0xff]  ;;  %v1407_v44 = vld [vmem:[#allocation5 + $0x608] sm:$0xff] }
 0x16a   :  { %4427 = vmatprep.subr.bf16.mxu1 %v4426_v50  ;;  %v1329_v50 = vld [vmem:[#allocation5 + $0x398] sm:$0xff]  ;;  %v4448_v53 = vpack.c.bf16 %v1320_v47, %v1312_v45  ;;  %v4218_v37 = vpack.c.bf16 %v1399_v32, %v1391_v31  ;;  %v1400_v43 = vld [vmem:[#allocation5 + $0x5d0] sm:$0xff]  ;;  %v1415_v45 = vld [vmem:[#allocation5 + $0x648] sm:$0xff] }
 0x16b   :  { %v1417_v47 = vld [vmem:[#allocation5 + $0x658] sm:$0xff] }
 0x16c   :  { %4181 = vmatpush1.bf16.msra.mxu0 %v4180_v56  ;;  %v1334_v56 = vld [vmem:[#allocation5 + $0x3c0] sm:$0xff] }
 0x16d   :  { %4429 = vmatpush1.bf16.msra.mxu1 %v4428_v57  ;;  %4183 = vmatprep.subr.bf16.mxu0 %v4182_v58  ;;  %v1328_v57 = vld [vmem:[#allocation5 + $0x390] sm:$0xff]  ;;  %v4450_v58 = vpack.c.bf16 %v1337_v51, %v1329_v50  ;;  %v4204_v63 = vpack.c.bf16 %v1334_v56, %v1326_v55  ;;  %v4222_v50 = vpack.c.bf16 %v1415_v45, %v1407_v44  ;;  %v1406_v51 = vld [vmem:[#allocation5 + $0x600] sm:$0xff]  ;;  %v1423_v56 = vld [vmem:[#allocation5 + $0x688] sm:$0xff] }
 0x16e   :  { %4431 = vmatprep.subr.bf16.mxu1 %v4430_v15  ;;  %v1345_v15 = vld [vmem:[#allocation5 + $0x418] sm:$0xff]  ;;  %v4452_v0 = vpack.c.bf16 %v1336_v59, %v1328_v57  ;;  %v1416_v55 = vld [vmem:[#allocation5 + $0x650] sm:$0xff]  ;;  %v1431_v57 = vld [vmem:[#allocation5 + $0x6c8] sm:$0xff] }
 0x16f   :  { %v1433_v59 = vld [vmem:[#allocation5 + $0x6d8] sm:$0xff] }
 0x170   :  { %4185 = vmatpush1.bf16.msra.mxu0 %v4184_v2  ;;  %v1350_v2 = vld [vmem:[#allocation5 + $0x440] sm:$0xff] }
 0x171   :  { %4433 = vmatpush1.bf16.msra.mxu1 %v4432_v27  ;;  %4187 = vmatprep.subr.bf16.mxu0 %v4186_v3  ;;  %v1344_v27 = vld [vmem:[#allocation5 + $0x410] sm:$0xff]  ;;  %v4454_v3 = vpack.c.bf16 %v1353_v62, %v1345_v15  ;;  %v4208_v42 = vpack.c.bf16 %v1350_v2, %v1342_v16  ;;  %v4226_v15 = vpack.c.bf16 %v1431_v57, %v1423_v56  ;;  %v1422_v62 = vld [vmem:[#allocation5 + $0x680] sm:$0xff]  ;;  %v1439_v2 = vld [vmem:[#allocation5 + $0x708] sm:$0xff] }
 0x172   :  { %4435 = vmatprep.subr.bf16.mxu1 %v4434_v7  ;;  %v1361_v7 = vld [vmem:[#allocation5 + $0x498] sm:$0xff]  ;;  %v4456_v9 = vpack.c.bf16 %v1352_v4, %v1344_v27  ;;  %v1432_v16 = vld [vmem:[#allocation5 + $0x6d0] sm:$0xff]  ;;  %v1447_v27 = vld [vmem:[#allocation5 + $0x748] sm:$0xff] }
 0x173   :  { %v1449_v4 = vld [vmem:[#allocation5 + $0x758] sm:$0xff] }
 0x174   :  { %4189 = vmatpush1.bf16.msra.mxu0 %v4188_v12  ;;  %v1366_v12 = vld [vmem:[#allocation5 + $0x4c0] sm:$0xff] }
 0x175   :  { %4437 = vmatpush1.bf16.msra.mxu1 %v4436_v13  ;;  %4191 = vmatprep.subr.bf16.mxu0 %v4190_v14  ;;  %v1360_v13 = vld [vmem:[#allocation5 + $0x490] sm:$0xff]  ;;  %v4458_v14 = vpack.c.bf16 %v1369_v8, %v1361_v7  ;;  %v4212_v22 = vpack.c.bf16 %v1366_v12, %v1358_v11  ;;  %v4230_v7 = vpack.c.bf16 %v1447_v27, %v1439_v2  ;;  %v1438_v8 = vld [vmem:[#allocation5 + $0x700] sm:$0xff]  ;;  %v1455_v12 = vld [vmem:[#allocation5 + $0x788] sm:$0xff] }
 0x176   :  { %4439 = vmatprep.subr.bf16.mxu1 %v4438_v20  ;;  %v1377_v20 = vld [vmem:[#allocation5 + $0x518] sm:$0xff]  ;;  %v4460_v23 = vpack.c.bf16 %v1368_v17, %v1360_v13  ;;  %v1448_v11 = vld [vmem:[#allocation5 + $0x750] sm:$0xff]  ;;  %v1463_v13 = vld [vmem:[#allocation5 + $0x7c8] sm:$0xff] }
 0x177   :  { %v1465_v17 = vld [vmem:[#allocation5 + $0x7d8] sm:$0xff]  ;;  %v1488_v27 = vld [vmem:[#allocation5 + $0x890] sm:$0xff] }
 0x178   :  { %4193 = vmatpush1.bf16.msra.mxu0 %v4192_v26  ;;  %v1382_v26 = vld [vmem:[#allocation5 + $0x540] sm:$0xff] }
 0x179   :  { %4441 = vmatpush1.bf16.msra.mxu1 %v4440_v28  ;;  %4195 = vmatprep.subr.bf16.mxu0 %v4194_v29  ;;  %v1376_v28 = vld [vmem:[#allocation5 + $0x510] sm:$0xff]  ;;  %v4462_v29 = vpack.c.bf16 %v1385_v21, %v1377_v20  ;;  %v4216_v35 = vpack.c.bf16 %v1382_v26, %v1374_v25  ;;  %v4234_v20 = vpack.c.bf16 %v1463_v13, %v1455_v12  ;;  %v1454_v21 = vld [vmem:[#allocation5 + $0x780] sm:$0xff]  ;;  %v1471_v26 = vld [vmem:[#allocation5 + $0x808] sm:$0xff] }
 0x17a   :  { %4443 = vmatprep.subr.bf16.mxu1 %v4442_v33  ;;  %v1393_v33 = vld [vmem:[#allocation5 + $0x598] sm:$0xff]  ;;  %v4464_v36 = vpack.c.bf16 %v1384_v30, %v1376_v28  ;;  %v1464_v25 = vld [vmem:[#allocation5 + $0x7d0] sm:$0xff]  ;;  %v1479_v28 = vld [vmem:[#allocation5 + $0x848] sm:$0xff] }
 0x17b   :  { %v1481_v30 = vld [vmem:[#allocation5 + $0x858] sm:$0xff]  ;;  %v1502_v13 = vld [vmem:[#allocation5 + $0x900] sm:$0xff] }
 0x17c   :  { %4197 = vmatpush1.bf16.msra.mxu0 %v4196_v39  ;;  %v1398_v39 = vld [vmem:[#allocation5 + $0x5c0] sm:$0xff] }
 0x17d   :  { %4445 = vmatpush1.bf16.msra.mxu1 %v4444_v40  ;;  %4199 = vmatprep.subr.bf16.mxu0 %v4198_v41  ;;  %v1392_v40 = vld [vmem:[#allocation5 + $0x590] sm:$0xff]  ;;  %v4466_v41 = vpack.c.bf16 %v1401_v34, %v1393_v33  ;;  %v4220_v48 = vpack.c.bf16 %v1398_v39, %v1390_v38  ;;  %v4238_v33 = vpack.c.bf16 %v1479_v28, %v1471_v26  ;;  %v5720_v38 = vld [vmem:[#allocation8] sm:$0xff] }
 0x17e   :  { %4447 = vmatprep.subr.bf16.mxu1 %v4446_v46  ;;  %v1409_v46 = vld [vmem:[#allocation5 + $0x618] sm:$0xff]  ;;  %v4468_v49 = vpack.c.bf16 %v1400_v43, %v1392_v40  ;;  %v1518_v28 = vld [vmem:[#allocation5 + $0x980] sm:$0xff] }
 0x180   :  { %4201 = vmatpush1.bf16.msra.mxu0 %v4200_v52  ;;  %v1414_v52 = vld [vmem:[#allocation5 + $0x640] sm:$0xff] }
 0x181   :  { %4449 = vmatpush1.bf16.msra.mxu1 %v4448_v53  ;;  %4203 = vmatprep.subr.bf16.mxu0 %v4202_v54  ;;  %v1408_v53 = vld [vmem:[#allocation5 + $0x610] sm:$0xff]  ;;  %v4470_v54 = vpack.c.bf16 %v1417_v47, %v1409_v46  ;;  %v4224_v60 = vpack.c.bf16 %v1414_v52, %v1406_v51  ;;  %v5731_v46 = vstv %s136_s0 }
 0x182   :  { %4451 = vmatprep.subr.bf16.mxu1 %v4450_v58  ;;  %v1425_v58 = vld [vmem:[#allocation5 + $0x698] sm:$0xff]  ;;  %v4472_v61 = vpack.c.bf16 %v1416_v55, %v1408_v53  ;;  %v1478_v53 = vld [vmem:[#allocation5 + $0x840] sm:$0xff]  ;;  %v1480_v55 = vld [vmem:[#allocation5 + $0x850] sm:$0xff] }
 0x184   :  { %4205 = vmatpush1.bf16.msra.mxu0 %v4204_v63  ;;  %v1430_v63 = vld [vmem:[#allocation5 + $0x6c0] sm:$0xff] }
 0x185   :  { %4453 = vmatpush1.bf16.msra.mxu1 %v4452_v0  ;;  %4207 = vmatprep.subr.bf16.mxu0 %v4206_v1  ;;  %v1424_v0 = vld [vmem:[#allocation5 + $0x690] sm:$0xff]  ;;  %v4474_v1 = vpack.c.bf16 %v1433_v59, %v1425_v58  ;;  %v4228_v5 = vpack.c.bf16 %v1430_v63, %v1422_v62  ;;  %v1487_v58 = vld [vmem:[#allocation5 + $0x888] sm:$0xff] }
 0x186   :  { %4455 = vmatprep.subr.bf16.mxu1 %v4454_v3  ;;  %v1441_v3 = vld [vmem:[#allocation5 + $0x718] sm:$0xff]  ;;  %v4476_v6 = vpack.c.bf16 %v1432_v16, %v1424_v0  ;;  %v1494_v16 = vld [vmem:[#allocation5 + $0x8c0] sm:$0xff] }
 0x188   :  { %4209 = vmatpush1.bf16.msra.mxu0 %v4208_v42  ;;  %v1446_v42 = vld [vmem:[#allocation5 + $0x740] sm:$0xff] }
 0x189   :  { %4457 = vmatpush1.bf16.msra.mxu1 %v4456_v9  ;;  %4211 = vmatprep.subr.bf16.mxu0 %v4210_v10  ;;  %v1440_v9 = vld [vmem:[#allocation5 + $0x710] sm:$0xff]  ;;  %v4478_v10 = vpack.c.bf16 %v1449_v4, %v1441_v3  ;;  %v4232_v18 = vpack.c.bf16 %v1446_v42, %v1438_v8  ;;  %v1503_v4 = vld [vmem:[#allocation5 + $0x908] sm:$0xff]  ;;  %v1505_v42 = vld [vmem:[#allocation5 + $0x918] sm:$0xff] }
 0x18a   :  { %4459 = vmatprep.subr.bf16.mxu1 %v4458_v14  ;;  %v1457_v14 = vld [vmem:[#allocation5 + $0x798] sm:$0xff]  ;;  %v4480_v19 = vpack.c.bf16 %v1448_v11, %v1440_v9  ;;  %v1496_v3 = vld [vmem:[#allocation5 + $0x8d0] sm:$0xff]  ;;  %v1511_v8 = vld [vmem:[#allocation5 + $0x948] sm:$0xff] }
 0x18b   :  { %v1513_v9 = vld [vmem:[#allocation5 + $0x958] sm:$0xff]  ;;  %v4492_v12 = vpack.c.bf16 %v1496_v3, %v1488_v27 }
 0x18c   :  { %4213 = vmatpush1.bf16.msra.mxu0 %v4212_v22  ;;  %v1462_v22 = vld [vmem:[#allocation5 + $0x7c0] sm:$0xff]  ;;  %v1577_v27 = vld [vmem:[#allocation5 + $0xb58] sm:$0xff] }
 0x18d   :  { %4461 = vmatpush1.bf16.msra.mxu1 %v4460_v23  ;;  %4215 = vmatprep.subr.bf16.mxu0 %v4214_v24  ;;  %v1456_v23 = vld [vmem:[#allocation5 + $0x790] sm:$0xff]  ;;  %v4482_v24 = vpack.c.bf16 %v1465_v17, %v1457_v14  ;;  %v4236_v31 = vpack.c.bf16 %v1462_v22, %v1454_v21  ;;  %v1510_v14 = vld [vmem:[#allocation5 + $0x940] sm:$0xff]  ;;  %v4246_v17 = vpack.c.bf16 %v1511_v8, %v1503_v4  ;;  %v1519_v21 = vld [vmem:[#allocation5 + $0x988] sm:$0xff] }
 0x18e   :  { %4463 = vmatprep.subr.bf16.mxu1 %v4462_v29  ;;  %v1473_v29 = vld [vmem:[#allocation5 + $0x818] sm:$0xff]  ;;  %v4484_v32 = vpack.c.bf16 %v1464_v25, %v1456_v23  ;;  %v1527_v22 = vld [vmem:[#allocation5 + $0x9c8] sm:$0xff]  ;;  %v4248_v25 = vpack.c.bf16 %v1510_v14, %v1502_v13 }
 0x18f   :  { %v4486_v34 = vpack.c.bf16 %v1481_v30, %v1473_v29  ;;  %v1521_v23 = vld [vmem:[#allocation5 + $0x998] sm:$0xff]  ;;  %v1526_v29 = vld [vmem:[#allocation5 + $0x9c0] sm:$0xff]  ;;  %v4250_v30 = vpack.c.bf16 %v1527_v22, %v1519_v21  ;;  %v1591_v13 = vld [vmem:[#allocation5 + $0xbc8] sm:$0xff] }
 0x190   :  { %4217 = vmatpush1.bf16.msra.mxu0 %v4216_v35  ;;  %v577_v35 = vlaneseq  ;;  %v1585_v14 = vld [vmem:[#allocation5 + $0xb98] sm:$0xff]  ;;  %v1590_v21 = vld [vmem:[#allocation5 + $0xbc0] sm:$0xff] }
 0x191   :  { %4465 = vmatpush1.bf16.msra.mxu1 %v4464_v36  ;;  %4219 = vmatprep.subr.bf16.mxu0 %v4218_v37 }
 0x192   :  { %4467 = vmatprep.subr.bf16.mxu1 %v4466_v41  ;;  %v5717_v36 = vshrl.u32 %v577_v35, 7  ;;  %v1543_v35 = vld [vmem:[#allocation5 + $0xa48] sm:$0xff] }
 0x194   :  { %4221 = vmatpush1.bf16.msra.mxu0 %v4220_v48  ;;  %v579_v37 = vsub.s32 0, %v5717_v36  ;;  %v583_v39 = vsub.s32 1, %v5717_v36  ;;  %v591_v40 = vsub.s32 3, %v5717_v36 }
 0x195   :  { %4469 = vmatpush1.bf16.msra.mxu1 %v4468_v49  ;;  %4223 = vmatprep.subr.bf16.mxu0 %v4222_v50  ;;  %v1470_v50 = vld [vmem:[#allocation5 + $0x800] sm:$0xff] }
 0x196   :  { %4471 = vmatprep.subr.bf16.mxu1 %v4470_v54  ;;  %v580_v41 = vrot.slane %v5720_v38, %v579_v37  ;;  %v584_v43 = vrot.slane %v5720_v38, %v583_v39  ;;  %v592_v44 = vrot.slane %v5720_v38, %v591_v40  ;;  %v1472_v54 = vld [vmem:[#allocation5 + $0x810] sm:$0xff]  ;;  %v4240_v63 = vpack.c.bf16 %v1478_v53, %v1470_v50  ;;  %v1537_v40 = vld [vmem:[#allocation5 + $0xa18] sm:$0xff]  ;;  %v1551_v53 = vld [vmem:[#allocation5 + $0xa88] sm:$0xff] }
 0x197   :  { %v4488_v0 = vpack.c.bf16 %v1480_v55, %v1472_v54  ;;  %v1559_v54 = vld [vmem:[#allocation5 + $0xac8] sm:$0xff]  ;;  %v1553_v55 = vld [vmem:[#allocation5 + $0xa98] sm:$0xff] }
 0x198   :  { %4225 = vmatpush1.bf16.msra.mxu0 %v4224_v60  ;;  %v1495_v60 = vld [vmem:[#allocation5 + $0x8c8] sm:$0xff] }
 0x199   :  { %4473 = vmatpush1.bf16.msra.mxu1 %v4472_v61  ;;  %4227 = vmatprep.subr.bf16.mxu0 %v4226_v15  ;;  %v1489_v61 = vld [vmem:[#allocation5 + $0x898] sm:$0xff] }
 0x19a   :  { %4475 = vmatprep.subr.bf16.mxu1 %v4474_v1  ;;  %v1497_v15 = vld [vmem:[#allocation5 + $0x8d8] sm:$0xff]  ;;  %v1486_v1 = vld [vmem:[#allocation5 + $0x880] sm:$0xff] }
 0x19b   :  { %v4244_v11 = vpack.c.bf16 %v1494_v16, %v1486_v1  ;;  %v1575_v1 = vld [vmem:[#allocation5 + $0xb48] sm:$0xff]  ;;  %v1569_v16 = vld [vmem:[#allocation5 + $0xb18] sm:$0xff] }
 0x19c   :  { %4229 = vmatpush1.bf16.msra.mxu0 %v4228_v5 }
 0x19d   :  { %4477 = vmatpush1.bf16.msra.mxu1 %v4476_v6  ;;  %4231 = vmatprep.subr.bf16.mxu0 %v4230_v7  ;;  %v4242_v6 = vpack.c.bf16 %v1495_v60, %v1487_v58  ;;  %v4490_v7 = vpack.c.bf16 %v1497_v15, %v1489_v61  ;;  %v1558_v60 = vld [vmem:[#allocation5 + $0xac0] sm:$0xff]  ;;  %v4258_v61 = vpack.c.bf16 %v1559_v54, %v1551_v53 }
 0x19e   :  { %4479 = vmatprep.subr.bf16.mxu1 %v4478_v10  ;;  %v1622_v53 = vld [vmem:[#allocation5 + $0xcc0] sm:$0xff] }
 0x1a0   :  { %4233 = vmatpush1.bf16.msra.mxu0 %v4232_v18  ;;  %v4494_v18 = vpack.c.bf16 %v1513_v9, %v1505_v42  ;;  %v4510_v42 = vpack.c.bf16 %v1577_v27, %v1569_v16  ;;  %v1568_v9 = vld [vmem:[#allocation5 + $0xb10] sm:$0xff] }
 0x1a1   :  { %4481 = vmatpush1.bf16.msra.mxu1 %v4480_v19  ;;  %4235 = vmatprep.subr.bf16.mxu0 %v4234_v20  ;;  %v1504_v19 = vld [vmem:[#allocation5 + $0x910] sm:$0xff] }
 0x1a2   :  { %4483 = vmatprep.subr.bf16.mxu1 %v4482_v24  ;;  %v1512_v20 = vld [vmem:[#allocation5 + $0x950] sm:$0xff]  ;;  %v1529_v24 = vld [vmem:[#allocation5 + $0x9d8] sm:$0xff] }
 0x1a3   :  { %v4496_v26 = vpack.c.bf16 %v1512_v20, %v1504_v19  ;;  %v1582_v20 = vld [vmem:[#allocation5 + $0xb80] sm:$0xff]  ;;  %v1632_v27 = vld [vmem:[#allocation5 + $0xd10] sm:$0xff] }
 0x1a4   :  { %4237 = vmatpush1.bf16.msra.mxu0 %v4236_v31  ;;  %v4498_v31 = vpack.c.bf16 %v1529_v24, %v1521_v23  ;;  %v1584_v24 = vld [vmem:[#allocation5 + $0xb90] sm:$0xff] }
 0x1a5   :  { %4485 = vmatpush1.bf16.msra.mxu1 %v4484_v32  ;;  %4239 = vmatprep.subr.bf16.mxu0 %v4238_v33  ;;  %v1520_v32 = vld [vmem:[#allocation5 + $0x990] sm:$0xff] }
 0x1a6   :  { %4487 = vmatprep.subr.bf16.mxu1 %v4486_v34  ;;  %v1528_v33 = vld [vmem:[#allocation5 + $0x9d0] sm:$0xff]  ;;  %v1535_v34 = vld [vmem:[#allocation5 + $0xa08] sm:$0xff] }
 0x1ce   :  { %v758_v45 = vpop.f32.mrb[0].mxu0 }
 0x1cf   :  { %v5263_v47 = vadd.f32 %v758_v45, %v580_v41  ;;  %v5733_v48 = vpop.f32.mrb[0].mxu1  ;;  %v760_v49 = vpop.f32.mrb[1].mxu0  ;;  %v1545_v41 = vld [vmem:[#allocation5 + $0xa58] sm:$0xff]  ;;  %v1534_v45 = vld [vmem:[#allocation5 + $0xa00] sm:$0xff] }
 0x1d0   :  { %v5264_v51 = vadd.f32 %v760_v49, %v584_v43  ;;  %v902_v52 = vpop.f32.mrb[1].mxu1  ;;  %v4252_v43 = vpack.c.bf16 %v1526_v29, %v1518_v28  ;;  %v4254_v49 = vpack.c.bf16 %v1543_v35, %v1535_v34  ;;  %v4502_v50 = vpack.c.bf16 %v1545_v41, %v1537_v40  ;;  %v1607_v28 = vld [vmem:[#allocation5 + $0xc48] sm:$0xff]  ;;  %v1601_v29 = vld [vmem:[#allocation5 + $0xc18] sm:$0xff]  ;;  %v1606_v34 = vld [vmem:[#allocation5 + $0xc40] sm:$0xff] }
 0x1d1   :  { %v1198_v56 = vmul.f32 %v5263_v47, %v5731_v46  ;;  %v5266_v57 = vadd.f32 %v902_v52, %v592_v44  ;;  %vm1189_vm1 = vcmp.ge.f32.partialorder %v5263_v47, 0.0  ;;  %v4500_v44 = vpack.c.bf16 %v1528_v33, %v1520_v32  ;;  %v1544_v52 = vld [vmem:[#allocation5 + $0xa50] sm:$0xff]  ;;  %v1598_v33 = vld [vmem:[#allocation5 + $0xc00] sm:$0xff] }
 0x1d2   :  { %vm1190_vm2 = vcmp.ge.f32.partialorder %v5264_v51, 0.0  ;;  %v1199_v59 = vmul.f32 %v5264_v51, %v5731_v46  ;;  %v1600_v41 = vld [vmem:[#allocation5 + $0xc10] sm:$0xff] }
 0x1d3   :  { %v1201_v62 = vmul.f32 %v5266_v57, %v5731_v46  ;;  %vm1192_vm3 = vcmp.ge.f32.partialorder %v5266_v57, 0.0  ;;  %v5743_v5 = vsel %vm1189_vm1, %v5263_v47, %v1198_v56  ;;  %v1542_v47 = vld [vmem:[#allocation5 + $0xa40] sm:$0xff]  ;;  %v1561_v56 = vld [vmem:[#allocation5 + $0xad8] sm:$0xff] }
 0x1d4   :  { %v5738_v2 = vsel %vm1190_vm2, %v5264_v51, %v1199_v59  ;;  %v1536_v51 = vld [vmem:[#allocation5 + $0xa10] sm:$0xff]  ;;  %v1550_v59 = vld [vmem:[#allocation5 + $0xa80] sm:$0xff]  ;;  %v4506_v15 = vpack.c.bf16 %v1561_v56, %v1553_v55 }
 0x1d5   :  { %2282 = vmatprep.mubr.f32.mxu0 %v5738_v2  ;;  %2566 = vmatprep.mubr.f32.mxu1 %v5738_v2  ;;  %v5748_v10 = vsel %vm1192_vm3, %v5266_v57, %v1201_v62  ;;  %v4256_v57 = vpack.c.bf16 %v1542_v47, %v1534_v45  ;;  %v4504_v58 = vpack.c.bf16 %v1544_v52, %v1536_v51  ;;  %v1552_v62 = vld [vmem:[#allocation5 + $0xa90] sm:$0xff]  ;;  %v1623_v45 = vld [vmem:[#allocation5 + $0xcc8] sm:$0xff]  ;;  %v1617_v47 = vld [vmem:[#allocation5 + $0xc98] sm:$0xff] }
 0x1d6   :  { %2283 = vmatmul.mubr.f32.vlgmr.msra.gmra.mrb[4].mxu0 %v5743_v5  ;;  %2567 = vmatmul.mubr.f32.vlgmr.msra.gmra.mrb[4].mxu1 %v5743_v5  ;;  %v4260_v3 = vpack.c.bf16 %v1558_v60, %v1550_v59  ;;  %v1614_v52 = vld [vmem:[#allocation5 + $0xc80] sm:$0xff]  ;;  %v1616_v56 = vld [vmem:[#allocation5 + $0xc90] sm:$0xff]  ;;  %v1639_v59 = vld [vmem:[#allocation5 + $0xd48] sm:$0xff] }
 0x1d7   :  { %4241 = vmatpush1.bf16.msra.mxu0 %v4240_v63  ;;  %4489 = vmatpush1.bf16.msra.mxu1 %v4488_v0  ;;  %v1560_v63 = vld [vmem:[#allocation5 + $0xad0] sm:$0xff]  ;;  %v1567_v0 = vld [vmem:[#allocation5 + $0xb08] sm:$0xff]  ;;  %v1633_v60 = vld [vmem:[#allocation5 + $0xd18] sm:$0xff] }
 0x1d8   :  { %2353 = vmatprep.mubr.f32.mxu0 %v5748_v10  ;;  %2637 = vmatprep.mubr.f32.mxu1 %v5748_v10  ;;  %v4508_v4 = vpack.c.bf16 %v1560_v63, %v1552_v62  ;;  %v4262_v8 = vpack.c.bf16 %v1575_v1, %v1567_v0  ;;  %v1630_v63 = vld [vmem:[#allocation5 + $0xd00] sm:$0xff] }
 0x1d9   :  { %4243 = vmatprep.subr.bf16.mxu0 %v4242_v6  ;;  %4491 = vmatprep.subr.bf16.mxu1 %v4490_v7  ;;  %v1566_v6 = vld [vmem:[#allocation5 + $0xb00] sm:$0xff] }
 0x1da   :  { %v1574_v7 = vld [vmem:[#allocation5 + $0xb40] sm:$0xff] }
 0x1db   :  { %4245 = vmatpush1.bf16.msra.mxu0 %v4244_v11  ;;  %4493 = vmatpush1.bf16.msra.mxu1 %v4492_v12  ;;  %v1576_v11 = vld [vmem:[#allocation5 + $0xb50] sm:$0xff]  ;;  %v1583_v12 = vld [vmem:[#allocation5 + $0xb88] sm:$0xff]  ;;  %v1638_v0 = vld [vmem:[#allocation5 + $0xd40] sm:$0xff] }
 0x1dc   :  { %4247 = vmatprep.subr.bf16.mxu0 %v4246_v17  ;;  %4495 = vmatprep.subr.bf16.mxu1 %v4494_v18  ;;  %v1593_v17 = vld [vmem:[#allocation5 + $0xbd8] sm:$0xff]  ;;  %v4264_v18 = vpack.c.bf16 %v1574_v7, %v1566_v6  ;;  %v4512_v19 = vpack.c.bf16 %v1576_v11, %v1568_v9  ;;  %v4266_v22 = vpack.c.bf16 %v1591_v13, %v1583_v12  ;;  %v1655_v6 = vld [vmem:[#allocation5 + $0xdc8] sm:$0xff]  ;;  %v1646_v11 = vld [vmem:[#allocation5 + $0xd80] sm:$0xff] }
 0x1dd   :  { %v4514_v23 = vpack.c.bf16 %v1593_v17, %v1585_v14  ;;  %v1649_v7 = vld [vmem:[#allocation5 + $0xd98] sm:$0xff]  ;;  %v1654_v12 = vld [vmem:[#allocation5 + $0xdc0] sm:$0xff]  ;;  %v1648_v17 = vld [vmem:[#allocation5 + $0xd90] sm:$0xff] }
 0x1df   :  { %4249 = vmatpush1.bf16.msra.mxu0 %v4248_v25  ;;  %4497 = vmatpush1.bf16.msra.mxu1 %v4496_v26  ;;  %v1592_v25 = vld [vmem:[#allocation5 + $0xbd0] sm:$0xff]  ;;  %v1599_v26 = vld [vmem:[#allocation5 + $0xc08] sm:$0xff] }
 0x1e0   :  { %4251 = vmatprep.subr.bf16.mxu0 %v4250_v30  ;;  %4499 = vmatprep.subr.bf16.mxu1 %v4498_v31  ;;  %v1609_v30 = vld [vmem:[#allocation5 + $0xc58] sm:$0xff]  ;;  %v4268_v31 = vpack.c.bf16 %v1590_v21, %v1582_v20  ;;  %v4516_v32 = vpack.c.bf16 %v1592_v25, %v1584_v24  ;;  %v4270_v35 = vpack.c.bf16 %v1607_v28, %v1599_v26  ;;  %v1671_v20 = vld [vmem:[#allocation5 + $0xe48] sm:$0xff]  ;;  %v1662_v25 = vld [vmem:[#allocation5 + $0xe00] sm:$0xff] }
 0x1e1   :  { %v4518_v40 = vpack.c.bf16 %v1609_v30, %v1601_v29  ;;  %v1665_v21 = vld [vmem:[#allocation5 + $0xe18] sm:$0xff]  ;;  %v1670_v26 = vld [vmem:[#allocation5 + $0xe40] sm:$0xff]  ;;  %v1664_v30 = vld [vmem:[#allocation5 + $0xe10] sm:$0xff] }
 0x1e3   :  { %4253 = vmatpush1.bf16.msra.mxu0 %v4252_v43  ;;  %4501 = vmatpush1.bf16.msra.mxu1 %v4500_v44  ;;  %v1608_v43 = vld [vmem:[#allocation5 + $0xc50] sm:$0xff]  ;;  %v1615_v44 = vld [vmem:[#allocation5 + $0xc88] sm:$0xff] }
 0x1e4   :  { %4255 = vmatprep.subr.bf16.mxu0 %v4254_v49  ;;  %4503 = vmatprep.subr.bf16.mxu1 %v4502_v50  ;;  %v1625_v49 = vld [vmem:[#allocation5 + $0xcd8] sm:$0xff]  ;;  %v4272_v50 = vpack.c.bf16 %v1606_v34, %v1598_v33  ;;  %v4520_v51 = vpack.c.bf16 %v1608_v43, %v1600_v41  ;;  %v4274_v54 = vpack.c.bf16 %v1623_v45, %v1615_v44  ;;  %v1687_v33 = vld [vmem:[#allocation5 + $0xec8] sm:$0xff]  ;;  %v1678_v43 = vld [vmem:[#allocation5 + $0xe80] sm:$0xff] }
 0x1e5   :  { %v4522_v55 = vpack.c.bf16 %v1625_v49, %v1617_v47  ;;  %v1681_v34 = vld [vmem:[#allocation5 + $0xe98] sm:$0xff]  ;;  %v1686_v44 = vld [vmem:[#allocation5 + $0xec0] sm:$0xff]  ;;  %v1680_v49 = vld [vmem:[#allocation5 + $0xe90] sm:$0xff] }
 0x1e7   :  { %4257 = vmatpush1.bf16.msra.mxu0 %v4256_v57  ;;  %4505 = vmatpush1.bf16.msra.mxu1 %v4504_v58  ;;  %v1624_v57 = vld [vmem:[#allocation5 + $0xcd0] sm:$0xff]  ;;  %v1631_v58 = vld [vmem:[#allocation5 + $0xd08] sm:$0xff] }
 0x1e8   :  { %4259 = vmatprep.subr.bf16.mxu0 %v4258_v61  ;;  %4507 = vmatprep.subr.bf16.mxu1 %v4506_v15  ;;  %v1641_v61 = vld [vmem:[#allocation5 + $0xd58] sm:$0xff]  ;;  %v4276_v15 = vpack.c.bf16 %v1622_v53, %v1614_v52  ;;  %v4524_v62 = vpack.c.bf16 %v1624_v57, %v1616_v56  ;;  %v4278_v1 = vpack.c.bf16 %v1639_v59, %v1631_v58  ;;  %v587_v52 = vsub.s32 2, %v5717_v36  ;;  %v1703_v53 = vld [vmem:[#allocation5 + $0xf48] sm:$0xff]  ;;  %v1694_v58 = vld [vmem:[#allocation5 + $0xf00] sm:$0xff] }
 0x1e9   :  { %v4526_v16 = vpack.c.bf16 %v1641_v61, %v1633_v60  ;;  %v4292_v56 = vpack.c.bf16 %v1686_v44, %v1678_v43  ;;  %v1702_v59 = vld [vmem:[#allocation5 + $0xf40] sm:$0xff]  ;;  %v1744_v43 = vld [vmem:[#allocation5 + $0x1090] sm:$0xff] }
 0x1ea   :  { %v1752_v44 = vld [vmem:[#allocation5 + $0x10d0] sm:$0xff] }
 0x1eb   :  { %4261 = vmatpush1.bf16.msra.mxu0 %v4260_v3  ;;  %4509 = vmatpush1.bf16.msra.mxu1 %v4508_v4  ;;  %v1640_v3 = vld [vmem:[#allocation5 + $0xd50] sm:$0xff]  ;;  %v1647_v4 = vld [vmem:[#allocation5 + $0xd88] sm:$0xff] }
 0x1ec   :  { %4263 = vmatprep.subr.bf16.mxu0 %v4262_v8  ;;  %4511 = vmatprep.subr.bf16.mxu1 %v4510_v42  ;;  %v1657_v8 = vld [vmem:[#allocation5 + $0xdd8] sm:$0xff]  ;;  %v4280_v42 = vpack.c.bf16 %v1638_v0, %v1630_v63  ;;  %v4528_v9 = vpack.c.bf16 %v1640_v3, %v1632_v27  ;;  %v4282_v13 = vpack.c.bf16 %v1655_v6, %v1647_v4  ;;  %v1711_v63 = vld [vmem:[#allocation5 + $0xf88] sm:$0xff]  ;;  %v1710_v6 = vld [vmem:[#allocation5 + $0xf80] sm:$0xff] }
 0x1ed   :  { %v4530_v14 = vpack.c.bf16 %v1657_v8, %v1649_v7  ;;  %v588_v0 = vrot.slane %v5720_v38, %v587_v52  ;;  %v1721_v27 = vld [vmem:[#allocation5 + $0xfd8] sm:$0xff]  ;;  %v4296_v3 = vpack.c.bf16 %v1702_v59, %v1694_v58  ;;  %v1718_v7 = vld [vmem:[#allocation5 + $0xfc0] sm:$0xff]  ;;  %v1760_v58 = vld [vmem:[#allocation5 + $0x1110] sm:$0xff] }
 0x1ee   :  { %v1768_v59 = vld [vmem:[#allocation5 + $0x1150] sm:$0xff] }
 0x1ef   :  { %4265 = vmatpush1.bf16.msra.mxu0 %v4264_v18  ;;  %4513 = vmatpush1.bf16.msra.mxu1 %v4512_v19  ;;  %v1656_v18 = vld [vmem:[#allocation5 + $0xdd0] sm:$0xff]  ;;  %v1663_v19 = vld [vmem:[#allocation5 + $0xe08] sm:$0xff] }
 0x1f0   :  { %4267 = vmatprep.subr.bf16.mxu0 %v4266_v22  ;;  %4515 = vmatprep.subr.bf16.mxu1 %v4514_v23  ;;  %v1673_v22 = vld [vmem:[#allocation5 + $0xe58] sm:$0xff]  ;;  %v4284_v23 = vpack.c.bf16 %v1654_v12, %v1646_v11  ;;  %v4532_v24 = vpack.c.bf16 %v1656_v18, %v1648_v17  ;;  %v4286_v28 = vpack.c.bf16 %v1671_v20, %v1663_v19  ;;  %v1720_v11 = vld [vmem:[#allocation5 + $0xfd0] sm:$0xff]  ;;  %v1727_v12 = vld [vmem:[#allocation5 + $0x1008] sm:$0xff] }
 0x1f1   :  { %v4534_v29 = vpack.c.bf16 %v1673_v22, %v1665_v21  ;;  %v1729_v17 = vld [vmem:[#allocation5 + $0x1018] sm:$0xff]  ;;  %v4300_v19 = vpack.c.bf16 %v1718_v7, %v1710_v6  ;;  %v1726_v21 = vld [vmem:[#allocation5 + $0x1000] sm:$0xff]  ;;  %v1784_v6 = vld [vmem:[#allocation5 + $0x11d0] sm:$0xff] }
 0x1f2   :  { %v1737_v18 = vld [vmem:[#allocation5 + $0x1058] sm:$0xff]  ;;  %v1734_v22 = vld [vmem:[#allocation5 + $0x1040] sm:$0xff]  ;;  %v1791_v7 = vld [vmem:[#allocation5 + $0x1208] sm:$0xff] }
 0x1f3   :  { %4269 = vmatpush1.bf16.msra.mxu0 %v4268_v31  ;;  %4517 = vmatpush1.bf16.msra.mxu1 %v4516_v32  ;;  %v1672_v31 = vld [vmem:[#allocation5 + $0xe50] sm:$0xff]  ;;  %v1679_v32 = vld [vmem:[#allocation5 + $0xe88] sm:$0xff] }
 0x1f4   :  { %4271 = vmatprep.subr.bf16.mxu0 %v4270_v35  ;;  %4519 = vmatprep.subr.bf16.mxu1 %v4518_v40  ;;  %v1689_v35 = vld [vmem:[#allocation5 + $0xed8] sm:$0xff]  ;;  %v4288_v40 = vpack.c.bf16 %v1670_v26, %v1662_v25  ;;  %v4536_v41 = vpack.c.bf16 %v1672_v31, %v1664_v30  ;;  %v4290_v45 = vpack.c.bf16 %v1687_v33, %v1679_v32  ;;  %v1728_v25 = vld [vmem:[#allocation5 + $0x1010] sm:$0xff]  ;;  %v1751_v30 = vld [vmem:[#allocation5 + $0x10c8] sm:$0xff] }
 0x1f5   :  { %v4538_v47 = vpack.c.bf16 %v1689_v35, %v1681_v34  ;;  %v1736_v26 = vld [vmem:[#allocation5 + $0x1050] sm:$0xff]  ;;  %v1753_v31 = vld [vmem:[#allocation5 + $0x10d8] sm:$0xff]  ;;  %v4304_v32 = vpack.c.bf16 %v1734_v22, %v1726_v21  ;;  %v1742_v34 = vld [vmem:[#allocation5 + $0x1080] sm:$0xff] }
 0x1f6   :  { %v4552_v33 = vpack.c.bf16 %v1736_v26, %v1728_v25  ;;  %v1750_v35 = vld [vmem:[#allocation5 + $0x10c0] sm:$0xff]  ;;  %v1807_v21 = vld [vmem:[#allocation5 + $0x1288] sm:$0xff] }
 0x1f7   :  { %4273 = vmatpush1.bf16.msra.mxu0 %v4272_v50  ;;  %4521 = vmatpush1.bf16.msra.mxu1 %v4520_v51  ;;  %v1688_v50 = vld [vmem:[#allocation5 + $0xed0] sm:$0xff]  ;;  %v1695_v51 = vld [vmem:[#allocation5 + $0xf08] sm:$0xff]  ;;  %v4308_v52 = vpack.c.bf16 %v1750_v35, %v1742_v34  ;;  %v1825_v35 = vld [vmem:[#allocation5 + $0x1318] sm:$0xff] }
 0x1f8   :  { %4275 = vmatprep.subr.bf16.mxu0 %v4274_v54  ;;  %4523 = vmatprep.subr.bf16.mxu1 %v4522_v55  ;;  %v1697_v54 = vld [vmem:[#allocation5 + $0xf18] sm:$0xff]  ;;  %v4540_v57 = vpack.c.bf16 %v1688_v50, %v1680_v49  ;;  %v4294_v60 = vpack.c.bf16 %v1703_v53, %v1695_v51  ;;  %v1767_v49 = vld [vmem:[#allocation5 + $0x1148] sm:$0xff]  ;;  %v4556_v53 = vpack.c.bf16 %v1752_v44, %v1744_v43  ;;  %v1822_v44 = vld [vmem:[#allocation5 + $0x1300] sm:$0xff] }
 0x1f9   :  { %v1705_v55 = vld [vmem:[#allocation5 + $0xf58] sm:$0xff]  ;;  %v1815_v22 = vld [vmem:[#allocation5 + $0x12c8] sm:$0xff] }
 0x1fa   :  { %v4542_v61 = vpack.c.bf16 %v1705_v55, %v1697_v54  ;;  %v1761_v50 = vld [vmem:[#allocation5 + $0x1118] sm:$0xff]  ;;  %v1758_v54 = vld [vmem:[#allocation5 + $0x1100] sm:$0xff]  ;;  %v1831_v34 = vld [vmem:[#allocation5 + $0x1348] sm:$0xff] }
 0x1fb   :  { %4277 = vmatpush1.bf16.msra.mxu0 %v4276_v15  ;;  %4525 = vmatpush1.bf16.msra.mxu1 %v4524_v62  ;;  %v1696_v15 = vld [vmem:[#allocation5 + $0xf10] sm:$0xff]  ;;  %v1769_v51 = vld [vmem:[#allocation5 + $0x1158] sm:$0xff]  ;;  %v1766_v55 = vld [vmem:[#allocation5 + $0x1140] sm:$0xff] }
 0x1fc   :  { %4279 = vmatprep.subr.bf16.mxu0 %v4278_v1  ;;  %4527 = vmatprep.subr.bf16.mxu1 %v4526_v16  ;;  %v1704_v62 = vld [vmem:[#allocation5 + $0xf50] sm:$0xff]  ;;  %v1719_v1 = vld [vmem:[#allocation5 + $0xfc8] sm:$0xff]  ;;  %v1713_v16 = vld [vmem:[#allocation5 + $0xf98] sm:$0xff] }
 0x1fd   :  { %v4544_v4 = vpack.c.bf16 %v1704_v62, %v1696_v15  ;;  %v4298_v8 = vpack.c.bf16 %v1719_v1, %v1711_v63  ;;  %v1777_v15 = vld [vmem:[#allocation5 + $0x1198] sm:$0xff]  ;;  %v4312_v63 = vpack.c.bf16 %v1766_v55, %v1758_v54  ;;  %v1774_v1 = vld [vmem:[#allocation5 + $0x1180] sm:$0xff]  ;;  %v1847_v54 = vld [vmem:[#allocation5 + $0x13c8] sm:$0xff] }
 0x1fe   :  { %v1785_v62 = vld [vmem:[#allocation5 + $0x11d8] sm:$0xff] }
 0x1ff   :  { %4281 = vmatpush1.bf16.msra.mxu0 %v4280_v42  ;;  %4529 = vmatpush1.bf16.msra.mxu1 %v4528_v9  ;;  %v4546_v42 = vpack.c.bf16 %v1721_v27, %v1713_v16  ;;  %v1712_v9 = vld [vmem:[#allocation5 + $0xf90] sm:$0xff]  ;;  %v1782_v16 = vld [vmem:[#allocation5 + $0x11c0] sm:$0xff]  ;;  %v1841_v55 = vld [vmem:[#allocation5 + $0x1398] sm:$0xff] }
 0x200   :  { %4283 = vmatprep.subr.bf16.mxu0 %v4282_v13  ;;  %4531 = vmatprep.subr.bf16.mxu1 %v4530_v14  ;;  %v5265_v13 = vadd.f32 %v5733_v48, %v588_v0  ;;  %v1735_v14 = vld [vmem:[#allocation5 + $0x1048] sm:$0xff]  ;;  %v4548_v20 = vpack.c.bf16 %v1720_v11, %v1712_v9  ;;  %v1745_v48 = vld [vmem:[#allocation5 + $0x1098] sm:$0xff]  ;;  %v4560_v0 = vpack.c.bf16 %v1768_v59, %v1760_v58  ;;  %v1838_v59 = vld [vmem:[#allocation5 + $0x1380] sm:$0xff] }
 0x201   :  { %v1801_v9 = vld [vmem:[#allocation5 + $0x1258] sm:$0xff]  ;;  %v4316_v11 = vpack.c.bf16 %v1782_v16, %v1774_v1  ;;  %v1863_v1 = vld [vmem:[#allocation5 + $0x1448] sm:$0xff] }
 0x202   :  { %vm1191_vm4 = vcmp.ge.f32.partialorder %v5265_v13, 0.0  ;;  %v1857_v16 = vld [vmem:[#allocation5 + $0x1418] sm:$0xff] }
 0x203   :  { %4285 = vmatpush1.bf16.msra.mxu0 %v4284_v23  ;;  %4533 = vmatpush1.bf16.msra.mxu1 %v4532_v24  ;;  %v4302_v23 = vpack.c.bf16 %v1735_v14, %v1727_v12  ;;  %v4550_v24 = vpack.c.bf16 %v1737_v18, %v1729_v17  ;;  %v1798_v14 = vld [vmem:[#allocation5 + $0x1240] sm:$0xff] }
 0x204   :  { %4287 = vmatprep.subr.bf16.mxu0 %v4286_v28  ;;  %4535 = vmatprep.subr.bf16.mxu1 %v4534_v29  ;;  %v1743_v28 = vld [vmem:[#allocation5 + $0x1088] sm:$0xff]  ;;  %v1200_v29 = vmul.f32 %v5265_v13, %v5731_v46 }
 0x207   :  { %4289 = vmatpush1.bf16.msra.mxu0 %v4288_v40  ;;  %4537 = vmatpush1.bf16.msra.mxu1 %v4536_v41  ;;  %v4306_v40 = vpack.c.bf16 %v1751_v30, %v1743_v28  ;;  %v4554_v41 = vpack.c.bf16 %v1753_v31, %v1745_v48  ;;  %v1806_v28 = vld [vmem:[#allocation5 + $0x1280] sm:$0xff]  ;;  %v4322_v30 = vpack.c.bf16 %v1815_v22, %v1807_v21  ;;  %v1808_v31 = vld [vmem:[#allocation5 + $0x1290] sm:$0xff] }
 0x208   :  { %4291 = vmatprep.subr.bf16.mxu0 %v4290_v45  ;;  %4539 = vmatprep.subr.bf16.mxu1 %v4538_v47  ;;  %v1759_v45 = vld [vmem:[#allocation5 + $0x1108] sm:$0xff]  ;;  %v5756_v47 = vsel %vm1191_vm4, %v5265_v13, %v1200_v29  ;;  %v1790_v13 = vld [vmem:[#allocation5 + $0x1200] sm:$0xff] }
 0x209   :  { %v4320_v25 = vpack.c.bf16 %v1798_v14, %v1790_v13  ;;  %v1814_v29 = vld [vmem:[#allocation5 + $0x12c0] sm:$0xff]  ;;  %v1879_v13 = vld [vmem:[#allocation5 + $0x14c8] sm:$0xff]  ;;  %v1873_v14 = vld [vmem:[#allocation5 + $0x1498] sm:$0xff] }
 0x20a   :  { %v1878_v21 = vld [vmem:[#allocation5 + $0x14c0] sm:$0xff] }
 0x20b   :  { %4293 = vmatpush1.bf16.msra.mxu0 %v4292_v56  ;;  %4541 = vmatpush1.bf16.msra.mxu1 %v4540_v57  ;;  %v4310_v56 = vpack.c.bf16 %v1767_v49, %v1759_v45  ;;  %v4558_v57 = vpack.c.bf16 %v1769_v51, %v1761_v50  ;;  %v1830_v45 = vld [vmem:[#allocation5 + $0x1340] sm:$0xff]  ;;  %v1824_v51 = vld [vmem:[#allocation5 + $0x1310] sm:$0xff] }
 0x20c   :  { %4295 = vmatprep.subr.bf16.mxu0 %v4294_v60  ;;  %4543 = vmatprep.subr.bf16.mxu1 %v4542_v61  ;;  %v1775_v60 = vld [vmem:[#allocation5 + $0x1188] sm:$0xff] }
 0x20d   :  { %v1783_v61 = vld [vmem:[#allocation5 + $0x11c8] sm:$0xff] }
 0x20e   :  { %v4314_v27 = vpack.c.bf16 %v1783_v61, %v1775_v60  ;;  %v1846_v60 = vld [vmem:[#allocation5 + $0x13c0] sm:$0xff] }
 0x20f   :  { %4297 = vmatpush1.bf16.msra.mxu0 %v4296_v3  ;;  %4545 = vmatpush1.bf16.msra.mxu1 %v4544_v4  ;;  %v4562_v3 = vpack.c.bf16 %v1785_v62, %v1777_v15  ;;  %v1776_v4 = vld [vmem:[#allocation5 + $0x1190] sm:$0xff] }
 0x210   :  { %4299 = vmatprep.subr.bf16.mxu0 %v4298_v8  ;;  %4547 = vmatprep.subr.bf16.mxu1 %v4546_v42  ;;  %v1799_v8 = vld [vmem:[#allocation5 + $0x1248] sm:$0xff]  ;;  %v1793_v42 = vld [vmem:[#allocation5 + $0x1218] sm:$0xff]  ;;  %v4564_v12 = vpack.c.bf16 %v1784_v6, %v1776_v4  ;;  %v1840_v62 = vld [vmem:[#allocation5 + $0x1390] sm:$0xff] }
 0x211   :  { %v4318_v17 = vpack.c.bf16 %v1799_v8, %v1791_v7  ;;  %v4566_v18 = vpack.c.bf16 %v1801_v9, %v1793_v42  ;;  %v1854_v6 = vld [vmem:[#allocation5 + $0x1400] sm:$0xff]  ;;  %v1856_v9 = vld [vmem:[#allocation5 + $0x1410] sm:$0xff] }
 0x212   :  { %v1862_v7 = vld [vmem:[#allocation5 + $0x1440] sm:$0xff] }
 0x213   :  { %4301 = vmatpush1.bf16.msra.mxu0 %v4300_v19  ;;  %4549 = vmatpush1.bf16.msra.mxu1 %v4548_v20  ;;  %v1792_v19 = vld [vmem:[#allocation5 + $0x1210] sm:$0xff] }
 0x214   :  { %4303 = vmatprep.subr.bf16.mxu0 %v4302_v23  ;;  %4551 = vmatprep.subr.bf16.mxu1 %v4550_v24  ;;  %v1800_v20 = vld [vmem:[#allocation5 + $0x1250] sm:$0xff]  ;;  %v1809_v23 = vld [vmem:[#allocation5 + $0x1298] sm:$0xff] }
 0x215   :  { %v1817_v24 = vld [vmem:[#allocation5 + $0x12d8] sm:$0xff]  ;;  %v4568_v26 = vpack.c.bf16 %v1800_v20, %v1792_v19  ;;  %v1870_v20 = vld [vmem:[#allocation5 + $0x1480] sm:$0xff] }
 0x216   :  { %2354 = vmatmul.mubr.f32.vlgmr.msra.gmra.mrb[4].mxu0 %v5756_v47  ;;  %2638 = vmatmul.mubr.f32.vlgmr.msra.gmra.mrb[4].mxu1 %v5756_v47  ;;  %v4570_v48 = vpack.c.bf16 %v1817_v24, %v1809_v23  ;;  %v1872_v24 = vld [vmem:[#allocation5 + $0x1490] sm:$0xff] }
 0x217   :  { %4305 = vmatpush1.bf16.msra.mxu0 %v4304_v32  ;;  %4553 = vmatpush1.bf16.msra.mxu1 %v4552_v33  ;;  %v1816_v32 = vld [vmem:[#allocation5 + $0x12d0] sm:$0xff]  ;;  %v1823_v33 = vld [vmem:[#allocation5 + $0x1308] sm:$0xff] }
 0x218   :  { %4307 = vmatprep.subr.bf16.mxu0 %v4306_v40  ;;  %4555 = vmatprep.subr.bf16.mxu1 %v4554_v41  ;;  %v1833_v40 = vld [vmem:[#allocation5 + $0x1358] sm:$0xff]  ;;  %v4324_v41 = vpack.c.bf16 %v1814_v29, %v1806_v28  ;;  %v4572_v43 = vpack.c.bf16 %v1816_v32, %v1808_v31  ;;  %v4326_v49 = vpack.c.bf16 %v1831_v34, %v1823_v33  ;;  %v1887_v28 = vld [vmem:[#allocation5 + $0x1508] sm:$0xff]  ;;  %v1886_v33 = vld [vmem:[#allocation5 + $0x1500] sm:$0xff] }
 0x219   :  { %v4574_v50 = vpack.c.bf16 %v1833_v40, %v1825_v35  ;;  %v1895_v29 = vld [vmem:[#allocation5 + $0x1548] sm:$0xff]  ;;  %v4340_v31 = vpack.c.bf16 %v1878_v21, %v1870_v20  ;;  %v1894_v34 = vld [vmem:[#allocation5 + $0x1540] sm:$0xff] }
 0x21a   :  { %v4342_v40 = vpack.c.bf16 %v1895_v29, %v1887_v28  ;;  %v1934_v21 = vld [vmem:[#allocation5 + $0x1680] sm:$0xff]  ;;  %v1951_v28 = vld [vmem:[#allocation5 + $0x1708] sm:$0xff]  ;;  %v595_v29 = vsub.s32 4, %v5717_v36 }
 0x21b   :  { %4309 = vmatpush1.bf16.msra.mxu0 %v4308_v52  ;;  %4557 = vmatpush1.bf16.msra.mxu1 %v4556_v53  ;;  %v1832_v52 = vld [vmem:[#allocation5 + $0x1350] sm:$0xff]  ;;  %v1839_v53 = vld [vmem:[#allocation5 + $0x1388] sm:$0xff] }
 0x21c   :  { %4311 = vmatprep.subr.bf16.mxu0 %v4310_v56  ;;  %4559 = vmatprep.subr.bf16.mxu1 %v4558_v57  ;;  %v1849_v56 = vld [vmem:[#allocation5 + $0x13d8] sm:$0xff]  ;;  %v4328_v57 = vpack.c.bf16 %v1830_v45, %v1822_v44  ;;  %v4576_v58 = vpack.c.bf16 %v1832_v52, %v1824_v51  ;;  %v4330_v61 = vpack.c.bf16 %v1847_v54, %v1839_v53  ;;  %v1896_v44 = vld [vmem:[#allocation5 + $0x1550] sm:$0xff]  ;;  %v1903_v45 = vld [vmem:[#allocation5 + $0x1588] sm:$0xff] }
 0x21d   :  { %v4578_v15 = vpack.c.bf16 %v1849_v56, %v1841_v55  ;;  %v1913_v51 = vld [vmem:[#allocation5 + $0x15d8] sm:$0xff]  ;;  %v4344_v55 = vpack.c.bf16 %v1894_v34, %v1886_v33 }
 0x21f   :  { %4313 = vmatpush1.bf16.msra.mxu0 %v4312_v63  ;;  %4561 = vmatpush1.bf16.msra.mxu1 %v4560_v0  ;;  %v1848_v63 = vld [vmem:[#allocation5 + $0x13d0] sm:$0xff]  ;;  %v1855_v0 = vld [vmem:[#allocation5 + $0x1408] sm:$0xff] }
 0x220   :  { %4315 = vmatprep.subr.bf16.mxu0 %v4314_v27  ;;  %4563 = vmatprep.subr.bf16.mxu1 %v4562_v3  ;;  %v1865_v27 = vld [vmem:[#allocation5 + $0x1458] sm:$0xff]  ;;  %v4332_v3 = vpack.c.bf16 %v1846_v60, %v1838_v59  ;;  %v4580_v4 = vpack.c.bf16 %v1848_v63, %v1840_v62  ;;  %v4334_v8 = vpack.c.bf16 %v1863_v1, %v1855_v0  ;;  %v1912_v62 = vld [vmem:[#allocation5 + $0x15d0] sm:$0xff]  ;;  %v1919_v63 = vld [vmem:[#allocation5 + $0x1608] sm:$0xff] }
 0x221   :  { %v4582_v42 = vpack.c.bf16 %v1865_v27, %v1857_v16  ;;  %v1927_v0 = vld [vmem:[#allocation5 + $0x1648] sm:$0xff]  ;;  %v1921_v1 = vld [vmem:[#allocation5 + $0x1618] sm:$0xff] }
 0x222   :  { %v1929_v16 = vld [vmem:[#allocation5 + $0x1658] sm:$0xff] }
 0x223   :  { %4317 = vmatpush1.bf16.msra.mxu0 %v4316_v11  ;;  %4565 = vmatpush1.bf16.msra.mxu1 %v4564_v12  ;;  %v1864_v11 = vld [vmem:[#allocation5 + $0x1450] sm:$0xff]  ;;  %v1871_v12 = vld [vmem:[#allocation5 + $0x1488] sm:$0xff] }
 0x224   :  { %4319 = vmatprep.subr.bf16.mxu0 %v4318_v17  ;;  %4567 = vmatprep.subr.bf16.mxu1 %v4566_v18  ;;  %v1881_v17 = vld [vmem:[#allocation5 + $0x14d8] sm:$0xff]  ;;  %v4336_v18 = vpack.c.bf16 %v1862_v7, %v1854_v6  ;;  %v4584_v19 = vpack.c.bf16 %v1864_v11, %v1856_v9  ;;  %v4338_v22 = vpack.c.bf16 %v1879_v13, %v1871_v12  ;;  %v1918_v6 = vld [vmem:[#allocation5 + $0x1600] sm:$0xff]  ;;  %v1920_v11 = vld [vmem:[#allocation5 + $0x1610] sm:$0xff] }
 0x225   :  { %v4586_v23 = vpack.c.bf16 %v1881_v17, %v1873_v14  ;;  %v1926_v7 = vld [vmem:[#allocation5 + $0x1640] sm:$0xff]  ;;  %v4598_v9 = vpack.c.bf16 %v1929_v16, %v1921_v1  ;;  %v1928_v12 = vld [vmem:[#allocation5 + $0x1650] sm:$0xff]  ;;  %v1935_v13 = vld [vmem:[#allocation5 + $0x1688] sm:$0xff] }
 0x226   :  { %v1943_v14 = vld [vmem:[#allocation5 + $0x16c8] sm:$0xff]  ;;  %v1937_v17 = vld [vmem:[#allocation5 + $0x1698] sm:$0xff]  ;;  %v4600_v20 = vpack.c.bf16 %v1928_v12, %v1920_v11  ;;  %v1982_v12 = vld [vmem:[#allocation5 + $0x1800] sm:$0xff] }
 0x227   :  { %4321 = vmatpush1.bf16.msra.mxu0 %v4320_v25  ;;  %4569 = vmatpush1.bf16.msra.mxu1 %v4568_v26  ;;  %v1880_v25 = vld [vmem:[#allocation5 + $0x14d0] sm:$0xff]  ;;  %v599_v26 = vsub.s32 5, %v5717_v36  ;;  %v1983_v1 = vld [vmem:[#allocation5 + $0x1808] sm:$0xff] }
 0x228   :  { %4323 = vmatprep.subr.bf16.mxu0 %v4322_v30  ;;  %4571 = vmatprep.subr.bf16.mxu1 %v4570_v48  ;;  %v1889_v30 = vld [vmem:[#allocation5 + $0x1518] sm:$0xff]  ;;  %v4588_v32 = vpack.c.bf16 %v1880_v25, %v1872_v24  ;;  %v1936_v25 = vld [vmem:[#allocation5 + $0x1690] sm:$0xff] }
 0x229   :  { %v1897_v48 = vld [vmem:[#allocation5 + $0x1558] sm:$0xff]  ;;  %v600_v35 = vrot.slane %v5720_v38, %v599_v26  ;;  %v1944_v26 = vld [vmem:[#allocation5 + $0x16d0] sm:$0xff] }
 0x22a   :  { %v4604_v34 = vpack.c.bf16 %v1944_v26, %v1936_v25  ;;  %v2006_v25 = vld [vmem:[#allocation5 + $0x18c0] sm:$0xff]  ;;  %v2000_v26 = vld [vmem:[#allocation5 + $0x1890] sm:$0xff] }
 0x22b   :  { %4325 = vmatpush1.bf16.msra.mxu0 %v4324_v41  ;;  %4573 = vmatpush1.bf16.msra.mxu1 %v4572_v43  ;;  %v4590_v41 = vpack.c.bf16 %v1897_v48, %v1889_v30  ;;  %v1888_v43 = vld [vmem:[#allocation5 + $0x1510] sm:$0xff]  ;;  %v1959_v30 = vld [vmem:[#allocation5 + $0x1748] sm:$0xff]  ;;  %v1953_v48 = vld [vmem:[#allocation5 + $0x1718] sm:$0xff] }
 0x22c   :  { %4327 = vmatprep.subr.bf16.mxu0 %v4326_v49  ;;  %4575 = vmatprep.subr.bf16.mxu1 %v4574_v50  ;;  %v1911_v49 = vld [vmem:[#allocation5 + $0x15c8] sm:$0xff]  ;;  %v1905_v50 = vld [vmem:[#allocation5 + $0x1598] sm:$0xff]  ;;  %v4592_v56 = vpack.c.bf16 %v1896_v44, %v1888_v43  ;;  %v1952_v44 = vld [vmem:[#allocation5 + $0x1710] sm:$0xff] }
 0x22d   :  { %v4346_v60 = vpack.c.bf16 %v1911_v49, %v1903_v45  ;;  %v1960_v45 = vld [vmem:[#allocation5 + $0x1750] sm:$0xff]  ;;  %v1967_v49 = vld [vmem:[#allocation5 + $0x1788] sm:$0xff] }
 0x22f   :  { %4329 = vmatpush1.bf16.msra.mxu0 %v4328_v57  ;;  %4577 = vmatpush1.bf16.msra.mxu1 %v4576_v58  ;;  %v1902_v57 = vld [vmem:[#allocation5 + $0x1580] sm:$0xff] }
 0x230   :  { %4331 = vmatprep.subr.bf16.mxu0 %v4330_v61  ;;  %4579 = vmatprep.subr.bf16.mxu1 %v4578_v15  ;;  %v1910_v58 = vld [vmem:[#allocation5 + $0x15c0] sm:$0xff]  ;;  %v4594_v61 = vpack.c.bf16 %v1913_v51, %v1905_v50  ;;  %v1904_v15 = vld [vmem:[#allocation5 + $0x1590] sm:$0xff] }
 0x231   :  { %v5775_v50 = vld [vmem:[#allocation8] sm:$0xff] }
 0x232   :  { %v596_v51 = vrot.slane %v5775_v50, %v595_v29 }
 0x233   :  { %4333 = vmatpush1.bf16.msra.mxu0 %v4332_v3  ;;  %4581 = vmatpush1.bf16.msra.mxu1 %v4580_v4  ;;  %v4348_v3 = vpack.c.bf16 %v1910_v58, %v1902_v57  ;;  %v4596_v4 = vpack.c.bf16 %v1912_v62, %v1904_v15 }
 0x234   :  { %4335 = vmatprep.subr.bf16.mxu0 %v4334_v8  ;;  %4583 = vmatprep.subr.bf16.mxu1 %v4582_v42  ;;  %v4350_v42 = vpack.c.bf16 %v1927_v0, %v1919_v63  ;;  %v1968_v63 = vld [vmem:[#allocation5 + $0x1790] sm:$0xff] }
 0x235   :  { %v1976_v0 = vld [vmem:[#allocation5 + $0x17d0] sm:$0xff] }
 0x237   :  { %4337 = vmatpush1.bf16.msra.mxu0 %v4336_v18  ;;  %4585 = vmatpush1.bf16.msra.mxu1 %v4584_v19  ;;  %v1945_v18 = vld [vmem:[#allocation5 + $0x16d8] sm:$0xff]  ;;  %v4352_v19 = vpack.c.bf16 %v1926_v7, %v1918_v6 }
 0x238   :  { %4339 = vmatprep.subr.bf16.mxu0 %v4338_v22  ;;  %4587 = vmatprep.subr.bf16.mxu1 %v4586_v23  ;;  %v1942_v22 = vld [vmem:[#allocation5 + $0x16c0] sm:$0xff]  ;;  %v4354_v23 = vpack.c.bf16 %v1943_v14, %v1935_v13  ;;  %v4602_v24 = vpack.c.bf16 %v1945_v18, %v1937_v17  ;;  %v1984_v17 = vld [vmem:[#allocation5 + $0x1810] sm:$0xff] }
 0x239   :  { %v4356_v33 = vpack.c.bf16 %v1942_v22, %v1934_v21  ;;  %v1990_v13 = vld [vmem:[#allocation5 + $0x1840] sm:$0xff]  ;;  %v1992_v18 = vld [vmem:[#allocation5 + $0x1850] sm:$0xff]  ;;  %v2009_v21 = vld [vmem:[#allocation5 + $0x18d8] sm:$0xff] }
 0x23a   :  { %v5762_v52 = vpop.f32.mrb[2].mxu0  ;;  %v4368_v22 = vpack.c.bf16 %v1990_v13, %v1982_v12  ;;  %v2048_v12 = vld [vmem:[#allocation5 + $0x1a10] sm:$0xff] }
 0x23b   :  { %v5764_v53 = vpop.f32.mrb[2].mxu1  ;;  %4341 = vmatpush1.bf16.msra.mxu0 %v4340_v31  ;;  %4589 = vmatpush1.bf16.msra.mxu1 %v4588_v32  ;;  %v1044_v54 = vpop.f32.mrb[3].mxu0  ;;  %v1961_v31 = vld [vmem:[#allocation5 + $0x1758] sm:$0xff]  ;;  %v607_v32 = vsub.s32 7, %v5717_v36  ;;  %v5267_v16 = vadd.f32 %v5762_v52, %v596_v51  ;;  %v1999_v52 = vld [vmem:[#allocation5 + $0x1888] sm:$0xff] }
 0x23c   :  { %v5268_v38 = vadd.f32 %v1044_v54, %v600_v35  ;;  %v5766_v59 = vpop.f32.mrb[3].mxu1  ;;  %4343 = vmatprep.subr.bf16.mxu0 %v4342_v40  ;;  %4591 = vmatprep.subr.bf16.mxu1 %v4590_v41  ;;  %v1950_v35 = vld [vmem:[#allocation5 + $0x1700] sm:$0xff]  ;;  %v4358_v41 = vpack.c.bf16 %v1959_v30, %v1951_v28  ;;  %v4606_v43 = vpack.c.bf16 %v1961_v31, %v1953_v48  ;;  %v1975_v54 = vld [vmem:[#allocation5 + $0x17c8] sm:$0xff]  ;;  %v2008_v48 = vld [vmem:[#allocation5 + $0x18d0] sm:$0xff] }
 0x23d   :  { %v1958_v40 = vld [vmem:[#allocation5 + $0x1740] sm:$0xff]  ;;  %v608_v57 = vrot.slane %v5775_v50, %v607_v32  ;;  %v4362_v15 = vpack.c.bf16 %v1975_v54, %v1967_v49  ;;  %v1202_v14 = vmul.f32 %v5267_v16, %v5731_v46  ;;  %vm1193_vm6 = vcmp.ge.f32.partialorder %v5267_v16, 0.0  ;;  %v2015_v31 = vld [vmem:[#allocation5 + $0x1908] sm:$0xff]  ;;  %v2016_v49 = vld [vmem:[#allocation5 + $0x1910] sm:$0xff] }
 0x23e   :  { %vm1194_vm5 = vcmp.ge.f32.partialorder %v5268_v38, 0.0  ;;  %v1203_v27 = vmul.f32 %v5268_v38, %v5731_v46  ;;  %v4360_v58 = vpack.c.bf16 %v1958_v40, %v1950_v35  ;;  %v2023_v32 = vld [vmem:[#allocation5 + $0x1948] sm:$0xff]  ;;  %v2025_v35 = vld [vmem:[#allocation5 + $0x1958] sm:$0xff]  ;;  %v2024_v54 = vld [vmem:[#allocation5 + $0x1950] sm:$0xff] }
 0x23f   :  { %4345 = vmatpush1.bf16.msra.mxu0 %v4344_v55  ;;  %4593 = vmatpush1.bf16.msra.mxu1 %v4592_v56  ;;  %v1969_v55 = vld [vmem:[#allocation5 + $0x1798] sm:$0xff]  ;;  %v5270_v6 = vadd.f32 %v5766_v59, %v608_v57  ;;  %v5784_v28 = vsel %vm1193_vm6, %v5267_v16, %v1202_v14  ;;  %v2047_v16 = vld [vmem:[#allocation5 + $0x1a08] sm:$0xff]  ;;  %v2056_v14 = vld [vmem:[#allocation5 + $0x1a50] sm:$0xff] }
 0x240   :  { %4347 = vmatprep.subr.bf16.mxu0 %v4346_v60  ;;  %v5769_v8 = vsel %vm1194_vm5, %v5268_v38, %v1203_v27  ;;  %4595 = vmatprep.subr.bf16.mxu1 %v4594_v61  ;;  %v1977_v56 = vld [vmem:[#allocation5 + $0x17d8] sm:$0xff]  ;;  %v4608_v38 = vpack.c.bf16 %v1960_v45, %v1952_v44  ;;  %v1966_v60 = vld [vmem:[#allocation5 + $0x1780] sm:$0xff]  ;;  %v1991_v27 = vld [vmem:[#allocation5 + $0x1848] sm:$0xff] }
 0x241   :  { %2424 = vmatprep.mubr.f32.mxu0 %v5769_v8  ;;  %2708 = vmatprep.mubr.f32.mxu1 %v5769_v8  ;;  %v1974_v61 = vld [vmem:[#allocation5 + $0x17c0] sm:$0xff]  ;;  %v4610_v62 = vpack.c.bf16 %v1977_v56, %v1969_v55  ;;  %v2001_v59 = vld [vmem:[#allocation5 + $0x1898] sm:$0xff]  ;;  %vm1196_vm7 = vcmp.ge.f32.partialorder %v5270_v6, 0.0  ;;  %v2031_v55 = vld [vmem:[#allocation5 + $0x1988] sm:$0xff] }
 0x242   :  { %v4364_v7 = vpack.c.bf16 %v1974_v61, %v1966_v60  ;;  %v4618_v30 = vpack.c.bf16 %v2009_v21, %v2001_v59  ;;  %v2014_v44 = vld [vmem:[#allocation5 + $0x1900] sm:$0xff]  ;;  %v2039_v56 = vld [vmem:[#allocation5 + $0x19c8] sm:$0xff]  ;;  %v2033_v57 = vld [vmem:[#allocation5 + $0x1998] sm:$0xff]  ;;  %v4624_v60 = vpack.c.bf16 %v2024_v54, %v2016_v49  ;;  %v4632_v59 = vpack.c.bf16 %v2056_v14, %v2048_v12 }
 0x243   :  { %4349 = vmatpush1.bf16.msra.mxu0 %v4348_v3  ;;  %4597 = vmatpush1.bf16.msra.mxu1 %v4596_v4  ;;  %v1985_v3 = vld [vmem:[#allocation5 + $0x1818] sm:$0xff]  ;;  %v2022_v45 = vld [vmem:[#allocation5 + $0x1940] sm:$0xff]  ;;  %v4378_v61 = vpack.c.bf16 %v2039_v56, %v2031_v55  ;;  %v2095_v49 = vld [vmem:[#allocation5 + $0x1b88] sm:$0xff] }
 0x244   :  { %4351 = vmatprep.subr.bf16.mxu0 %v4350_v42  ;;  %4599 = vmatprep.subr.bf16.mxu1 %v4598_v9  ;;  %v1993_v4 = vld [vmem:[#allocation5 + $0x1858] sm:$0xff]  ;;  %v4612_v42 = vpack.c.bf16 %v1976_v0, %v1968_v63  ;;  %v4366_v9 = vpack.c.bf16 %v1991_v27, %v1983_v1  ;;  %v2032_v63 = vld [vmem:[#allocation5 + $0x1990] sm:$0xff]  ;;  %v2055_v27 = vld [vmem:[#allocation5 + $0x1a48] sm:$0xff] }
 0x245   :  { %v4614_v11 = vpack.c.bf16 %v1993_v4, %v1985_v3  ;;  %v2040_v1 = vld [vmem:[#allocation5 + $0x19d0] sm:$0xff]  ;;  %v2049_v3 = vld [vmem:[#allocation5 + $0x1a18] sm:$0xff]  ;;  %v2127_v12 = vld [vmem:[#allocation5 + $0x1c88] sm:$0xff] }
 0x246   :  { %v2057_v4 = vld [vmem:[#allocation5 + $0x1a58] sm:$0xff] }
 0x247   :  { %4353 = vmatpush1.bf16.msra.mxu0 %v4352_v19  ;;  %4601 = vmatpush1.bf16.msra.mxu1 %v4600_v20  ;;  %v1205_v19 = vmul.f32 %v5270_v6, %v5731_v46  ;;  %v2007_v20 = vld [vmem:[#allocation5 + $0x18c8] sm:$0xff]  ;;  %v4630_v13 = vpack.c.bf16 %v2057_v4, %v2049_v3  ;;  %v2097_v54 = vld [vmem:[#allocation5 + $0x1b98] sm:$0xff] }
 0x248   :  { %4355 = vmatprep.subr.bf16.mxu0 %v4354_v23  ;;  %4603 = vmatprep.subr.bf16.mxu1 %v4602_v24  ;;  %v4616_v23 = vpack.c.bf16 %v1992_v18, %v1984_v17  ;;  %v1998_v24 = vld [vmem:[#allocation5 + $0x1880] sm:$0xff]  ;;  %v4370_v29 = vpack.c.bf16 %v2007_v20, %v1999_v52  ;;  %v2063_v17 = vld [vmem:[#allocation5 + $0x1a88] sm:$0xff]  ;;  %v2065_v52 = vld [vmem:[#allocation5 + $0x1a98] sm:$0xff] }
 0x249   :  { %v4372_v40 = vpack.c.bf16 %v2006_v25, %v1998_v24  ;;  %v2071_v18 = vld [vmem:[#allocation5 + $0x1ac8] sm:$0xff]  ;;  %v2064_v24 = vld [vmem:[#allocation5 + $0x1a90] sm:$0xff]  ;;  %v2105_v55 = vld [vmem:[#allocation5 + $0x1bd8] sm:$0xff] }
 0x24a   :  { %v4386_v21 = vpack.c.bf16 %v2071_v18, %v2063_v17  ;;  %v2129_v14 = vld [vmem:[#allocation5 + $0x1c98] sm:$0xff] }
 0x24b   :  { %4357 = vmatpush1.bf16.msra.mxu0 %v4356_v33  ;;  %4605 = vmatpush1.bf16.msra.mxu1 %v4604_v34  ;;  %v5789_v33 = vsel %vm1196_vm7, %v5270_v6, %v1205_v19  ;;  %v2017_v34 = vld [vmem:[#allocation5 + $0x1918] sm:$0xff] }
 0x24c   :  { %4359 = vmatprep.subr.bf16.mxu0 %v4358_v41  ;;  %4607 = vmatprep.subr.bf16.mxu1 %v4606_v43  ;;  %v4620_v41 = vpack.c.bf16 %v2008_v48, %v2000_v26  ;;  %v4374_v43 = vpack.c.bf16 %v2023_v32, %v2015_v31  ;;  %v4622_v51 = vpack.c.bf16 %v2025_v35, %v2017_v34  ;;  %v2073_v19 = vld [vmem:[#allocation5 + $0x1ad8] sm:$0xff]  ;;  %v2072_v26 = vld [vmem:[#allocation5 + $0x1ad0] sm:$0xff] }
 0x24d   :  { %v4634_v25 = vpack.c.bf16 %v2073_v19, %v2065_v52  ;;  %v2081_v48 = vld [vmem:[#allocation5 + $0x1b18] sm:$0xff]  ;;  %v4636_v34 = vpack.c.bf16 %v2072_v26, %v2064_v24  ;;  %v2143_v24 = vld [vmem:[#allocation5 + $0x1d08] sm:$0xff] }
 0x24e   :  { %v2089_v31 = vld [vmem:[#allocation5 + $0x1b58] sm:$0xff] }
 0x24f   :  { %4361 = vmatpush1.bf16.msra.mxu0 %v4360_v58  ;;  %4609 = vmatpush1.bf16.msra.mxu1 %v4608_v38  ;;  %v2041_v58 = vld [vmem:[#allocation5 + $0x19d8] sm:$0xff]  ;;  %v4376_v38 = vpack.c.bf16 %v2022_v45, %v2014_v44  ;;  %v4638_v44 = vpack.c.bf16 %v2089_v31, %v2081_v48  ;;  %v2088_v45 = vld [vmem:[#allocation5 + $0x1b50] sm:$0xff] }
 0x250   :  { %4363 = vmatprep.subr.bf16.mxu0 %v4362_v15  ;;  %4611 = vmatprep.subr.bf16.mxu1 %v4610_v62  ;;  %v2030_v15 = vld [vmem:[#allocation5 + $0x1980] sm:$0xff]  ;;  %v4626_v0 = vpack.c.bf16 %v2041_v58, %v2033_v57  ;;  %v2137_v17 = vld [vmem:[#allocation5 + $0x1cd8] sm:$0xff] }
 0x251   :  { %v2038_v62 = vld [vmem:[#allocation5 + $0x19c0] sm:$0xff]  ;;  %v2145_v26 = vld [vmem:[#allocation5 + $0x1d18] sm:$0xff] }
 0x252   :  { %v4380_v6 = vpack.c.bf16 %v2038_v62, %v2030_v15  ;;  %v4642_v15 = vpack.c.bf16 %v2105_v55, %v2097_v54  ;;  %v2104_v62 = vld [vmem:[#allocation5 + $0x1bd0] sm:$0xff] }
 0x253   :  { %4365 = vmatpush1.bf16.msra.mxu0 %v4364_v7  ;;  %4613 = vmatpush1.bf16.msra.mxu1 %v4612_v42  ;;  %v4628_v7 = vpack.c.bf16 %v2040_v1, %v2032_v63  ;;  %v4382_v42 = vpack.c.bf16 %v2055_v27, %v2047_v16  ;;  %v2111_v63 = vld [vmem:[#allocation5 + $0x1c08] sm:$0xff]  ;;  %v2113_v1 = vld [vmem:[#allocation5 + $0x1c18] sm:$0xff] }
 0x254   :  { %4367 = vmatprep.subr.bf16.mxu0 %v4366_v9  ;;  %4615 = vmatprep.subr.bf16.mxu1 %v4614_v11  ;;  %v2046_v9 = vld [vmem:[#allocation5 + $0x1a00] sm:$0xff]  ;;  %v2121_v16 = vld [vmem:[#allocation5 + $0x1c58] sm:$0xff] }
 0x255   :  { %v2054_v11 = vld [vmem:[#allocation5 + $0x1a40] sm:$0xff] }
 0x256   :  { %2425 = vmatmul.mubr.f32.vlgmr.msra.gmra.mrb[4].mxu0 %v5784_v28  ;;  %2709 = vmatmul.mubr.f32.vlgmr.msra.gmra.mrb[4].mxu1 %v5784_v28  ;;  %v4384_v20 = vpack.c.bf16 %v2054_v11, %v2046_v9  ;;  %v4646_v9 = vpack.c.bf16 %v2121_v16, %v2113_v1  ;;  %v2120_v11 = vld [vmem:[#allocation5 + $0x1c50] sm:$0xff] }
 0x257   :  { %4369 = vmatpush1.bf16.msra.mxu0 %v4368_v22  ;;  %3718 = vmatprep.mubr.msk.f32.mxu0 %vm2214_vm8, %v5789_v33  ;;  %v2062_v22 = vld [vmem:[#allocation5 + $0x1a80] sm:$0xff] }
 0x258   :  { %4617 = vmatpush1.bf16.msra.mxu1 %v4616_v23  ;;  %3719 = vmatprep.mubr.msk.f32.mxu1 %vm2214_vm8, %v5789_v33  ;;  %v2070_v23 = vld [vmem:[#allocation5 + $0x1ac0] sm:$0xff] }
 0x259   :  { %4371 = vmatprep.subr.bf16.mxu0 %v4370_v29  ;;  %4619 = vmatprep.subr.bf16.mxu1 %v4618_v30  ;;  %v2079_v29 = vld [vmem:[#allocation5 + $0x1b08] sm:$0xff]  ;;  %v4388_v32 = vpack.c.bf16 %v2070_v23, %v2062_v22  ;;  %v4650_v22 = vpack.c.bf16 %v2137_v17, %v2129_v14  ;;  %v2136_v23 = vld [vmem:[#allocation5 + $0x1cd0] sm:$0xff] }
 0x25a   :  { %v2087_v30 = vld [vmem:[#allocation5 + $0x1b48] sm:$0xff] }
 0x25b   :  { %4373 = vmatpush1.bf16.msra.mxu0 %v4372_v40  ;;  %v4390_v35 = vpack.c.bf16 %v2087_v30, %v2079_v29  ;;  %v2078_v40 = vld [vmem:[#allocation5 + $0x1b00] sm:$0xff]  ;;  %v2153_v29 = vld [vmem:[#allocation5 + $0x1d58] sm:$0xff] }
 0x25c   :  { %4621 = vmatpush1.bf16.msra.mxu1 %v4620_v41  ;;  %4375 = vmatprep.subr.bf16.mxu0 %v4374_v43  ;;  %v2086_v41 = vld [vmem:[#allocation5 + $0x1b40] sm:$0xff]  ;;  %v2080_v43 = vld [vmem:[#allocation5 + $0x1b10] sm:$0xff] }
 0x25d   :  { %4623 = vmatprep.subr.bf16.mxu1 %v4622_v51  ;;  %v2103_v51 = vld [vmem:[#allocation5 + $0x1bc8] sm:$0xff]  ;;  %v4392_v56 = vpack.c.bf16 %v2086_v41, %v2078_v40  ;;  %v4640_v57 = vpack.c.bf16 %v2088_v45, %v2080_v43  ;;  %v4654_v40 = vpack.c.bf16 %v2153_v29, %v2145_v26  ;;  %v2152_v41 = vld [vmem:[#allocation5 + $0x1d50] sm:$0xff]  ;;  %v2161_v45 = vld [vmem:[#allocation5 + $0x1d98] sm:$0xff] }
 0x25e   :  { %v4394_v58 = vpack.c.bf16 %v2103_v51, %v2095_v49  ;;  %v2159_v43 = vld [vmem:[#allocation5 + $0x1d88] sm:$0xff]  ;;  %v2169_v49 = vld [vmem:[#allocation5 + $0x1dd8] sm:$0xff] }
 0x25f   :  { %4377 = vmatpush1.bf16.msra.mxu0 %v4376_v38  ;;  %v2094_v38 = vld [vmem:[#allocation5 + $0x1b80] sm:$0xff]  ;;  %v2209_v26 = vld [vmem:[#allocation5 + $0x1f18] sm:$0xff]  ;;  %v1219_v29 = vld [vmem:[#allocation5 + $0x28] sm:$0xff] }
 0x260   :  { %4625 = vmatpush1.bf16.msra.mxu1 %v4624_v60  ;;  %4379 = vmatprep.subr.bf16.mxu0 %v4378_v61  ;;  %v2102_v60 = vld [vmem:[#allocation5 + $0x1bc0] sm:$0xff]  ;;  %v2096_v61 = vld [vmem:[#allocation5 + $0x1b90] sm:$0xff] }
 0x261   :  { %4627 = vmatprep.subr.bf16.mxu1 %v4626_v0  ;;  %v2119_v0 = vld [vmem:[#allocation5 + $0x1c48] sm:$0xff]  ;;  %v4396_v27 = vpack.c.bf16 %v2102_v60, %v2094_v38  ;;  %v4644_v3 = vpack.c.bf16 %v2104_v62, %v2096_v61  ;;  %v4658_v38 = vpack.c.bf16 %v2169_v49, %v2161_v45  ;;  %v2168_v60 = vld [vmem:[#allocation5 + $0x1dd0] sm:$0xff]  ;;  %v2177_v62 = vld [vmem:[#allocation5 + $0x1e18] sm:$0xff] }
 0x262   :  { %v4398_v4 = vpack.c.bf16 %v2119_v0, %v2111_v63  ;;  %v2175_v61 = vld [vmem:[#allocation5 + $0x1e08] sm:$0xff]  ;;  %v2185_v63 = vld [vmem:[#allocation5 + $0x1e58] sm:$0xff]  ;;  %v603_v0 = vsub.s32 6, %v5717_v36  ;;  %v3619_v36 = vld [vmem:[#allocation7 + $0x10] sm:$0xff] }
 0x263   :  { %4381 = vmatpush1.bf16.msra.mxu0 %v4380_v6  ;;  %v2110_v6 = vld [vmem:[#allocation5 + $0x1c00] sm:$0xff]  ;;  %v1235_v45 = vld [vmem:[#allocation5 + $0xa8] sm:$0xff] }
 0x264   :  { %4629 = vmatpush1.bf16.msra.mxu1 %v4628_v7  ;;  %4383 = vmatprep.subr.bf16.mxu0 %v4382_v42  ;;  %v2118_v7 = vld [vmem:[#allocation5 + $0x1c40] sm:$0xff]  ;;  %v2112_v42 = vld [vmem:[#allocation5 + $0x1c10] sm:$0xff]  ;;  %v604_v14 = vrot.slane %v5775_v50, %v603_v0  ;;  %v2207_v50 = vld [vmem:[#allocation5 + $0x1f08] sm:$0xff] }
 0x265   :  { %4631 = vmatprep.subr.bf16.mxu1 %v4630_v13  ;;  %v2135_v13 = vld [vmem:[#allocation5 + $0x1cc8] sm:$0xff]  ;;  %v4400_v18 = vpack.c.bf16 %v2118_v7, %v2110_v6  ;;  %v4648_v52 = vpack.c.bf16 %v2120_v11, %v2112_v42  ;;  %v2176_v6 = vld [vmem:[#allocation5 + $0x1e10] sm:$0xff]  ;;  %v4662_v7 = vpack.c.bf16 %v2185_v63, %v2177_v62 }
 0x266   :  { %v4402_v19 = vpack.c.bf16 %v2135_v13, %v2127_v12  ;;  %v2184_v42 = vld [vmem:[#allocation5 + $0x1e50] sm:$0xff]  ;;  %v2199_v11 = vld [vmem:[#allocation5 + $0x1ec8] sm:$0xff]  ;;  %v2193_v12 = vld [vmem:[#allocation5 + $0x1e98] sm:$0xff] }
 0x267   :  { %4385 = vmatpush1.bf16.msra.mxu0 %v4384_v20  ;;  %v2126_v20 = vld [vmem:[#allocation5 + $0x1c80] sm:$0xff]  ;;  %v2201_v13 = vld [vmem:[#allocation5 + $0x1ed8] sm:$0xff]  ;;  %v1243_v49 = vld [vmem:[#allocation5 + $0xe8] sm:$0xff] }
 0x268   :  { %4633 = vmatpush1.bf16.msra.mxu1 %v4632_v59  ;;  %4387 = vmatprep.subr.bf16.mxu0 %v4386_v21  ;;  %v2134_v59 = vld [vmem:[#allocation5 + $0x1cc0] sm:$0xff]  ;;  %v2128_v21 = vld [vmem:[#allocation5 + $0x1c90] sm:$0xff]  ;;  %v1251_v62 = vld [vmem:[#allocation5 + $0x128] sm:$0xff] }
 0x269   :  { %4635 = vmatprep.subr.bf16.mxu1 %v4634_v25  ;;  %v2151_v25 = vld [vmem:[#allocation5 + $0x1d48] sm:$0xff]  ;;  %v4404_v30 = vpack.c.bf16 %v2134_v59, %v2126_v20  ;;  %v4652_v48 = vpack.c.bf16 %v2136_v23, %v2128_v21  ;;  %v2198_v20 = vld [vmem:[#allocation5 + $0x1ec0] sm:$0xff]  ;;  %v4666_v59 = vpack.c.bf16 %v2201_v13, %v2193_v12  ;;  %v2192_v21 = vld [vmem:[#allocation5 + $0x1e90] sm:$0xff]  ;;  %v5269_v23 = vadd.f32 %v5764_v53, %v604_v14 }
 0x26a   :  { %v4406_v31 = vpack.c.bf16 %v2151_v25, %v2143_v24  ;;  %v2206_v53 = vld [vmem:[#allocation5 + $0x1f00] sm:$0xff]  ;;  %v1259_v63 = vld [vmem:[#allocation5 + $0x168] sm:$0xff]  ;;  %v1269_v14 = vld [vmem:[#allocation5 + $0x1b8] sm:$0xff] }
 0x26b   :  { %4389 = vmatpush1.bf16.msra.mxu0 %v4388_v32  ;;  %v2142_v32 = vld [vmem:[#allocation5 + $0x1d00] sm:$0xff]  ;;  %vm1195_vm9 = vcmp.ge.f32.partialorder %v5269_v23, 0.0  ;;  %v1267_v12 = vld [vmem:[#allocation5 + $0x1a8] sm:$0xff] }
 0x26c   :  { %4637 = vmatpush1.bf16.msra.mxu1 %v4636_v34  ;;  %4391 = vmatprep.subr.bf16.mxu0 %v4390_v35  ;;  %v2150_v34 = vld [vmem:[#allocation5 + $0x1d40] sm:$0xff]  ;;  %v2144_v35 = vld [vmem:[#allocation5 + $0x1d10] sm:$0xff]  ;;  %v1275_v13 = vld [vmem:[#allocation5 + $0x1e8] sm:$0xff] }
 0x26d   :  { %4639 = vmatprep.subr.bf16.mxu1 %v4638_v44  ;;  %v2167_v44 = vld [vmem:[#allocation5 + $0x1dc8] sm:$0xff]  ;;  %v4408_v51 = vpack.c.bf16 %v2150_v34, %v2142_v32  ;;  %v4656_v54 = vpack.c.bf16 %v2152_v41, %v2144_v35  ;;  %v1229_v32 = vld [vmem:[#allocation5 + $0x78] sm:$0xff]  ;;  %v1218_v34 = vld [vmem:[#allocation5 + $0x20] sm:$0xff] }
 0x26e   :  { %v4410_v55 = vpack.c.bf16 %v2167_v44, %v2159_v43  ;;  %v1226_v35 = vld [vmem:[#allocation5 + $0x60] sm:$0xff]  ;;  %v1228_v41 = vld [vmem:[#allocation5 + $0x70] sm:$0xff] }
 0x26f   :  { %4393 = vmatpush1.bf16.msra.mxu0 %v4392_v56  ;;  %v2158_v56 = vld [vmem:[#allocation5 + $0x1d80] sm:$0xff]  ;;  %v2208_v43 = vld [vmem:[#allocation5 + $0x1f10] sm:$0xff] }
 0x270   :  { %4641 = vmatpush1.bf16.msra.mxu1 %v4640_v57  ;;  %4395 = vmatprep.subr.bf16.mxu0 %v4394_v58  ;;  %v2166_v57 = vld [vmem:[#allocation5 + $0x1dc0] sm:$0xff]  ;;  %v2160_v58 = vld [vmem:[#allocation5 + $0x1d90] sm:$0xff] }
 0x271   :  { %4643 = vmatprep.subr.bf16.mxu1 %v4642_v15  ;;  %v2183_v15 = vld [vmem:[#allocation5 + $0x1e48] sm:$0xff]  ;;  %v4412_v1 = vpack.c.bf16 %v2166_v57, %v2158_v56  ;;  %v4660_v16 = vpack.c.bf16 %v2168_v60, %v2160_v58  ;;  %v1245_v56 = vld [vmem:[#allocation5 + $0xf8] sm:$0xff]  ;;  %v1234_v58 = vld [vmem:[#allocation5 + $0xa0] sm:$0xff] }
 0x272   :  { %v1236_v60 = vld [vmem:[#allocation5 + $0xb0] sm:$0xff] }
 0x273   :  { %4397 = vmatpush1.bf16.msra.mxu0 %v4396_v27  ;;  %v4414_v27 = vpack.c.bf16 %v2183_v15, %v2175_v61  ;;  %v4674_v61 = vpack.c.bf16 %v1243_v49, %v1235_v45  ;;  %v1244_v15 = vld [vmem:[#allocation5 + $0xf0] sm:$0xff] }
 0x274   :  { %4645 = vmatpush1.bf16.msra.mxu1 %v4644_v3  ;;  %4399 = vmatprep.subr.bf16.mxu0 %v4398_v4  ;;  %v2174_v3 = vld [vmem:[#allocation5 + $0x1e00] sm:$0xff] }
 0x275   :  { %4647 = vmatprep.subr.bf16.mxu1 %v4646_v9  ;;  %v2182_v4 = vld [vmem:[#allocation5 + $0x1e40] sm:$0xff]  ;;  %v2191_v9 = vld [vmem:[#allocation5 + $0x1e88] sm:$0xff] }
 0x276   :  { %v4416_v17 = vpack.c.bf16 %v2182_v4, %v2174_v3  ;;  %v4924_v3 = vpack.c.bf16 %v1244_v15, %v1236_v60  ;;  %v4678_v4 = vpack.c.bf16 %v1259_v63, %v1251_v62  ;;  %v1317_v60 = vld [vmem:[#allocation5 + $0x338] sm:$0xff] }
 0x277   :  { %4401 = vmatpush1.bf16.msra.mxu0 %v4400_v18  ;;  %v4664_v18 = vpack.c.bf16 %v2184_v42, %v2176_v6  ;;  %v1250_v6 = vld [vmem:[#allocation5 + $0x120] sm:$0xff]  ;;  %v1252_v42 = vld [vmem:[#allocation5 + $0x130] sm:$0xff] }
 0x278   :  { %4649 = vmatpush1.bf16.msra.mxu1 %v4648_v52  ;;  %4403 = vmatprep.subr.bf16.mxu0 %v4402_v19  ;;  %v4418_v52 = vpack.c.bf16 %v2199_v11, %v2191_v9  ;;  %v2190_v19 = vld [vmem:[#allocation5 + $0x1e80] sm:$0xff]  ;;  %v1260_v11 = vld [vmem:[#allocation5 + $0x170] sm:$0xff] }
 0x279   :  { %4651 = vmatprep.subr.bf16.mxu1 %v4650_v22  ;;  %v2200_v22 = vld [vmem:[#allocation5 + $0x1ed0] sm:$0xff]  ;;  %v4420_v24 = vpack.c.bf16 %v2198_v20, %v2190_v19  ;;  %v4682_v19 = vpack.c.bf16 %v1275_v13, %v1267_v12  ;;  %v1266_v20 = vld [vmem:[#allocation5 + $0x1a0] sm:$0xff] }
 0x27a   :  { %v4668_v25 = vpack.c.bf16 %v2200_v22, %v2192_v21  ;;  %v1268_v21 = vld [vmem:[#allocation5 + $0x1b0] sm:$0xff]  ;;  %v1330_v13 = vld [vmem:[#allocation5 + $0x3a0] sm:$0xff] }
 0x27b   :  { %4405 = vmatpush1.bf16.msra.mxu0 %v4404_v30  ;;  %v1227_v30 = vld [vmem:[#allocation5 + $0x68] sm:$0xff] }
 0x27c   :  { %4653 = vmatpush1.bf16.msra.mxu1 %v4652_v48  ;;  %4407 = vmatprep.subr.bf16.mxu0 %v4406_v31  ;;  %v1221_v48 = vld [vmem:[#allocation5 + $0x38] sm:$0xff]  ;;  %v1204_v31 = vmul.f32 %v5269_v23, %v5731_v46  ;;  %v4670_v44 = vpack.c.bf16 %v1227_v30, %v1219_v29 }
 0x27d   :  { %4655 = vmatprep.subr.bf16.mxu1 %v4654_v40  ;;  %v1220_v40 = vld [vmem:[#allocation5 + $0x30] sm:$0xff] }
 0x27e   :  { %v5800_v46 = vsel %vm1195_vm9, %v5269_v23, %v1204_v31  ;;  %v4920_v57 = vpack.c.bf16 %v1228_v41, %v1220_v40  ;;  %v1283_v23 = vld [vmem:[#allocation5 + $0x228] sm:$0xff]  ;;  %v1290_v31 = vld [vmem:[#allocation5 + $0x260] sm:$0xff]  ;;  %v1301_v41 = vld [vmem:[#allocation5 + $0x2b8] sm:$0xff] }
 0x27f   :  { %4409 = vmatpush1.bf16.msra.mxu0 %v4408_v51  ;;  %v4918_v51 = vpack.c.bf16 %v1229_v32, %v1221_v48  ;;  %v1282_v48 = vld [vmem:[#allocation5 + $0x220] sm:$0xff]  ;;  %v1284_v32 = vld [vmem:[#allocation5 + $0x230] sm:$0xff]  ;;  %v1307_v40 = vld [vmem:[#allocation5 + $0x2e8] sm:$0xff] }
 0x280   :  { %4657 = vmatpush1.bf16.msra.mxu1 %v4656_v54  ;;  %4411 = vmatprep.subr.bf16.mxu0 %v4410_v55  ;;  %v4672_v54 = vpack.c.bf16 %v1226_v35, %v1218_v34  ;;  %v1237_v55 = vld [vmem:[#allocation5 + $0xb8] sm:$0xff]  ;;  %v1292_v35 = vld [vmem:[#allocation5 + $0x270] sm:$0xff] }
 0x281   :  { %4659 = vmatprep.subr.bf16.mxu1 %v4658_v38  ;;  %v1242_v38 = vld [vmem:[#allocation5 + $0xe0] sm:$0xff]  ;;  %v4922_v0 = vpack.c.bf16 %v1245_v56, %v1237_v55  ;;  %v4936_v45 = vpack.c.bf16 %v1292_v35, %v1284_v32  ;;  %v1300_v55 = vld [vmem:[#allocation5 + $0x2b0] sm:$0xff]  ;;  %v1373_v32 = vld [vmem:[#allocation5 + $0x4f8] sm:$0xff] }
 0x283   :  { %4413 = vmatpush1.bf16.msra.mxu0 %v4412_v1  ;;  %v1253_v1 = vld [vmem:[#allocation5 + $0x138] sm:$0xff] }
 0x284   :  { %4661 = vmatpush1.bf16.msra.mxu1 %v4660_v16  ;;  %4415 = vmatprep.subr.bf16.mxu0 %v4414_v27  ;;  %v1261_v16 = vld [vmem:[#allocation5 + $0x178] sm:$0xff]  ;;  %v4676_v27 = vpack.c.bf16 %v1242_v38, %v1234_v58  ;;  %v1315_v58 = vld [vmem:[#allocation5 + $0x328] sm:$0xff] }
 0x285   :  { %4663 = vmatprep.subr.bf16.mxu1 %v4662_v7  ;;  %v1258_v7 = vld [vmem:[#allocation5 + $0x160] sm:$0xff]  ;;  %v4926_v9 = vpack.c.bf16 %v1261_v16, %v1253_v1  ;;  %v1323_v38 = vld [vmem:[#allocation5 + $0x368] sm:$0xff]  ;;  %v1316_v16 = vld [vmem:[#allocation5 + $0x330] sm:$0xff] }
 0x286   :  { %v4694_v63 = vpack.c.bf16 %v1323_v38, %v1315_v58  ;;  %v1322_v1 = vld [vmem:[#allocation5 + $0x360] sm:$0xff] }
 0x287   :  { %4417 = vmatpush1.bf16.msra.mxu0 %v4416_v17  ;;  %v1277_v17 = vld [vmem:[#allocation5 + $0x1f8] sm:$0xff]  ;;  %v1378_v38 = vld [vmem:[#allocation5 + $0x520] sm:$0xff] }
 0x288   :  { %4665 = vmatpush1.bf16.msra.mxu1 %v4664_v18  ;;  %4419 = vmatprep.subr.bf16.mxu0 %v4418_v52  ;;  %v4680_v18 = vpack.c.bf16 %v1258_v7, %v1250_v6  ;;  %v4928_v52 = vpack.c.bf16 %v1260_v11, %v1252_v42  ;;  %v4930_v22 = vpack.c.bf16 %v1277_v17, %v1269_v14  ;;  %v1339_v6 = vld [vmem:[#allocation5 + $0x3e8] sm:$0xff]  ;;  %v1333_v7 = vld [vmem:[#allocation5 + $0x3b8] sm:$0xff]  ;;  %v1338_v14 = vld [vmem:[#allocation5 + $0x3e0] sm:$0xff] }
 0x289   :  { %4667 = vmatprep.subr.bf16.mxu1 %v4666_v59  ;;  %v1274_v59 = vld [vmem:[#allocation5 + $0x1e0] sm:$0xff]  ;;  %v1341_v42 = vld [vmem:[#allocation5 + $0x3f8] sm:$0xff]  ;;  %v1332_v17 = vld [vmem:[#allocation5 + $0x3b0] sm:$0xff] }
 0x28b   :  { %4421 = vmatpush1.bf16.msra.mxu0 %v4420_v24  ;;  %v1291_v24 = vld [vmem:[#allocation5 + $0x268] sm:$0xff] }
 0x28c   :  { %4669 = vmatpush1.bf16.msra.mxu1 %v4668_v25  ;;  %2487 = vmatprep.subr.mxu0 %v2207_v50  ;;  %v1285_v25 = vld [vmem:[#allocation5 + $0x238] sm:$0xff]  ;;  %v4686_v30 = vpack.c.bf16 %v1291_v24, %v1283_v23  ;;  %v1346_v24 = vld [vmem:[#allocation5 + $0x420] sm:$0xff] }
 0x28d   :  { %2771 = vmatprep.subr.mxu1 %v2209_v26  ;;  %v1293_v50 = vld [vmem:[#allocation5 + $0x278] sm:$0xff]  ;;  %v4684_v26 = vpack.c.bf16 %v1274_v59, %v1266_v20  ;;  %v1355_v20 = vld [vmem:[#allocation5 + $0x468] sm:$0xff] }
 0x28e   :  { %v4934_v34 = vpack.c.bf16 %v1293_v50, %v1285_v25  ;;  %v1349_v59 = vld [vmem:[#allocation5 + $0x438] sm:$0xff]  ;;  %v1354_v25 = vld [vmem:[#allocation5 + $0x460] sm:$0xff]  ;;  %v1348_v50 = vld [vmem:[#allocation5 + $0x430] sm:$0xff] }
 0x28f   :  { %2488 = vmatpush1.msra.mxu0 %v2206_v53  ;;  %v1299_v53 = vld [vmem:[#allocation5 + $0x2a8] sm:$0xff] }
 0x290   :  { %2772 = vmatpush1.msra.mxu1 %v2208_v43  ;;  %2496 = vmatmul.mubr.f32.vlgmr.msra.gmra.mrb[4].mxu0 %v5800_v46  ;;  %v1309_v43 = vld [vmem:[#allocation5 + $0x2f8] sm:$0xff]  ;;  %v4690_v49 = vpack.c.bf16 %v1307_v40, %v1299_v53  ;;  %v1362_v40 = vld [vmem:[#allocation5 + $0x4a0] sm:$0xff] }
 0x291   :  { %2780 = vmatmul.mubr.f32.vlgmr.msra.gmra.mrb[4].mxu1 %v5800_v46  ;;  %4671 = vmatprep.subr.bf16.mxu0 %v4670_v44  ;;  %v4688_v44 = vpack.c.bf16 %v1290_v31, %v1282_v48  ;;  %v4938_v56 = vpack.c.bf16 %v1309_v43, %v1301_v41  ;;  %v1371_v48 = vld [vmem:[#allocation5 + $0x4e8] sm:$0xff]  ;;  %v1365_v31 = vld [vmem:[#allocation5 + $0x4b8] sm:$0xff]  ;;  %v1370_v41 = vld [vmem:[#allocation5 + $0x4e0] sm:$0xff] }
 0x292   :  { %4919 = vmatprep.subr.bf16.mxu1 %v4918_v51  ;;  %4673 = vmatpush1.bf16.msra.mxu0 %v4672_v54  ;;  %v1298_v51 = vld [vmem:[#allocation5 + $0x2a0] sm:$0xff]  ;;  %v1364_v43 = vld [vmem:[#allocation5 + $0x4b0] sm:$0xff] }
 0x293   :  { %2850 = vmatprep.mubr.f32.mxu0 %v5738_v2  ;;  %4921 = vmatpush1.bf16.msra.mxu1 %v4920_v57  ;;  %v1306_v54 = vld [vmem:[#allocation5 + $0x2e0] sm:$0xff]  ;;  %v1308_v57 = vld [vmem:[#allocation5 + $0x2f0] sm:$0xff] }
 0x294   :  { %3134 = vmatprep.mubr.f32.mxu1 %v5738_v2  ;;  %4675 = vmatprep.subr.bf16.mxu0 %v4674_v61  ;;  %v1276_v2 = vld [vmem:[#allocation5 + $0x1f0] sm:$0xff]  ;;  %v1325_v61 = vld [vmem:[#allocation5 + $0x378] sm:$0xff]  ;;  %v4692_v15 = vpack.c.bf16 %v1306_v54, %v1298_v51  ;;  %v4940_v62 = vpack.c.bf16 %v1308_v57, %v1300_v55  ;;  %v1387_v51 = vld [vmem:[#allocation5 + $0x568] sm:$0xff] }
 0x295   :  { %4923 = vmatprep.subr.bf16.mxu1 %v4922_v0  ;;  %v4932_v29 = vpack.c.bf16 %v1276_v2, %v1268_v21  ;;  %v1314_v0 = vld [vmem:[#allocation5 + $0x320] sm:$0xff]  ;;  %v1357_v21 = vld [vmem:[#allocation5 + $0x478] sm:$0xff] }
 0x296   :  { %4677 = vmatpush1.bf16.msra.mxu0 %v4676_v27  ;;  %v4942_v27 = vpack.c.bf16 %v1325_v61, %v1317_v60  ;;  %v1381_v54 = vld [vmem:[#allocation5 + $0x538] sm:$0xff]  ;;  %v1386_v60 = vld [vmem:[#allocation5 + $0x560] sm:$0xff]  ;;  %v1380_v61 = vld [vmem:[#allocation5 + $0x530] sm:$0xff] }
 0x297   :  { %4925 = vmatpush1.bf16.msra.mxu1 %v4924_v3  ;;  %4679 = vmatprep.subr.bf16.mxu0 %v4678_v4  ;;  %v1324_v3 = vld [vmem:[#allocation5 + $0x370] sm:$0xff]  ;;  %v1331_v4 = vld [vmem:[#allocation5 + $0x3a8] sm:$0xff]  ;;  %v1389_v55 = vld [vmem:[#allocation5 + $0x578] sm:$0xff] }
 0x298   :  { %4927 = vmatprep.subr.bf16.mxu1 %v4926_v9  ;;  %v4696_v9 = vpack.c.bf16 %v1322_v1, %v1314_v0  ;;  %v4944_v11 = vpack.c.bf16 %v1324_v3, %v1316_v16  ;;  %v4698_v12 = vpack.c.bf16 %v1339_v6, %v1331_v4  ;;  %v1403_v0 = vld [vmem:[#allocation5 + $0x5e8] sm:$0xff]  ;;  %v1397_v1 = vld [vmem:[#allocation5 + $0x5b8] sm:$0xff]  ;;  %v1394_v6 = vld [vmem:[#allocation5 + $0x5a0] sm:$0xff] }
 0x299   :  { %v1405_v16 = vld [vmem:[#allocation5 + $0x5f8] sm:$0xff] }
 0x29a   :  { %4681 = vmatpush1.bf16.msra.mxu0 %v4680_v18  ;;  %v4946_v18 = vpack.c.bf16 %v1341_v42, %v1333_v7  ;;  %v1402_v7 = vld [vmem:[#allocation5 + $0x5e0] sm:$0xff]  ;;  %v1396_v42 = vld [vmem:[#allocation5 + $0x5b0] sm:$0xff] }
 0x29b   :  { %4929 = vmatpush1.bf16.msra.mxu1 %v4928_v52  ;;  %4683 = vmatprep.subr.bf16.mxu0 %v4682_v19  ;;  %v1340_v52 = vld [vmem:[#allocation5 + $0x3f0] sm:$0xff]  ;;  %v1347_v19 = vld [vmem:[#allocation5 + $0x428] sm:$0xff] }
 0x29c   :  { %4931 = vmatprep.subr.bf16.mxu1 %v4930_v22  ;;  %v4700_v22 = vpack.c.bf16 %v1338_v14, %v1330_v13  ;;  %v4948_v2 = vpack.c.bf16 %v1340_v52, %v1332_v17  ;;  %v4702_v23 = vpack.c.bf16 %v1355_v20, %v1347_v19  ;;  %v1419_v13 = vld [vmem:[#allocation5 + $0x668] sm:$0xff]  ;;  %v1413_v14 = vld [vmem:[#allocation5 + $0x638] sm:$0xff]  ;;  %v1410_v20 = vld [vmem:[#allocation5 + $0x620] sm:$0xff] }
 0x29d   :  { %v1421_v17 = vld [vmem:[#allocation5 + $0x678] sm:$0xff] }
 0x29e   :  { %4685 = vmatpush1.bf16.msra.mxu0 %v4684_v26  ;;  %v4950_v26 = vpack.c.bf16 %v1357_v21, %v1349_v59  ;;  %v1418_v59 = vld [vmem:[#allocation5 + $0x660] sm:$0xff]  ;;  %v1412_v21 = vld [vmem:[#allocation5 + $0x630] sm:$0xff] }
 0x29f   :  { %4933 = vmatpush1.bf16.msra.mxu1 %v4932_v29  ;;  %4687 = vmatprep.subr.bf16.mxu0 %v4686_v30  ;;  %v1356_v29 = vld [vmem:[#allocation5 + $0x470] sm:$0xff]  ;;  %v1363_v30 = vld [vmem:[#allocation5 + $0x4a8] sm:$0xff] }
 0x2a0   :  { %4935 = vmatprep.subr.bf16.mxu1 %v4934_v34  ;;  %v4704_v34 = vpack.c.bf16 %v1354_v25, %v1346_v24  ;;  %v4952_v35 = vpack.c.bf16 %v1356_v29, %v1348_v50  ;;  %v4706_v53 = vpack.c.bf16 %v1371_v48, %v1363_v30  ;;  %v1435_v24 = vld [vmem:[#allocation5 + $0x6e8] sm:$0xff]  ;;  %v1429_v25 = vld [vmem:[#allocation5 + $0x6b8] sm:$0xff]  ;;  %v1426_v48 = vld [vmem:[#allocation5 + $0x6a0] sm:$0xff] }
 0x2a1   :  { %v1437_v50 = vld [vmem:[#allocation5 + $0x6f8] sm:$0xff] }
 0x2a2   :  { %4689 = vmatpush1.bf16.msra.mxu0 %v4688_v44  ;;  %v4954_v44 = vpack.c.bf16 %v1373_v32, %v1365_v31  ;;  %v1434_v31 = vld [vmem:[#allocation5 + $0x6e0] sm:$0xff]  ;;  %v1428_v32 = vld [vmem:[#allocation5 + $0x6b0] sm:$0xff] }
 0x2a3   :  { %4937 = vmatpush1.bf16.msra.mxu1 %v4936_v45  ;;  %4691 = vmatprep.subr.bf16.mxu0 %v4690_v49  ;;  %v1372_v45 = vld [vmem:[#allocation5 + $0x4f0] sm:$0xff]  ;;  %v1379_v49 = vld [vmem:[#allocation5 + $0x528] sm:$0xff] }
 0x2a4   :  { %4939 = vmatprep.subr.bf16.mxu1 %v4938_v56  ;;  %v4708_v56 = vpack.c.bf16 %v1370_v41, %v1362_v40  ;;  %v4956_v57 = vpack.c.bf16 %v1372_v45, %v1364_v43  ;;  %v4710_v58 = vpack.c.bf16 %v1387_v51, %v1379_v49  ;;  %v1451_v40 = vld [vmem:[#allocation5 + $0x768] sm:$0xff]  ;;  %v1445_v41 = vld [vmem:[#allocation5 + $0x738] sm:$0xff]  ;;  %v1442_v51 = vld [vmem:[#allocation5 + $0x720] sm:$0xff] }
 0x2a5   :  { %v1453_v43 = vld [vmem:[#allocation5 + $0x778] sm:$0xff] }
 0x2a6   :  { %4693 = vmatpush1.bf16.msra.mxu0 %v4692_v15  ;;  %v4958_v15 = vpack.c.bf16 %v1389_v55, %v1381_v54  ;;  %v1450_v54 = vld [vmem:[#allocation5 + $0x760] sm:$0xff]  ;;  %v1444_v55 = vld [vmem:[#allocation5 + $0x730] sm:$0xff] }
 0x2a7   :  { %4941 = vmatpush1.bf16.msra.mxu1 %v4940_v62  ;;  %4695 = vmatprep.subr.bf16.mxu0 %v4694_v63  ;;  %v1388_v62 = vld [vmem:[#allocation5 + $0x570] sm:$0xff]  ;;  %v1395_v63 = vld [vmem:[#allocation5 + $0x5a8] sm:$0xff] }
 0x2a8   :  { %4943 = vmatprep.subr.bf16.mxu1 %v4942_v27  ;;  %v4712_v27 = vpack.c.bf16 %v1386_v60, %v1378_v38  ;;  %v4960_v3 = vpack.c.bf16 %v1388_v62, %v1380_v61  ;;  %v4714_v4 = vpack.c.bf16 %v1403_v0, %v1395_v63  ;;  %v1467_v38 = vld [vmem:[#allocation5 + $0x7e8] sm:$0xff]  ;;  %v1461_v60 = vld [vmem:[#allocation5 + $0x7b8] sm:$0xff]  ;;  %v1458_v0 = vld [vmem:[#allocation5 + $0x7a0] sm:$0xff] }
 0x2a9   :  { %v1469_v61 = vld [vmem:[#allocation5 + $0x7f8] sm:$0xff] }
 0x2aa   :  { %4697 = vmatpush1.bf16.msra.mxu0 %v4696_v9  ;;  %v4962_v9 = vpack.c.bf16 %v1405_v16, %v1397_v1  ;;  %v1466_v1 = vld [vmem:[#allocation5 + $0x7e0] sm:$0xff]  ;;  %v1460_v16 = vld [vmem:[#allocation5 + $0x7b0] sm:$0xff] }
 0x2ab   :  { %4945 = vmatpush1.bf16.msra.mxu1 %v4944_v11  ;;  %4699 = vmatprep.subr.bf16.mxu0 %v4698_v12  ;;  %v1404_v11 = vld [vmem:[#allocation5 + $0x5f0] sm:$0xff]  ;;  %v1411_v12 = vld [vmem:[#allocation5 + $0x628] sm:$0xff] }
 0x2ac   :  { %4947 = vmatprep.subr.bf16.mxu1 %v4946_v18  ;;  %v4716_v18 = vpack.c.bf16 %v1402_v7, %v1394_v6  ;;  %v4964_v52 = vpack.c.bf16 %v1404_v11, %v1396_v42  ;;  %v4718_v19 = vpack.c.bf16 %v1419_v13, %v1411_v12  ;;  %v1483_v6 = vld [vmem:[#allocation5 + $0x868] sm:$0xff]  ;;  %v1477_v7 = vld [vmem:[#allocation5 + $0x838] sm:$0xff]  ;;  %v1474_v13 = vld [vmem:[#allocation5 + $0x820] sm:$0xff] }
 0x2ad   :  { %v1485_v42 = vld [vmem:[#allocation5 + $0x878] sm:$0xff] }
 0x2ae   :  { %4701 = vmatpush1.bf16.msra.mxu0 %v4700_v22  ;;  %v4966_v22 = vpack.c.bf16 %v1421_v17, %v1413_v14  ;;  %v1482_v14 = vld [vmem:[#allocation5 + $0x860] sm:$0xff]  ;;  %v4982_v17 = vpack.c.bf16 %v1485_v42, %v1477_v7  ;;  %v1548_v42 = vld [vmem:[#allocation5 + $0xa70] sm:$0xff] }
 0x2af   :  { %4949 = vmatpush1.bf16.msra.mxu1 %v4948_v2  ;;  %4703 = vmatprep.subr.bf16.mxu0 %v4702_v23  ;;  %v1420_v2 = vld [vmem:[#allocation5 + $0x670] sm:$0xff]  ;;  %v1427_v23 = vld [vmem:[#allocation5 + $0x6a8] sm:$0xff] }
 0x2b0   :  { %4951 = vmatprep.subr.bf16.mxu1 %v4950_v26  ;;  %v4720_v26 = vpack.c.bf16 %v1418_v59, %v1410_v20  ;;  %v4968_v29 = vpack.c.bf16 %v1420_v2, %v1412_v21  ;;  %v4722_v30 = vpack.c.bf16 %v1435_v24, %v1427_v23  ;;  %v1499_v20 = vld [vmem:[#allocation5 + $0x8e8] sm:$0xff]  ;;  %v4736_v59 = vpack.c.bf16 %v1482_v14, %v1474_v13  ;;  %v1493_v21 = vld [vmem:[#allocation5 + $0x8b8] sm:$0xff]  ;;  %v1490_v23 = vld [vmem:[#allocation5 + $0x8a0] sm:$0xff] }
 0x2b1   :  { %v1498_v24 = vld [vmem:[#allocation5 + $0x8e0] sm:$0xff]  ;;  %v1565_v13 = vld [vmem:[#allocation5 + $0xaf8] sm:$0xff] }
 0x2b2   :  { %4705 = vmatpush1.bf16.msra.mxu0 %v4704_v34  ;;  %v4970_v34 = vpack.c.bf16 %v1437_v50, %v1429_v25  ;;  %v1492_v25 = vld [vmem:[#allocation5 + $0x8b0] sm:$0xff] }
 0x2b3   :  { %4953 = vmatpush1.bf16.msra.mxu1 %v4952_v35  ;;  %4707 = vmatprep.subr.bf16.mxu0 %v4706_v53  ;;  %v1436_v35 = vld [vmem:[#allocation5 + $0x6f0] sm:$0xff]  ;;  %v1443_v53 = vld [vmem:[#allocation5 + $0x728] sm:$0xff] }
 0x2b4   :  { %4955 = vmatprep.subr.bf16.mxu1 %v4954_v44  ;;  %v4724_v44 = vpack.c.bf16 %v1434_v31, %v1426_v48  ;;  %v4972_v45 = vpack.c.bf16 %v1436_v35, %v1428_v32  ;;  %v4726_v49 = vpack.c.bf16 %v1451_v40, %v1443_v53  ;;  %v1509_v31 = vld [vmem:[#allocation5 + $0x938] sm:$0xff]  ;;  %v1506_v40 = vld [vmem:[#allocation5 + $0x920] sm:$0xff] }
 0x2b5   :  { %v1517_v32 = vld [vmem:[#allocation5 + $0x978] sm:$0xff] }
 0x2b6   :  { %4709 = vmatpush1.bf16.msra.mxu0 %v4708_v56  ;;  %v4974_v56 = vpack.c.bf16 %v1453_v43, %v1445_v41  ;;  %v1514_v41 = vld [vmem:[#allocation5 + $0x960] sm:$0xff]  ;;  %v1508_v43 = vld [vmem:[#allocation5 + $0x930] sm:$0xff] }
 0x2b7   :  { %4957 = vmatpush1.bf16.msra.mxu1 %v4956_v57  ;;  %4711 = vmatprep.subr.bf16.mxu0 %v4710_v58  ;;  %v1452_v57 = vld [vmem:[#allocation5 + $0x770] sm:$0xff]  ;;  %v1459_v58 = vld [vmem:[#allocation5 + $0x7a8] sm:$0xff] }
 0x2b8   :  { %4959 = vmatprep.subr.bf16.mxu1 %v4958_v15  ;;  %v4728_v15 = vpack.c.bf16 %v1450_v54, %v1442_v51  ;;  %v4976_v62 = vpack.c.bf16 %v1452_v57, %v1444_v55  ;;  %v4730_v63 = vpack.c.bf16 %v1467_v38, %v1459_v58  ;;  %v1531_v51 = vld [vmem:[#allocation5 + $0x9e8] sm:$0xff]  ;;  %v1525_v54 = vld [vmem:[#allocation5 + $0x9b8] sm:$0xff]  ;;  %v4744_v55 = vpack.c.bf16 %v1514_v41, %v1506_v40  ;;  %v1522_v58 = vld [vmem:[#allocation5 + $0x9a0] sm:$0xff] }
 0x2b9   :  { %v1530_v38 = vld [vmem:[#allocation5 + $0x9e0] sm:$0xff]  ;;  %v1597_v40 = vld [vmem:[#allocation5 + $0xbf8] sm:$0xff] }
 0x2ba   :  { %4713 = vmatpush1.bf16.msra.mxu0 %v4712_v27  ;;  %v4978_v27 = vpack.c.bf16 %v1469_v61, %v1461_v60  ;;  %v1524_v60 = vld [vmem:[#allocation5 + $0x9b0] sm:$0xff] }
 0x2bb   :  { %4961 = vmatpush1.bf16.msra.mxu1 %v4960_v3  ;;  %4715 = vmatprep.subr.bf16.mxu0 %v4714_v4  ;;  %v1468_v3 = vld [vmem:[#allocation5 + $0x7f0] sm:$0xff]  ;;  %v1475_v4 = vld [vmem:[#allocation5 + $0x828] sm:$0xff] }
 0x2bc   :  { %4963 = vmatprep.subr.bf16.mxu1 %v4962_v9  ;;  %v4732_v9 = vpack.c.bf16 %v1466_v1, %v1458_v0  ;;  %v4980_v11 = vpack.c.bf16 %v1468_v3, %v1460_v16  ;;  %v4734_v12 = vpack.c.bf16 %v1483_v6, %v1475_v4  ;;  %v1549_v0 = vld [vmem:[#allocation5 + $0xa78] sm:$0xff]  ;;  %v4748_v1 = vpack.c.bf16 %v1530_v38, %v1522_v58  ;;  %v1538_v3 = vld [vmem:[#allocation5 + $0xa20] sm:$0xff]  ;;  %v1540_v6 = vld [vmem:[#allocation5 + $0xa30] sm:$0xff] }
 0x2bd   :  { %v1546_v4 = vld [vmem:[#allocation5 + $0xa60] sm:$0xff]  ;;  %v1613_v58 = vld [vmem:[#allocation5 + $0xc78] sm:$0xff] }
 0x2be   :  { %4717 = vmatpush1.bf16.msra.mxu0 %v4716_v18  ;;  %v1476_v18 = vld [vmem:[#allocation5 + $0x830] sm:$0xff]  ;;  %v4752_v14 = vpack.c.bf16 %v1546_v4, %v1538_v3  ;;  %v1629_v3 = vld [vmem:[#allocation5 + $0xcf8] sm:$0xff] }
 0x2bf   :  { %4965 = vmatpush1.bf16.msra.mxu1 %v4964_v52  ;;  %4719 = vmatprep.subr.bf16.mxu0 %v4718_v19  ;;  %v1484_v52 = vld [vmem:[#allocation5 + $0x870] sm:$0xff]  ;;  %v1491_v19 = vld [vmem:[#allocation5 + $0x8a8] sm:$0xff] }
 0x2c0   :  { %4967 = vmatprep.subr.bf16.mxu1 %v4966_v22  ;;  %v1501_v22 = vld [vmem:[#allocation5 + $0x8f8] sm:$0xff]  ;;  %v4984_v2 = vpack.c.bf16 %v1484_v52, %v1476_v18  ;;  %v4738_v50 = vpack.c.bf16 %v1499_v20, %v1491_v19  ;;  %v1554_v52 = vld [vmem:[#allocation5 + $0xaa0] sm:$0xff]  ;;  %v1556_v20 = vld [vmem:[#allocation5 + $0xab0] sm:$0xff] }
 0x2c1   :  { %v4986_v48 = vpack.c.bf16 %v1501_v22, %v1493_v21  ;;  %v1562_v19 = vld [vmem:[#allocation5 + $0xae0] sm:$0xff]  ;;  %v1564_v21 = vld [vmem:[#allocation5 + $0xaf0] sm:$0xff]  ;;  %v1571_v22 = vld [vmem:[#allocation5 + $0xb28] sm:$0xff] }
 0x2c2   :  { %4721 = vmatpush1.bf16.msra.mxu0 %v4720_v26  ;;  %v1500_v26 = vld [vmem:[#allocation5 + $0x8f0] sm:$0xff] }
 0x2c3   :  { %4969 = vmatpush1.bf16.msra.mxu1 %v4968_v29  ;;  %4723 = vmatprep.subr.bf16.mxu0 %v4722_v30  ;;  %v1507_v29 = vld [vmem:[#allocation5 + $0x928] sm:$0xff]  ;;  %v4988_v35 = vpack.c.bf16 %v1500_v26, %v1492_v25  ;;  %v4756_v25 = vpack.c.bf16 %v1562_v19, %v1554_v52  ;;  %v1645_v52 = vld [vmem:[#allocation5 + $0xd78] sm:$0xff] }
 0x2c4   :  { %4971 = vmatprep.subr.bf16.mxu1 %v4970_v34  ;;  %v1515_v30 = vld [vmem:[#allocation5 + $0x968] sm:$0xff]  ;;  %v4740_v34 = vpack.c.bf16 %v1498_v24, %v1490_v23  ;;  %v1573_v23 = vld [vmem:[#allocation5 + $0xb38] sm:$0xff] }
 0x2c5   :  { %v4742_v53 = vpack.c.bf16 %v1515_v30, %v1507_v29  ;;  %v1581_v24 = vld [vmem:[#allocation5 + $0xb78] sm:$0xff]  ;;  %v1570_v29 = vld [vmem:[#allocation5 + $0xb20] sm:$0xff] }
 0x2c6   :  { %4725 = vmatpush1.bf16.msra.mxu0 %v4724_v44  ;;  %v4990_v44 = vpack.c.bf16 %v1517_v32, %v1509_v31  ;;  %v1578_v30 = vld [vmem:[#allocation5 + $0xb60] sm:$0xff]  ;;  %v5006_v31 = vpack.c.bf16 %v1581_v24, %v1573_v23  ;;  %v1580_v32 = vld [vmem:[#allocation5 + $0xb70] sm:$0xff] }
 0x2c7   :  { %4973 = vmatpush1.bf16.msra.mxu1 %v4972_v45  ;;  %4727 = vmatprep.subr.bf16.mxu0 %v4726_v49  ;;  %v1516_v45 = vld [vmem:[#allocation5 + $0x970] sm:$0xff]  ;;  %v1523_v49 = vld [vmem:[#allocation5 + $0x9a8] sm:$0xff]  ;;  %v4760_v41 = vpack.c.bf16 %v1578_v30, %v1570_v29  ;;  %v1661_v29 = vld [vmem:[#allocation5 + $0xdf8] sm:$0xff] }
 0x2c8   :  { %4975 = vmatprep.subr.bf16.mxu1 %v4974_v56  ;;  %v4992_v56 = vpack.c.bf16 %v1516_v45, %v1508_v43  ;;  %v4746_v57 = vpack.c.bf16 %v1531_v51, %v1523_v49  ;;  %v1586_v45 = vld [vmem:[#allocation5 + $0xba0] sm:$0xff]  ;;  %v1588_v51 = vld [vmem:[#allocation5 + $0xbb0] sm:$0xff] }
 0x2c9   :  { %v1594_v49 = vld [vmem:[#allocation5 + $0xbe0] sm:$0xff]  ;;  %v1644_v24 = vld [vmem:[#allocation5 + $0xd70] sm:$0xff] }
 0x2ca   :  { %4729 = vmatpush1.bf16.msra.mxu0 %v4728_v15  ;;  %v1539_v15 = vld [vmem:[#allocation5 + $0xa28] sm:$0xff]  ;;  %v4764_v38 = vpack.c.bf16 %v1594_v49, %v1586_v45  ;;  %v1677_v45 = vld [vmem:[#allocation5 + $0xe78] sm:$0xff] }
 0x2cb   :  { %4977 = vmatpush1.bf16.msra.mxu1 %v4976_v62  ;;  %4731 = vmatprep.subr.bf16.mxu0 %v4730_v63  ;;  %v1547_v62 = vld [vmem:[#allocation5 + $0xa68] sm:$0xff]  ;;  %v1541_v63 = vld [vmem:[#allocation5 + $0xa38] sm:$0xff] }
 0x2cc   :  { %4979 = vmatprep.subr.bf16.mxu1 %v4978_v27  ;;  %v4750_v27 = vpack.c.bf16 %v1547_v62, %v1539_v15  ;;  %v4998_v7 = vpack.c.bf16 %v1549_v0, %v1541_v63  ;;  %v1610_v15 = vld [vmem:[#allocation5 + $0xc60] sm:$0xff]  ;;  %v1604_v62 = vld [vmem:[#allocation5 + $0xc30] sm:$0xff] }
 0x2cd   :  { %v1612_v0 = vld [vmem:[#allocation5 + $0xc70] sm:$0xff] }
 0x2ce   :  { %4733 = vmatpush1.bf16.msra.mxu0 %v4732_v9  ;;  %v1555_v9 = vld [vmem:[#allocation5 + $0xaa8] sm:$0xff] }
 0x2cf   :  { %4981 = vmatpush1.bf16.msra.mxu1 %v4980_v11  ;;  %4735 = vmatprep.subr.bf16.mxu0 %v4734_v12  ;;  %v1563_v11 = vld [vmem:[#allocation5 + $0xae8] sm:$0xff]  ;;  %v1557_v12 = vld [vmem:[#allocation5 + $0xab8] sm:$0xff] }
 0x2d0   :  { %4983 = vmatprep.subr.bf16.mxu1 %v4982_v17  ;;  %v5000_v17 = vpack.c.bf16 %v1548_v42, %v1540_v6  ;;  %v4754_v18 = vpack.c.bf16 %v1563_v11, %v1555_v9  ;;  %v5016_v6 = vpack.c.bf16 %v1612_v0, %v1604_v62  ;;  %v1618_v42 = vld [vmem:[#allocation5 + $0xca0] sm:$0xff]  ;;  %v1620_v11 = vld [vmem:[#allocation5 + $0xcb0] sm:$0xff] }
 0x2d1   :  { %2851 = vmatmul.mubr.f32.vlgmr.msra.gmra.mrb[6].mxu0 %v5743_v5  ;;  %v1626_v9 = vld [vmem:[#allocation5 + $0xce0] sm:$0xff] }
 0x2d2   :  { %3135 = vmatmul.mubr.f32.vlgmr.msra.gmra.mrb[6].mxu1 %v5743_v5  ;;  %4737 = vmatpush1.bf16.msra.mxu0 %v4736_v59  ;;  %v1533_v5 = vld [vmem:[#allocation5 + $0x9f8] sm:$0xff]  ;;  %v5002_v59 = vpack.c.bf16 %v1565_v13, %v1557_v12  ;;  %v1628_v13 = vld [vmem:[#allocation5 + $0xcf0] sm:$0xff]  ;;  %v4772_v19 = vpack.c.bf16 %v1626_v9, %v1618_v42  ;;  %v1682_v0 = vld [vmem:[#allocation5 + $0xea0] sm:$0xff] }
 0x2d3   :  { %2921 = vmatprep.mubr.f32.mxu0 %v5748_v10  ;;  %4985 = vmatpush1.bf16.msra.mxu1 %v4984_v2  ;;  %v4994_v61 = vpack.c.bf16 %v1533_v5, %v1525_v54  ;;  %v1579_v2 = vld [vmem:[#allocation5 + $0xb68] sm:$0xff]  ;;  %v1596_v5 = vld [vmem:[#allocation5 + $0xbf0] sm:$0xff]  ;;  %v1709_v42 = vld [vmem:[#allocation5 + $0xf78] sm:$0xff] }
 0x2d4   :  { %3205 = vmatprep.mubr.f32.mxu1 %v5748_v10  ;;  %4739 = vmatprep.subr.bf16.mxu0 %v4738_v50  ;;  %v1532_v10 = vld [vmem:[#allocation5 + $0x9f0] sm:$0xff]  ;;  %v5004_v50 = vpack.c.bf16 %v1564_v21, %v1556_v20  ;;  %v4758_v26 = vpack.c.bf16 %v1579_v2, %v1571_v22  ;;  %v5020_v20 = vpack.c.bf16 %v1628_v13, %v1620_v11  ;;  %v1634_v21 = vld [vmem:[#allocation5 + $0xd20] sm:$0xff] }
 0x2d5   :  { %4987 = vmatprep.subr.bf16.mxu1 %v4986_v48  ;;  %v4996_v16 = vpack.c.bf16 %v1532_v10, %v1524_v60  ;;  %v1572_v48 = vld [vmem:[#allocation5 + $0xb30] sm:$0xff]  ;;  %v5012_v60 = vpack.c.bf16 %v1596_v5, %v1588_v51  ;;  %v1602_v10 = vld [vmem:[#allocation5 + $0xc20] sm:$0xff] }
 0x2d6   :  { %4741 = vmatpush1.bf16.msra.mxu0 %v4740_v34  ;;  %v1587_v34 = vld [vmem:[#allocation5 + $0xba8] sm:$0xff]  ;;  %v5008_v43 = vpack.c.bf16 %v1580_v32, %v1572_v48  ;;  %v4768_v4 = vpack.c.bf16 %v1610_v15, %v1602_v10  ;;  %v1642_v22 = vld [vmem:[#allocation5 + $0xd60] sm:$0xff]  ;;  %v1636_v2 = vld [vmem:[#allocation5 + $0xd30] sm:$0xff] }
 0x2d7   :  { %4989 = vmatpush1.bf16.msra.mxu1 %v4988_v35  ;;  %4743 = vmatprep.subr.bf16.mxu0 %v4742_v53  ;;  %v1595_v35 = vld [vmem:[#allocation5 + $0xbe8] sm:$0xff]  ;;  %v1589_v53 = vld [vmem:[#allocation5 + $0xbb8] sm:$0xff]  ;;  %v4776_v30 = vpack.c.bf16 %v1642_v22, %v1634_v21  ;;  %v5024_v48 = vpack.c.bf16 %v1644_v24, %v1636_v2  ;;  %v1650_v32 = vld [vmem:[#allocation5 + $0xda0] sm:$0xff] }
 0x2d8   :  { %4991 = vmatprep.subr.bf16.mxu1 %v4990_v44  ;;  %v4762_v44 = vpack.c.bf16 %v1595_v35, %v1587_v34  ;;  %v5010_v54 = vpack.c.bf16 %v1597_v40, %v1589_v53  ;;  %v1658_v34 = vld [vmem:[#allocation5 + $0xde0] sm:$0xff]  ;;  %v1652_v35 = vld [vmem:[#allocation5 + $0xdb0] sm:$0xff]  ;;  %v1693_v10 = vld [vmem:[#allocation5 + $0xef8] sm:$0xff] }
 0x2d9   :  { %v1660_v40 = vld [vmem:[#allocation5 + $0xdf0] sm:$0xff]  ;;  %v4780_v49 = vpack.c.bf16 %v1658_v34, %v1650_v32  ;;  %v1666_v5 = vld [vmem:[#allocation5 + $0xe20] sm:$0xff]  ;;  %v1725_v21 = vld [vmem:[#allocation5 + $0xff8] sm:$0xff] }
 0x2da   :  { %4745 = vmatpush1.bf16.msra.mxu0 %v4744_v55  ;;  %v1603_v55 = vld [vmem:[#allocation5 + $0xc28] sm:$0xff]  ;;  %v5028_v51 = vpack.c.bf16 %v1660_v40, %v1652_v35  ;;  %v1698_v13 = vld [vmem:[#allocation5 + $0xf20] sm:$0xff]  ;;  %v1741_v32 = vld [vmem:[#allocation5 + $0x1078] sm:$0xff] }
 0x2db   :  { %4993 = vmatpush1.bf16.msra.mxu1 %v4992_v56  ;;  %4747 = vmatprep.subr.bf16.mxu0 %v4746_v57  ;;  %v1611_v56 = vld [vmem:[#allocation5 + $0xc68] sm:$0xff]  ;;  %v1605_v57 = vld [vmem:[#allocation5 + $0xc38] sm:$0xff]  ;;  %v1714_v24 = vld [vmem:[#allocation5 + $0xfa0] sm:$0xff] }
 0x2dc   :  { %4995 = vmatprep.subr.bf16.mxu1 %v4994_v61  ;;  %v4766_v61 = vpack.c.bf16 %v1611_v56, %v1603_v55  ;;  %v5014_v63 = vpack.c.bf16 %v1613_v58, %v1605_v57  ;;  %v1674_v55 = vld [vmem:[#allocation5 + $0xe60] sm:$0xff]  ;;  %v1668_v56 = vld [vmem:[#allocation5 + $0xe30] sm:$0xff] }
 0x2dd   :  { %v1676_v58 = vld [vmem:[#allocation5 + $0xe70] sm:$0xff]  ;;  %v4784_v15 = vpack.c.bf16 %v1674_v55, %v1666_v5  ;;  %v1730_v40 = vld [vmem:[#allocation5 + $0x1020] sm:$0xff]  ;;  %v1749_v5 = vld [vmem:[#allocation5 + $0x10b8] sm:$0xff] }
 0x2de   :  { %4749 = vmatpush1.bf16.msra.mxu0 %v4748_v1  ;;  %v1619_v1 = vld [vmem:[#allocation5 + $0xca8] sm:$0xff]  ;;  %v5032_v62 = vpack.c.bf16 %v1676_v58, %v1668_v56  ;;  %v1757_v55 = vld [vmem:[#allocation5 + $0x10f8] sm:$0xff]  ;;  %v1754_v58 = vld [vmem:[#allocation5 + $0x10e0] sm:$0xff] }
 0x2df   :  { %4997 = vmatpush1.bf16.msra.mxu1 %v4996_v16  ;;  %4751 = vmatprep.subr.bf16.mxu0 %v4750_v27  ;;  %v1627_v16 = vld [vmem:[#allocation5 + $0xce8] sm:$0xff]  ;;  %v1621_v27 = vld [vmem:[#allocation5 + $0xcb8] sm:$0xff] }
 0x2e0   :  { %4999 = vmatprep.subr.bf16.mxu1 %v4998_v7  ;;  %v4770_v7 = vpack.c.bf16 %v1627_v16, %v1619_v1  ;;  %v5018_v12 = vpack.c.bf16 %v1629_v3, %v1621_v27  ;;  %v1690_v1 = vld [vmem:[#allocation5 + $0xee0] sm:$0xff]  ;;  %v1684_v16 = vld [vmem:[#allocation5 + $0xeb0] sm:$0xff] }
 0x2e1   :  { %v1692_v3 = vld [vmem:[#allocation5 + $0xef0] sm:$0xff]  ;;  %v4788_v9 = vpack.c.bf16 %v1690_v1, %v1682_v0  ;;  %v1773_v0 = vld [vmem:[#allocation5 + $0x1178] sm:$0xff] }
 0x2e2   :  { %4753 = vmatpush1.bf16.msra.mxu0 %v4752_v14  ;;  %v1635_v14 = vld [vmem:[#allocation5 + $0xd28] sm:$0xff]  ;;  %v5036_v11 = vpack.c.bf16 %v1692_v3, %v1684_v16  ;;  %v1762_v3 = vld [vmem:[#allocation5 + $0x1120] sm:$0xff] }
 0x2e3   :  { %5001 = vmatpush1.bf16.msra.mxu1 %v5000_v17  ;;  %4755 = vmatprep.subr.bf16.mxu0 %v4754_v18  ;;  %v1643_v17 = vld [vmem:[#allocation5 + $0xd68] sm:$0xff]  ;;  %v1637_v18 = vld [vmem:[#allocation5 + $0xd38] sm:$0xff] }
 0x2e4   :  { %5003 = vmatprep.subr.bf16.mxu1 %v5002_v59  ;;  %v4774_v59 = vpack.c.bf16 %v1643_v17, %v1635_v14  ;;  %v5022_v23 = vpack.c.bf16 %v1645_v52, %v1637_v18  ;;  %v1706_v14 = vld [vmem:[#allocation5 + $0xf60] sm:$0xff]  ;;  %v1700_v17 = vld [vmem:[#allocation5 + $0xf30] sm:$0xff] }
 0x2e5   :  { %v1708_v52 = vld [vmem:[#allocation5 + $0xf70] sm:$0xff]  ;;  %v4792_v22 = vpack.c.bf16 %v1706_v14, %v1698_v13 }
 0x2e6   :  { %4757 = vmatpush1.bf16.msra.mxu0 %v4756_v25  ;;  %v1651_v25 = vld [vmem:[#allocation5 + $0xda8] sm:$0xff]  ;;  %v5040_v2 = vpack.c.bf16 %v1708_v52, %v1700_v17  ;;  %v1786_v52 = vld [vmem:[#allocation5 + $0x11e0] sm:$0xff] }
 0x2e7   :  { %5005 = vmatpush1.bf16.msra.mxu1 %v5004_v50  ;;  %4759 = vmatprep.subr.bf16.mxu0 %v4758_v26  ;;  %v1659_v50 = vld [vmem:[#allocation5 + $0xde8] sm:$0xff]  ;;  %v1653_v26 = vld [vmem:[#allocation5 + $0xdb8] sm:$0xff] }
 0x2e8   :  { %5007 = vmatprep.subr.bf16.mxu1 %v5006_v31  ;;  %v4778_v31 = vpack.c.bf16 %v1659_v50, %v1651_v25  ;;  %v5026_v53 = vpack.c.bf16 %v1661_v29, %v1653_v26  ;;  %v1722_v25 = vld [vmem:[#allocation5 + $0xfe0] sm:$0xff]  ;;  %v1716_v50 = vld [vmem:[#allocation5 + $0xfb0] sm:$0xff] }
 0x2e9   :  { %v1724_v29 = vld [vmem:[#allocation5 + $0xff0] sm:$0xff]  ;;  %v4796_v34 = vpack.c.bf16 %v1722_v25, %v1714_v24 }
 0x2ea   :  { %4761 = vmatpush1.bf16.msra.mxu0 %v4760_v41  ;;  %v1667_v41 = vld [vmem:[#allocation5 + $0xe28] sm:$0xff]  ;;  %v5044_v35 = vpack.c.bf16 %v1724_v29, %v1716_v50  ;;  %v1794_v50 = vld [vmem:[#allocation5 + $0x1220] sm:$0xff]  ;;  %v1796_v29 = vld [vmem:[#allocation5 + $0x1230] sm:$0xff] }
 0x2eb   :  { %5009 = vmatpush1.bf16.msra.mxu1 %v5008_v43  ;;  %4763 = vmatprep.subr.bf16.mxu0 %v4762_v44  ;;  %v1675_v43 = vld [vmem:[#allocation5 + $0xe68] sm:$0xff]  ;;  %v1669_v44 = vld [vmem:[#allocation5 + $0xe38] sm:$0xff] }
 0x2ec   :  { %5011 = vmatprep.subr.bf16.mxu1 %v5010_v54  ;;  %v4782_v54 = vpack.c.bf16 %v1675_v43, %v1667_v41  ;;  %v5030_v57 = vpack.c.bf16 %v1677_v45, %v1669_v44  ;;  %v1738_v41 = vld [vmem:[#allocation5 + $0x1060] sm:$0xff]  ;;  %v1732_v44 = vld [vmem:[#allocation5 + $0x1030] sm:$0xff] }
 0x2ed   :  { %v1740_v45 = vld [vmem:[#allocation5 + $0x1070] sm:$0xff] }
 0x2ee   :  { %4765 = vmatpush1.bf16.msra.mxu0 %v4764_v38  ;;  %v1683_v38 = vld [vmem:[#allocation5 + $0xea8] sm:$0xff]  ;;  %v5048_v56 = vpack.c.bf16 %v1740_v45, %v1732_v44  ;;  %v1818_v44 = vld [vmem:[#allocation5 + $0x12e0] sm:$0xff]  ;;  %v1812_v45 = vld [vmem:[#allocation5 + $0x12b0] sm:$0xff] }
 0x2ef   :  { %5013 = vmatpush1.bf16.msra.mxu1 %v5012_v60  ;;  %4767 = vmatprep.subr.bf16.mxu0 %v4766_v61  ;;  %v1691_v60 = vld [vmem:[#allocation5 + $0xee8] sm:$0xff]  ;;  %v1685_v61 = vld [vmem:[#allocation5 + $0xeb8] sm:$0xff] }
 0x2f0   :  { %5015 = vmatprep.subr.bf16.mxu1 %v5014_v63  ;;  %v4786_v63 = vpack.c.bf16 %v1691_v60, %v1683_v38  ;;  %v5034_v27 = vpack.c.bf16 %v1693_v10, %v1685_v61  ;;  %v1748_v38 = vld [vmem:[#allocation5 + $0x10b0] sm:$0xff]  ;;  %v1763_v10 = vld [vmem:[#allocation5 + $0x1128] sm:$0xff] }
 0x2f1   :  { %v1756_v61 = vld [vmem:[#allocation5 + $0x10f0] sm:$0xff] }
 0x2f2   :  { %4769 = vmatpush1.bf16.msra.mxu0 %v4768_v4  ;;  %v1699_v4 = vld [vmem:[#allocation5 + $0xf28] sm:$0xff]  ;;  %v5052_v16 = vpack.c.bf16 %v1756_v61, %v1748_v38  ;;  %v1834_v61 = vld [vmem:[#allocation5 + $0x1360] sm:$0xff] }
 0x2f3   :  { %5017 = vmatpush1.bf16.msra.mxu1 %v5016_v6  ;;  %4771 = vmatprep.subr.bf16.mxu0 %v4770_v7  ;;  %v1707_v6 = vld [vmem:[#allocation5 + $0xf68] sm:$0xff]  ;;  %v1701_v7 = vld [vmem:[#allocation5 + $0xf38] sm:$0xff] }
 0x2f4   :  { %5019 = vmatprep.subr.bf16.mxu1 %v5018_v12  ;;  %v4790_v12 = vpack.c.bf16 %v1707_v6, %v1699_v4  ;;  %v5038_v18 = vpack.c.bf16 %v1709_v42, %v1701_v7  ;;  %v1770_v4 = vld [vmem:[#allocation5 + $0x1160] sm:$0xff]  ;;  %v1764_v6 = vld [vmem:[#allocation5 + $0x1130] sm:$0xff] }
 0x2f5   :  { %v1772_v42 = vld [vmem:[#allocation5 + $0x1170] sm:$0xff]  ;;  %v4808_v13 = vpack.c.bf16 %v1770_v4, %v1762_v3 }
 0x2f6   :  { %4773 = vmatpush1.bf16.msra.mxu0 %v4772_v19  ;;  %v1715_v19 = vld [vmem:[#allocation5 + $0xfa8] sm:$0xff]  ;;  %v5056_v14 = vpack.c.bf16 %v1772_v42, %v1764_v6  ;;  %v1842_v6 = vld [vmem:[#allocation5 + $0x13a0] sm:$0xff]  ;;  %v1844_v42 = vld [vmem:[#allocation5 + $0x13b0] sm:$0xff] }
 0x2f7   :  { %5021 = vmatpush1.bf16.msra.mxu1 %v5020_v20  ;;  %4775 = vmatprep.subr.bf16.mxu0 %v4774_v59  ;;  %v1723_v20 = vld [vmem:[#allocation5 + $0xfe8] sm:$0xff]  ;;  %v1717_v59 = vld [vmem:[#allocation5 + $0xfb8] sm:$0xff] }
 0x2f8   :  { %5023 = vmatprep.subr.bf16.mxu1 %v5022_v23  ;;  %v4794_v23 = vpack.c.bf16 %v1723_v20, %v1715_v19  ;;  %v5042_v26 = vpack.c.bf16 %v1725_v21, %v1717_v59  ;;  %v1780_v19 = vld [vmem:[#allocation5 + $0x11b0] sm:$0xff]  ;;  %v1795_v59 = vld [vmem:[#allocation5 + $0x1228] sm:$0xff] }
 0x2f9   :  { %v1803_v21 = vld [vmem:[#allocation5 + $0x1268] sm:$0xff] }
 0x2fa   :  { %4777 = vmatpush1.bf16.msra.mxu0 %v4776_v30  ;;  %v1731_v30 = vld [vmem:[#allocation5 + $0x1028] sm:$0xff]  ;;  %v4814_v25 = vpack.c.bf16 %v1803_v21, %v1795_v59  ;;  %v1868_v21 = vld [vmem:[#allocation5 + $0x1470] sm:$0xff] }
 0x2fb   :  { %5025 = vmatpush1.bf16.msra.mxu1 %v5024_v48  ;;  %4779 = vmatprep.subr.bf16.mxu0 %v4778_v31  ;;  %v1739_v48 = vld [vmem:[#allocation5 + $0x1068] sm:$0xff]  ;;  %v1733_v31 = vld [vmem:[#allocation5 + $0x1038] sm:$0xff] }
 0x2fc   :  { %5027 = vmatprep.subr.bf16.mxu1 %v5026_v53  ;;  %v4798_v53 = vpack.c.bf16 %v1739_v48, %v1731_v30  ;;  %v5046_v43 = vpack.c.bf16 %v1741_v32, %v1733_v31  ;;  %v1804_v48 = vld [vmem:[#allocation5 + $0x1270] sm:$0xff]  ;;  %v1811_v31 = vld [vmem:[#allocation5 + $0x12a8] sm:$0xff] }
 0x2fd   :  { %v1819_v32 = vld [vmem:[#allocation5 + $0x12e8] sm:$0xff] }
 0x2fe   :  { %4781 = vmatpush1.bf16.msra.mxu0 %v4780_v49  ;;  %v1747_v49 = vld [vmem:[#allocation5 + $0x10a8] sm:$0xff] }
 0x2ff   :  { %5029 = vmatpush1.bf16.msra.mxu1 %v5028_v51  ;;  %4783 = vmatprep.subr.bf16.mxu0 %v4782_v54  ;;  %v1755_v51 = vld [vmem:[#allocation5 + $0x10e8] sm:$0xff]  ;;  %v4800_v54 = vpack.c.bf16 %v1738_v41, %v1730_v40  ;;  %v5064_v40 = vpack.c.bf16 %v1804_v48, %v1796_v29  ;;  %v4818_v41 = vpack.c.bf16 %v1819_v32, %v1811_v31  ;;  %v1874_v29 = vld [vmem:[#allocation5 + $0x14a0] sm:$0xff]  ;;  %v1876_v48 = vld [vmem:[#allocation5 + $0x14b0] sm:$0xff] }
 0x300   :  { %5031 = vmatprep.subr.bf16.mxu1 %v5030_v57  ;;  %v1746_v57 = vld [vmem:[#allocation5 + $0x10a0] sm:$0xff]  ;;  %v4802_v60 = vpack.c.bf16 %v1755_v51, %v1747_v49  ;;  %v1820_v51 = vld [vmem:[#allocation5 + $0x12f0] sm:$0xff] }
 0x301   :  { %v4804_v1 = vpack.c.bf16 %v1754_v58, %v1746_v57  ;;  %v5068_v58 = vpack.c.bf16 %v1820_v51, %v1812_v45  ;;  %v1884_v32 = vld [vmem:[#allocation5 + $0x14f0] sm:$0xff]  ;;  %v1890_v45 = vld [vmem:[#allocation5 + $0x1520] sm:$0xff] }
 0x302   :  { %4785 = vmatpush1.bf16.msra.mxu0 %v4784_v15  ;;  %v1771_v15 = vld [vmem:[#allocation5 + $0x1168] sm:$0xff]  ;;  %v1892_v51 = vld [vmem:[#allocation5 + $0x1530] sm:$0xff] }
 0x303   :  { %5033 = vmatpush1.bf16.msra.mxu1 %v5032_v62  ;;  %4787 = vmatprep.subr.bf16.mxu0 %v4786_v63  ;;  %v5050_v62 = vpack.c.bf16 %v1757_v55, %v1749_v5  ;;  %v1765_v63 = vld [vmem:[#allocation5 + $0x1138] sm:$0xff]  ;;  %v1835_v5 = vld [vmem:[#allocation5 + $0x1368] sm:$0xff] }
 0x304   :  { %5035 = vmatprep.subr.bf16.mxu1 %v5034_v27  ;;  %v4806_v27 = vpack.c.bf16 %v1771_v15, %v1763_v10  ;;  %v5054_v7 = vpack.c.bf16 %v1773_v0, %v1765_v63  ;;  %v1829_v55 = vld [vmem:[#allocation5 + $0x1338] sm:$0xff]  ;;  %v1828_v10 = vld [vmem:[#allocation5 + $0x1330] sm:$0xff]  ;;  %v1843_v63 = vld [vmem:[#allocation5 + $0x13a8] sm:$0xff] }
 0x305   :  { %v1851_v0 = vld [vmem:[#allocation5 + $0x13e8] sm:$0xff] }
 0x306   :  { %4789 = vmatpush1.bf16.msra.mxu0 %v4788_v9  ;;  %v1779_v9 = vld [vmem:[#allocation5 + $0x11a8] sm:$0xff]  ;;  %v4826_v4 = vpack.c.bf16 %v1851_v0, %v1843_v63  ;;  %v1916_v0 = vld [vmem:[#allocation5 + $0x15f0] sm:$0xff] }
 0x307   :  { %5037 = vmatpush1.bf16.msra.mxu1 %v5036_v11  ;;  %4791 = vmatprep.subr.bf16.mxu0 %v4790_v12  ;;  %v1787_v11 = vld [vmem:[#allocation5 + $0x11e8] sm:$0xff]  ;;  %v1781_v12 = vld [vmem:[#allocation5 + $0x11b8] sm:$0xff] }
 0x308   :  { %5039 = vmatprep.subr.bf16.mxu1 %v5038_v18  ;;  %v4810_v17 = vpack.c.bf16 %v1787_v11, %v1779_v9  ;;  %v1778_v18 = vld [vmem:[#allocation5 + $0x11a0] sm:$0xff]  ;;  %v1852_v11 = vld [vmem:[#allocation5 + $0x13f0] sm:$0xff] }
 0x30a   :  { %4793 = vmatpush1.bf16.msra.mxu0 %v4792_v22  ;;  %v1797_v22 = vld [vmem:[#allocation5 + $0x1238] sm:$0xff] }
 0x30b   :  { %5041 = vmatpush1.bf16.msra.mxu1 %v5040_v2  ;;  %4795 = vmatprep.subr.bf16.mxu0 %v4794_v23  ;;  %v1805_v2 = vld [vmem:[#allocation5 + $0x1278] sm:$0xff]  ;;  %v4812_v23 = vpack.c.bf16 %v1786_v52, %v1778_v18  ;;  %v5076_v18 = vpack.c.bf16 %v1852_v11, %v1844_v42  ;;  %v1922_v42 = vld [vmem:[#allocation5 + $0x1620] sm:$0xff]  ;;  %v1924_v11 = vld [vmem:[#allocation5 + $0x1630] sm:$0xff] }
 0x30c   :  { %5043 = vmatprep.subr.bf16.mxu1 %v5042_v26  ;;  %v1802_v26 = vld [vmem:[#allocation5 + $0x1260] sm:$0xff]  ;;  %v5062_v30 = vpack.c.bf16 %v1805_v2, %v1797_v22  ;;  %v1875_v22 = vld [vmem:[#allocation5 + $0x14a8] sm:$0xff] }
 0x30d   :  { %v1883_v2 = vld [vmem:[#allocation5 + $0x14e8] sm:$0xff] }
 0x30e   :  { %4797 = vmatpush1.bf16.msra.mxu0 %v4796_v34  ;;  %v1813_v34 = vld [vmem:[#allocation5 + $0x12b8] sm:$0xff] }
 0x30f   :  { %5045 = vmatpush1.bf16.msra.mxu1 %v5044_v35  ;;  %4799 = vmatprep.subr.bf16.mxu0 %v4798_v53  ;;  %v1821_v35 = vld [vmem:[#allocation5 + $0x12f8] sm:$0xff]  ;;  %v4816_v53 = vpack.c.bf16 %v1802_v26, %v1794_v50  ;;  %v4834_v26 = vpack.c.bf16 %v1883_v2, %v1875_v22  ;;  %v1948_v2 = vld [vmem:[#allocation5 + $0x16f0] sm:$0xff] }
 0x310   :  { %5047 = vmatprep.subr.bf16.mxu1 %v5046_v43  ;;  %v1810_v43 = vld [vmem:[#allocation5 + $0x12a0] sm:$0xff]  ;;  %v5066_v49 = vpack.c.bf16 %v1821_v35, %v1813_v34  ;;  %v1891_v34 = vld [vmem:[#allocation5 + $0x1528] sm:$0xff] }
 0x311   :  { %2922 = vmatmul.mubr.f32.vlgmr.msra.gmra.mrb[6].mxu0 %v5756_v47  ;;  %v4820_v57 = vpack.c.bf16 %v1818_v44, %v1810_v43  ;;  %v1899_v35 = vld [vmem:[#allocation5 + $0x1568] sm:$0xff]  ;;  %v5084_v43 = vpack.c.bf16 %v1884_v32, %v1876_v48  ;;  %v1954_v48 = vld [vmem:[#allocation5 + $0x1720] sm:$0xff]  ;;  %v1956_v32 = vld [vmem:[#allocation5 + $0x1730] sm:$0xff] }
 0x312   :  { %3206 = vmatmul.mubr.f32.vlgmr.msra.gmra.mrb[6].mxu1 %v5756_v47  ;;  %4801 = vmatpush1.bf16.msra.mxu0 %v4800_v54  ;;  %v1789_v47 = vld [vmem:[#allocation5 + $0x11f8] sm:$0xff]  ;;  %v1827_v54 = vld [vmem:[#allocation5 + $0x1328] sm:$0xff]  ;;  %v4838_v44 = vpack.c.bf16 %v1899_v35, %v1891_v34  ;;  %v1964_v35 = vld [vmem:[#allocation5 + $0x1770] sm:$0xff] }
 0x313   :  { %2992 = vmatprep.mubr.f32.mxu0 %v5769_v8  ;;  %5049 = vmatpush1.bf16.msra.mxu1 %v5048_v56  ;;  %v5058_v20 = vpack.c.bf16 %v1789_v47, %v1781_v12  ;;  %v1837_v56 = vld [vmem:[#allocation5 + $0x1378] sm:$0xff]  ;;  %v4822_v38 = vpack.c.bf16 %v1835_v5, %v1827_v54  ;;  %v1859_v12 = vld [vmem:[#allocation5 + $0x1428] sm:$0xff]  ;;  %v1900_v5 = vld [vmem:[#allocation5 + $0x1570] sm:$0xff] }
 0x314   :  { %3276 = vmatprep.mubr.f32.mxu1 %v5769_v8  ;;  %4803 = vmatprep.subr.bf16.mxu0 %v4802_v60  ;;  %v1788_v8 = vld [vmem:[#allocation5 + $0x11f0] sm:$0xff]  ;;  %v1826_v60 = vld [vmem:[#allocation5 + $0x1320] sm:$0xff]  ;;  %v5070_v15 = vpack.c.bf16 %v1837_v56, %v1829_v55  ;;  %v1867_v47 = vld [vmem:[#allocation5 + $0x1468] sm:$0xff] }
 0x315   :  { %5051 = vmatprep.subr.bf16.mxu1 %v5050_v62  ;;  %v5060_v24 = vpack.c.bf16 %v1788_v8, %v1780_v19  ;;  %v1836_v62 = vld [vmem:[#allocation5 + $0x1370] sm:$0xff]  ;;  %v4830_v52 = vpack.c.bf16 %v1867_v47, %v1859_v12  ;;  %v1858_v19 = vld [vmem:[#allocation5 + $0x1420] sm:$0xff]  ;;  %v1907_v55 = vld [vmem:[#allocation5 + $0x15a8] sm:$0xff] }
 0x316   :  { %4805 = vmatpush1.bf16.msra.mxu0 %v4804_v1  ;;  %v1845_v1 = vld [vmem:[#allocation5 + $0x13b8] sm:$0xff]  ;;  %v5072_v3 = vpack.c.bf16 %v1836_v62, %v1828_v10  ;;  %v1860_v8 = vld [vmem:[#allocation5 + $0x1430] sm:$0xff]  ;;  %v1915_v56 = vld [vmem:[#allocation5 + $0x15e8] sm:$0xff] }
 0x317   :  { %5053 = vmatpush1.bf16.msra.mxu1 %v5052_v16  ;;  %4807 = vmatprep.subr.bf16.mxu0 %v4806_v27  ;;  %v1853_v16 = vld [vmem:[#allocation5 + $0x13f8] sm:$0xff]  ;;  %v4824_v27 = vpack.c.bf16 %v1834_v61, %v1826_v60  ;;  %v5080_v50 = vpack.c.bf16 %v1868_v21, %v1860_v8  ;;  %v5088_v60 = vpack.c.bf16 %v1900_v5, %v1892_v51  ;;  %v1906_v10 = vld [vmem:[#allocation5 + $0x15a0] sm:$0xff]  ;;  %v1908_v62 = vld [vmem:[#allocation5 + $0x15b0] sm:$0xff] }
 0x318   :  { %5055 = vmatprep.subr.bf16.mxu1 %v5054_v7  ;;  %v1850_v7 = vld [vmem:[#allocation5 + $0x13e0] sm:$0xff]  ;;  %v5074_v9 = vpack.c.bf16 %v1853_v16, %v1845_v1  ;;  %v4842_v61 = vpack.c.bf16 %v1915_v56, %v1907_v55  ;;  %v1923_v1 = vld [vmem:[#allocation5 + $0x1628] sm:$0xff]  ;;  %v1932_v47 = vld [vmem:[#allocation5 + $0x1670] sm:$0xff] }
 0x319   :  { %v1931_v16 = vld [vmem:[#allocation5 + $0x1668] sm:$0xff]  ;;  %v1938_v8 = vld [vmem:[#allocation5 + $0x16a0] sm:$0xff]  ;;  %v1940_v21 = vld [vmem:[#allocation5 + $0x16b0] sm:$0xff] }
 0x31a   :  { %4809 = vmatpush1.bf16.msra.mxu0 %v4808_v13  ;;  %v1861_v13 = vld [vmem:[#allocation5 + $0x1438] sm:$0xff]  ;;  %v1970_v51 = vld [vmem:[#allocation5 + $0x17a0] sm:$0xff]  ;;  %v1972_v5 = vld [vmem:[#allocation5 + $0x17b0] sm:$0xff] }
 0x31b   :  { %5057 = vmatpush1.bf16.msra.mxu1 %v5056_v14  ;;  %4811 = vmatprep.subr.bf16.mxu0 %v4810_v17  ;;  %v1869_v14 = vld [vmem:[#allocation5 + $0x1478] sm:$0xff]  ;;  %v4828_v17 = vpack.c.bf16 %v1850_v7, %v1842_v6  ;;  %v5092_v6 = vpack.c.bf16 %v1916_v0, %v1908_v62  ;;  %v4846_v7 = vpack.c.bf16 %v1931_v16, %v1923_v1  ;;  %v1980_v56 = vld [vmem:[#allocation5 + $0x17f0] sm:$0xff]  ;;  %v1986_v62 = vld [vmem:[#allocation5 + $0x1820] sm:$0xff] }
 0x31c   :  { %5059 = vmatprep.subr.bf16.mxu1 %v5058_v20  ;;  %v1866_v20 = vld [vmem:[#allocation5 + $0x1460] sm:$0xff]  ;;  %v5078_v59 = vpack.c.bf16 %v1869_v14, %v1861_v13  ;;  %v1939_v13 = vld [vmem:[#allocation5 + $0x16a8] sm:$0xff]  ;;  %v1988_v1 = vld [vmem:[#allocation5 + $0x1830] sm:$0xff] }
 0x31d   :  { %v1947_v14 = vld [vmem:[#allocation5 + $0x16e8] sm:$0xff]  ;;  %v1996_v16 = vld [vmem:[#allocation5 + $0x1870] sm:$0xff] }
 0x31e   :  { %4813 = vmatpush1.bf16.msra.mxu0 %v4812_v23  ;;  %v1877_v23 = vld [vmem:[#allocation5 + $0x14b8] sm:$0xff] }
 0x31f   :  { %5061 = vmatpush1.bf16.msra.mxu1 %v5060_v24  ;;  %4815 = vmatprep.subr.bf16.mxu0 %v4814_v25  ;;  %v1885_v24 = vld [vmem:[#allocation5 + $0x14f8] sm:$0xff]  ;;  %v4832_v25 = vpack.c.bf16 %v1866_v20, %v1858_v19  ;;  %v5096_v19 = vpack.c.bf16 %v1932_v47, %v1924_v11  ;;  %v4850_v20 = vpack.c.bf16 %v1947_v14, %v1939_v13  ;;  %v2010_v11 = vld [vmem:[#allocation5 + $0x18e0] sm:$0xff]  ;;  %v2012_v13 = vld [vmem:[#allocation5 + $0x18f0] sm:$0xff] }
 0x320   :  { %5063 = vmatprep.subr.bf16.mxu1 %v5062_v30  ;;  %v1882_v30 = vld [vmem:[#allocation5 + $0x14e0] sm:$0xff]  ;;  %v5082_v31 = vpack.c.bf16 %v1885_v24, %v1877_v23  ;;  %v1955_v23 = vld [vmem:[#allocation5 + $0x1728] sm:$0xff] }
 0x321   :  { %v1963_v24 = vld [vmem:[#allocation5 + $0x1768] sm:$0xff] }
 0x322   :  { %4817 = vmatpush1.bf16.msra.mxu0 %v4816_v53  ;;  %v1893_v53 = vld [vmem:[#allocation5 + $0x1538] sm:$0xff]  ;;  %v2019_v14 = vld [vmem:[#allocation5 + $0x1928] sm:$0xff] }
 0x323   :  { %5065 = vmatpush1.bf16.msra.mxu1 %v5064_v40  ;;  %4819 = vmatprep.subr.bf16.mxu0 %v4818_v41  ;;  %v1901_v40 = vld [vmem:[#allocation5 + $0x1578] sm:$0xff]  ;;  %v4836_v41 = vpack.c.bf16 %v1882_v30, %v1874_v29  ;;  %v5100_v29 = vpack.c.bf16 %v1948_v2, %v1940_v21  ;;  %v4854_v30 = vpack.c.bf16 %v1963_v24, %v1955_v23  ;;  %v2018_v21 = vld [vmem:[#allocation5 + $0x1920] sm:$0xff]  ;;  %v2020_v2 = vld [vmem:[#allocation5 + $0x1930] sm:$0xff] }
 0x324   :  { %5067 = vmatprep.subr.bf16.mxu1 %v5066_v49  ;;  %v1898_v49 = vld [vmem:[#allocation5 + $0x1560] sm:$0xff]  ;;  %v5086_v54 = vpack.c.bf16 %v1901_v40, %v1893_v53  ;;  %v1971_v53 = vld [vmem:[#allocation5 + $0x17a8] sm:$0xff]  ;;  %v2028_v24 = vld [vmem:[#allocation5 + $0x1970] sm:$0xff] }
 0x325   :  { %v1979_v40 = vld [vmem:[#allocation5 + $0x17e8] sm:$0xff] }
 0x326   :  { %4821 = vmatpush1.bf16.msra.mxu0 %v4820_v57  ;;  %v1909_v57 = vld [vmem:[#allocation5 + $0x15b8] sm:$0xff] }
 0x327   :  { %5069 = vmatpush1.bf16.msra.mxu1 %v5068_v58  ;;  %4823 = vmatprep.subr.bf16.mxu0 %v4822_v38  ;;  %v1917_v58 = vld [vmem:[#allocation5 + $0x15f8] sm:$0xff]  ;;  %v4840_v38 = vpack.c.bf16 %v1898_v49, %v1890_v45  ;;  %v5104_v45 = vpack.c.bf16 %v1964_v35, %v1956_v32  ;;  %v4858_v49 = vpack.c.bf16 %v1979_v40, %v1971_v53  ;;  %v2042_v32 = vld [vmem:[#allocation5 + $0x19e0] sm:$0xff]  ;;  %v2051_v53 = vld [vmem:[#allocation5 + $0x1a28] sm:$0xff] }
 0x328   :  { %5071 = vmatprep.subr.bf16.mxu1 %v5070_v15  ;;  %v1914_v15 = vld [vmem:[#allocation5 + $0x15e0] sm:$0xff]  ;;  %v5090_v63 = vpack.c.bf16 %v1917_v58, %v1909_v57  ;;  %v1987_v57 = vld [vmem:[#allocation5 + $0x1828] sm:$0xff] }
 0x329   :  { %v1995_v58 = vld [vmem:[#allocation5 + $0x1868] sm:$0xff] }
 0x32a   :  { %4825 = vmatpush1.bf16.msra.mxu0 %v4824_v27  ;;  %v1925_v27 = vld [vmem:[#allocation5 + $0x1638] sm:$0xff]  ;;  %v2059_v40 = vld [vmem:[#allocation5 + $0x1a68] sm:$0xff] }
 0x32b   :  { %5073 = vmatpush1.bf16.msra.mxu1 %v5072_v3  ;;  %4827 = vmatprep.subr.bf16.mxu0 %v4826_v4  ;;  %v1933_v3 = vld [vmem:[#allocation5 + $0x1678] sm:$0xff]  ;;  %v4844_v4 = vpack.c.bf16 %v1914_v15, %v1906_v10  ;;  %v5108_v10 = vpack.c.bf16 %v1980_v56, %v1972_v5  ;;  %v4862_v15 = vpack.c.bf16 %v1995_v58, %v1987_v57  ;;  %v2052_v5 = vld [vmem:[#allocation5 + $0x1a30] sm:$0xff]  ;;  %v2067_v57 = vld [vmem:[#allocation5 + $0x1aa8] sm:$0xff] }
 0x32c   :  { %5075 = vmatprep.subr.bf16.mxu1 %v5074_v9  ;;  %v1930_v9 = vld [vmem:[#allocation5 + $0x1660] sm:$0xff]  ;;  %v5094_v12 = vpack.c.bf16 %v1933_v3, %v1925_v27  ;;  %v2003_v27 = vld [vmem:[#allocation5 + $0x18a8] sm:$0xff]  ;;  %v2060_v56 = vld [vmem:[#allocation5 + $0x1a70] sm:$0xff] }
 0x32d   :  { %v2011_v3 = vld [vmem:[#allocation5 + $0x18e8] sm:$0xff] }
 0x32e   :  { %4829 = vmatpush1.bf16.msra.mxu0 %v4828_v17  ;;  %v1941_v17 = vld [vmem:[#allocation5 + $0x16b8] sm:$0xff]  ;;  %v4866_v47 = vpack.c.bf16 %v2011_v3, %v2003_v27  ;;  %v2075_v58 = vld [vmem:[#allocation5 + $0x1ae8] sm:$0xff] }
 0x32f   :  { %5077 = vmatpush1.bf16.msra.mxu1 %v5076_v18  ;;  %4831 = vmatprep.subr.bf16.mxu0 %v4830_v52  ;;  %v1949_v18 = vld [vmem:[#allocation5 + $0x16f8] sm:$0xff]  ;;  %v4848_v52 = vpack.c.bf16 %v1930_v9, %v1922_v42  ;;  %v5112_v42 = vpack.c.bf16 %v1996_v16, %v1988_v1  ;;  %v2002_v9 = vld [vmem:[#allocation5 + $0x18a0] sm:$0xff]  ;;  %v2076_v16 = vld [vmem:[#allocation5 + $0x1af0] sm:$0xff] }
 0x330   :  { %5079 = vmatprep.subr.bf16.mxu1 %v5078_v59  ;;  %v1946_v59 = vld [vmem:[#allocation5 + $0x16e0] sm:$0xff]  ;;  %v5098_v22 = vpack.c.bf16 %v1949_v18, %v1941_v17  ;;  %v2027_v17 = vld [vmem:[#allocation5 + $0x1968] sm:$0xff] }
 0x331   :  { %v2083_v27 = vld [vmem:[#allocation5 + $0x1b28] sm:$0xff] }
 0x332   :  { %4833 = vmatpush1.bf16.msra.mxu0 %v4832_v25  ;;  %v1957_v25 = vld [vmem:[#allocation5 + $0x1738] sm:$0xff]  ;;  %v2091_v3 = vld [vmem:[#allocation5 + $0x1b68] sm:$0xff] }
 0x333   :  { %5081 = vmatpush1.bf16.msra.mxu1 %v5080_v50  ;;  %4835 = vmatprep.subr.bf16.mxu0 %v4834_v26  ;;  %v1965_v50 = vld [vmem:[#allocation5 + $0x1778] sm:$0xff]  ;;  %v4852_v26 = vpack.c.bf16 %v1946_v59, %v1938_v8  ;;  %v4870_v59 = vpack.c.bf16 %v2027_v17, %v2019_v14 }
 0x334   :  { %5083 = vmatprep.subr.bf16.mxu1 %v5082_v31  ;;  %v1962_v31 = vld [vmem:[#allocation5 + $0x1760] sm:$0xff]  ;;  %v5102_v34 = vpack.c.bf16 %v1965_v50, %v1957_v25  ;;  %v2035_v25 = vld [vmem:[#allocation5 + $0x19a8] sm:$0xff] }
 0x335   :  { %v2043_v50 = vld [vmem:[#allocation5 + $0x19e8] sm:$0xff] }
 0x336   :  { %4837 = vmatpush1.bf16.msra.mxu0 %v4836_v41  ;;  %v1973_v41 = vld [vmem:[#allocation5 + $0x17b8] sm:$0xff] }
 0x337   :  { %5085 = vmatpush1.bf16.msra.mxu1 %v5084_v43  ;;  %4839 = vmatprep.subr.bf16.mxu0 %v4838_v44  ;;  %v1981_v43 = vld [vmem:[#allocation5 + $0x17f8] sm:$0xff]  ;;  %v4856_v44 = vpack.c.bf16 %v1962_v31, %v1954_v48  ;;  %v4874_v48 = vpack.c.bf16 %v2043_v50, %v2035_v25  ;;  %v2034_v31 = vld [vmem:[#allocation5 + $0x19a0] sm:$0xff] }
 0x338   :  { %5087 = vmatprep.subr.bf16.mxu1 %v5086_v54  ;;  %v1978_v54 = vld [vmem:[#allocation5 + $0x17e0] sm:$0xff]  ;;  %v5106_v55 = vpack.c.bf16 %v1981_v43, %v1973_v41  ;;  %v2053_v41 = vld [vmem:[#allocation5 + $0x1a38] sm:$0xff] }
 0x339   :  { %v2061_v43 = vld [vmem:[#allocation5 + $0x1a78] sm:$0xff]  ;;  %v2098_v50 = vld [vmem:[#allocation5 + $0x1ba0] sm:$0xff] }
 0x33a   :  { %4841 = vmatpush1.bf16.msra.mxu0 %v4840_v38  ;;  %v1989_v38 = vld [vmem:[#allocation5 + $0x1838] sm:$0xff] }
 0x33b   :  { %5089 = vmatpush1.bf16.msra.mxu1 %v5088_v60  ;;  %4843 = vmatprep.subr.bf16.mxu0 %v4842_v61  ;;  %v1997_v60 = vld [vmem:[#allocation5 + $0x1878] sm:$0xff]  ;;  %v4860_v61 = vpack.c.bf16 %v1978_v54, %v1970_v51  ;;  %v2050_v51 = vld [vmem:[#allocation5 + $0x1a20] sm:$0xff] }
 0x33c   :  { %5091 = vmatprep.subr.bf16.mxu1 %v5090_v63  ;;  %v1994_v63 = vld [vmem:[#allocation5 + $0x1860] sm:$0xff]  ;;  %v5110_v0 = vpack.c.bf16 %v1997_v60, %v1989_v38  ;;  %v2069_v38 = vld [vmem:[#allocation5 + $0x1ab8] sm:$0xff] }
 0x33d   :  { %v2058_v54 = vld [vmem:[#allocation5 + $0x1a60] sm:$0xff]  ;;  %v2077_v60 = vld [vmem:[#allocation5 + $0x1af8] sm:$0xff] }
 0x33e   :  { %4845 = vmatpush1.bf16.msra.mxu0 %v4844_v4  ;;  %v4864_v4 = vpack.c.bf16 %v1994_v63, %v1986_v62  ;;  %v2066_v62 = vld [vmem:[#allocation5 + $0x1aa0] sm:$0xff]  ;;  %v5130_v1 = vpack.c.bf16 %v2077_v60, %v2069_v38  ;;  %v2132_v60 = vld [vmem:[#allocation5 + $0x1cb0] sm:$0xff] }
 0x33f   :  { %5093 = vmatpush1.bf16.msra.mxu1 %v5092_v6  ;;  %4847 = vmatprep.subr.bf16.mxu0 %v4846_v7  ;;  %v2005_v6 = vld [vmem:[#allocation5 + $0x18b8] sm:$0xff]  ;;  %v2074_v63 = vld [vmem:[#allocation5 + $0x1ae0] sm:$0xff] }
 0x340   :  { %5095 = vmatprep.subr.bf16.mxu1 %v5094_v12  ;;  %v2013_v7 = vld [vmem:[#allocation5 + $0x18f8] sm:$0xff]  ;;  %v2004_v12 = vld [vmem:[#allocation5 + $0x18b0] sm:$0xff]  ;;  %v2138_v38 = vld [vmem:[#allocation5 + $0x1ce0] sm:$0xff] }
 0x341   :  { %v5114_v18 = vpack.c.bf16 %v2013_v7, %v2005_v6  ;;  %v5116_v8 = vpack.c.bf16 %v2012_v13, %v2004_v12  ;;  %v2093_v6 = vld [vmem:[#allocation5 + $0x1b78] sm:$0xff]  ;;  %v4884_v7 = vpack.c.bf16 %v2074_v63, %v2066_v62  ;;  %v2082_v12 = vld [vmem:[#allocation5 + $0x1b20] sm:$0xff]  ;;  %v2084_v13 = vld [vmem:[#allocation5 + $0x1b30] sm:$0xff] }
 0x342   :  { %4849 = vmatpush1.bf16.msra.mxu0 %v4848_v52  ;;  %v2021_v52 = vld [vmem:[#allocation5 + $0x1938] sm:$0xff]  ;;  %v2155_v62 = vld [vmem:[#allocation5 + $0x1d68] sm:$0xff] }
 0x343   :  { %5097 = vmatpush1.bf16.msra.mxu1 %v5096_v19  ;;  %4851 = vmatprep.subr.bf16.mxu0 %v4850_v20  ;;  %v2029_v19 = vld [vmem:[#allocation5 + $0x1978] sm:$0xff]  ;;  %v4868_v20 = vpack.c.bf16 %v2010_v11, %v2002_v9  ;;  %v4886_v11 = vpack.c.bf16 %v2091_v3, %v2083_v27  ;;  %v2146_v3 = vld [vmem:[#allocation5 + $0x1d20] sm:$0xff] }
 0x344   :  { %5099 = vmatprep.subr.bf16.mxu1 %v5098_v22  ;;  %v2026_v22 = vld [vmem:[#allocation5 + $0x1960] sm:$0xff]  ;;  %v5118_v23 = vpack.c.bf16 %v2029_v19, %v2021_v52  ;;  %v2092_v52 = vld [vmem:[#allocation5 + $0x1b70] sm:$0xff]  ;;  %v2099_v19 = vld [vmem:[#allocation5 + $0x1ba8] sm:$0xff] }
 0x345   :  { %v2149_v63 = vld [vmem:[#allocation5 + $0x1d38] sm:$0xff] }
 0x346   :  { %4853 = vmatpush1.bf16.msra.mxu0 %v4852_v26  ;;  %v2045_v26 = vld [vmem:[#allocation5 + $0x19f8] sm:$0xff] }
 0x347   :  { %5101 = vmatpush1.bf16.msra.mxu1 %v5100_v29  ;;  %4855 = vmatprep.subr.bf16.mxu0 %v4854_v30  ;;  %v4872_v29 = vpack.c.bf16 %v2026_v22, %v2018_v21  ;;  %v5120_v30 = vpack.c.bf16 %v2028_v24, %v2020_v2  ;;  %v2101_v21 = vld [vmem:[#allocation5 + $0x1bb8] sm:$0xff]  ;;  %v5136_v24 = vpack.c.bf16 %v2092_v52, %v2084_v13 }
 0x348   :  { %5103 = vmatprep.subr.bf16.mxu1 %v5102_v34  ;;  %v2036_v34 = vld [vmem:[#allocation5 + $0x19b0] sm:$0xff]  ;;  %v2109_v22 = vld [vmem:[#allocation5 + $0x1bf8] sm:$0xff] }
 0x349   :  { %v2173_v13 = vld [vmem:[#allocation5 + $0x1df8] sm:$0xff] }
 0x34a   :  { %4857 = vmatpush1.bf16.msra.mxu0 %v4856_v44  ;;  %v4876_v44 = vpack.c.bf16 %v2042_v32, %v2034_v31  ;;  %v2123_v31 = vld [vmem:[#allocation5 + $0x1c68] sm:$0xff]  ;;  %v2117_v32 = vld [vmem:[#allocation5 + $0x1c38] sm:$0xff] }
 0x34b   :  { %5105 = vmatpush1.bf16.msra.mxu1 %v5104_v45  ;;  %4859 = vmatprep.subr.bf16.mxu0 %v4858_v49  ;;  %v4878_v49 = vpack.c.bf16 %v2059_v40, %v2051_v53  ;;  %v2114_v40 = vld [vmem:[#allocation5 + $0x1c20] sm:$0xff] }
 0x34c   :  { %5107 = vmatprep.subr.bf16.mxu1 %v5106_v55  ;;  %v5126_v55 = vpack.c.bf16 %v2061_v43, %v2053_v41  ;;  %v2122_v41 = vld [vmem:[#allocation5 + $0x1c60] sm:$0xff]  ;;  %v2116_v43 = vld [vmem:[#allocation5 + $0x1c30] sm:$0xff] }
 0x34e   :  { %4861 = vmatpush1.bf16.msra.mxu0 %v4860_v61  ;;  %v4880_v61 = vpack.c.bf16 %v2058_v54, %v2050_v51  ;;  %v2139_v51 = vld [vmem:[#allocation5 + $0x1ce8] sm:$0xff]  ;;  %v2133_v54 = vld [vmem:[#allocation5 + $0x1cb8] sm:$0xff] }
 0x34f   :  { %5109 = vmatpush1.bf16.msra.mxu1 %v5108_v10  ;;  %4863 = vmatprep.subr.bf16.mxu0 %v4862_v15  ;;  %v5128_v10 = vpack.c.bf16 %v2060_v56, %v2052_v5  ;;  %v4882_v15 = vpack.c.bf16 %v2075_v58, %v2067_v57  ;;  %v2141_v5 = vld [vmem:[#allocation5 + $0x1cf8] sm:$0xff]  ;;  %v2130_v58 = vld [vmem:[#allocation5 + $0x1ca0] sm:$0xff] }
 0x350   :  { %5111 = vmatprep.subr.bf16.mxu1 %v5110_v0  ;;  %v2068_v0 = vld [vmem:[#allocation5 + $0x1ab0] sm:$0xff] }
 0x351   :  { %2993 = vmatmul.mubr.f32.vlgmr.msra.gmra.mrb[6].mxu0 %v5784_v28  ;;  %v5132_v9 = vpack.c.bf16 %v2076_v16, %v2068_v0  ;;  %v2157_v0 = vld [vmem:[#allocation5 + $0x1d78] sm:$0xff] }
 0x352   :  { %3277 = vmatmul.mubr.f32.vlgmr.msra.gmra.mrb[6].mxu1 %v5784_v28  ;;  %4865 = vmatpush1.bf16.msra.mxu0 %v4864_v4  ;;  %v2037_v28 = vld [vmem:[#allocation5 + $0x19b8] sm:$0xff] }
 0x353   :  { %3720 = vmatprep.mubr.msk.f32.mxu0 %vm2214_vm8, %v5789_v33  ;;  %5113 = vmatpush1.bf16.msra.mxu1 %v5112_v42  ;;  %v5122_v35 = vpack.c.bf16 %v2045_v26, %v2037_v28  ;;  %v2085_v4 = vld [vmem:[#allocation5 + $0x1b38] sm:$0xff]  ;;  %v2106_v28 = vld [vmem:[#allocation5 + $0x1be0] sm:$0xff]  ;;  %v2100_v26 = vld [vmem:[#allocation5 + $0x1bb0] sm:$0xff] }
 0x354   :  { %3721 = vmatprep.mubr.msk.f32.mxu1 %vm2214_vm8, %v5789_v33  ;;  %4867 = vmatprep.subr.bf16.mxu0 %v4866_v47  ;;  %v2044_v33 = vld [vmem:[#allocation5 + $0x19f0] sm:$0xff]  ;;  %v2090_v47 = vld [vmem:[#allocation5 + $0x1b60] sm:$0xff] }
 0x355   :  { %5115 = vmatprep.subr.bf16.mxu1 %v5114_v18  ;;  %v5124_v45 = vpack.c.bf16 %v2044_v33, %v2036_v34  ;;  %v5134_v18 = vpack.c.bf16 %v2093_v6, %v2085_v4  ;;  %v2125_v34 = vld [vmem:[#allocation5 + $0x1c78] sm:$0xff]  ;;  %v2154_v4 = vld [vmem:[#allocation5 + $0x1d60] sm:$0xff]  ;;  %v2148_v6 = vld [vmem:[#allocation5 + $0x1d30] sm:$0xff] }
 0x356   :  { %4869 = vmatpush1.bf16.msra.mxu0 %v4868_v20  ;;  %v2107_v20 = vld [vmem:[#allocation5 + $0x1be8] sm:$0xff] }
 0x357   :  { %5117 = vmatpush1.bf16.msra.mxu1 %v5116_v8  ;;  %4871 = vmatprep.subr.bf16.mxu0 %v4870_v59  ;;  %v4890_v25 = vpack.c.bf16 %v2107_v20, %v2099_v19  ;;  %v2162_v20 = vld [vmem:[#allocation5 + $0x1da0] sm:$0xff] }
 0x358   :  { %5119 = vmatprep.subr.bf16.mxu1 %v5118_v23  ;;  %v4888_v23 = vpack.c.bf16 %v2090_v47, %v2082_v12  ;;  %v2171_v12 = vld [vmem:[#allocation5 + $0x1de8] sm:$0xff]  ;;  %v2165_v47 = vld [vmem:[#allocation5 + $0x1db8] sm:$0xff] }
 0x35a   :  { %4873 = vmatpush1.bf16.msra.mxu0 %v4872_v29  ;;  %v5138_v29 = vpack.c.bf16 %v2109_v22, %v2101_v21  ;;  %v2170_v21 = vld [vmem:[#allocation5 + $0x1de0] sm:$0xff]  ;;  %v2164_v22 = vld [vmem:[#allocation5 + $0x1db0] sm:$0xff] }
 0x35b   :  { %5121 = vmatpush1.bf16.msra.mxu1 %v5120_v30  ;;  %4875 = vmatprep.subr.bf16.mxu0 %v4874_v48  ;;  %v2108_v30 = vld [vmem:[#allocation5 + $0x1bf0] sm:$0xff]  ;;  %v2115_v48 = vld [vmem:[#allocation5 + $0x1c28] sm:$0xff] }
 0x35c   :  { %5123 = vmatprep.subr.bf16.mxu1 %v5122_v35  ;;  %v4892_v35 = vpack.c.bf16 %v2106_v28, %v2098_v50  ;;  %v5140_v33 = vpack.c.bf16 %v2108_v30, %v2100_v26  ;;  %v4894_v53 = vpack.c.bf16 %v2123_v31, %v2115_v48  ;;  %v2187_v50 = vld [vmem:[#allocation5 + $0x1e68] sm:$0xff]  ;;  %v2181_v28 = vld [vmem:[#allocation5 + $0x1e38] sm:$0xff]  ;;  %v2178_v31 = vld [vmem:[#allocation5 + $0x1e20] sm:$0xff] }
 0x35d   :  { %v2189_v26 = vld [vmem:[#allocation5 + $0x1e78] sm:$0xff] }
 0x35e   :  { %4877 = vmatpush1.bf16.msra.mxu0 %v4876_v44  ;;  %v5142_v44 = vpack.c.bf16 %v2125_v34, %v2117_v32  ;;  %v2186_v32 = vld [vmem:[#allocation5 + $0x1e60] sm:$0xff]  ;;  %v2180_v34 = vld [vmem:[#allocation5 + $0x1e30] sm:$0xff] }
 0x35f   :  { %5125 = vmatpush1.bf16.msra.mxu1 %v5124_v45  ;;  %4879 = vmatprep.subr.bf16.mxu0 %v4878_v49  ;;  %v2124_v45 = vld [vmem:[#allocation5 + $0x1c70] sm:$0xff]  ;;  %v2131_v49 = vld [vmem:[#allocation5 + $0x1ca8] sm:$0xff] }
 0x360   :  { %5127 = vmatprep.subr.bf16.mxu1 %v5126_v55  ;;  %v4896_v55 = vpack.c.bf16 %v2122_v41, %v2114_v40  ;;  %v5144_v56 = vpack.c.bf16 %v2124_v45, %v2116_v43  ;;  %v4898_v57 = vpack.c.bf16 %v2139_v51, %v2131_v49  ;;  %v2203_v40 = vld [vmem:[#allocation5 + $0x1ee8] sm:$0xff]  ;;  %v2197_v41 = vld [vmem:[#allocation5 + $0x1eb8] sm:$0xff]  ;;  %v2194_v51 = vld [vmem:[#allocation5 + $0x1ea0] sm:$0xff] }
 0x361   :  { %v2205_v43 = vld [vmem:[#allocation5 + $0x1ef8] sm:$0xff] }
 0x362   :  { %4881 = vmatpush1.bf16.msra.mxu0 %v4880_v61  ;;  %v5146_v61 = vpack.c.bf16 %v2141_v5, %v2133_v54  ;;  %v2202_v54 = vld [vmem:[#allocation5 + $0x1ee0] sm:$0xff]  ;;  %v5162_v5 = vpack.c.bf16 %v2205_v43, %v2197_v41  ;;  %v3386_v43 = vld [vmem:[%s6107_s3 + $0xd0] sm:$0xff] }
 0x363   :  { %5129 = vmatpush1.bf16.msra.mxu1 %v5128_v10  ;;  %v5820_v42 = vpop.f32.mrb[4].mxu0  ;;  %4883 = vmatprep.subr.bf16.mxu0 %v4882_v15  ;;  %v2140_v10 = vld [vmem:[#allocation5 + $0x1cf0] sm:$0xff]  ;;  %v2147_v15 = vld [vmem:[#allocation5 + $0x1d28] sm:$0xff]  ;;  %v3384_v41 = vld [vmem:[%s6107_s3 + $0xc0] sm:$0xff] }
 0x364   :  { %v5822_v14 = vpop.f32.mrb[4].mxu1  ;;  %v5824_v17 = vpop.f32.mrb[5].mxu0  ;;  %5131 = vmatprep.subr.bf16.mxu1 %v5130_v1  ;;  %v4900_v1 = vpack.c.bf16 %v2138_v38, %v2130_v58  ;;  %v5148_v16 = vpack.c.bf16 %v2140_v10, %v2132_v60  ;;  %v4902_v27 = vpack.c.bf16 %v2155_v62, %v2147_v15  ;;  %v2211_v38 = vld [vmem:[#allocation5 + $0x1f28] sm:$0xff]  ;;  %v2213_v60 = vld [vmem:[#allocation5 + $0x1f38] sm:$0xff]  ;;  %v3360_v15 = vld [vmem:[%s6107_s3] sm:$0xff] }
 0x365   :  { %v3354_v8 = vmax.f32 %v5820_v42, %v5822_v14  ;;  %v5828_v59 = vpop.f32.mrb[5].mxu1  ;;  %v3363_v10 = vld [vmem:[%s6107_s3 + $0x18] sm:$0xff]  ;;  %v3362_v62 = vld [vmem:[%s6107_s3 + $0x10] sm:$0xff]  ;;  %v3530_v42 = vld [vmem:[%s6108_s4 + $0x80] sm:$0xff] }
 0x366   :  { %v3355_v2 = vmax.f32 %v5824_v17, %v5828_v59  ;;  %4885 = vmatpush1.bf16.msra.mxu0 %v4884_v7  ;;  %v5150_v7 = vpack.c.bf16 %v2157_v0, %v2149_v63  ;;  %v2210_v63 = vld [vmem:[#allocation5 + $0x1f20] sm:$0xff]  ;;  %v3365_v0 = vld [vmem:[%s6107_s3 + $0x28] sm:$0xff] }
 0x367   :  { %5133 = vmatpush1.bf16.msra.mxu1 %v5132_v9  ;;  %4887 = vmatprep.subr.bf16.mxu0 %v4886_v11  ;;  %v2156_v9 = vld [vmem:[#allocation5 + $0x1d70] sm:$0xff]  ;;  %v2163_v11 = vld [vmem:[#allocation5 + $0x1da8] sm:$0xff] }
 0x368   :  { %5135 = vmatprep.subr.bf16.mxu1 %v5134_v18  ;;  %v4904_v18 = vpack.c.bf16 %v2154_v4, %v2146_v3  ;;  %v5152_v52 = vpack.c.bf16 %v2156_v9, %v2148_v6  ;;  %v4906_v19 = vpack.c.bf16 %v2171_v12, %v2163_v11  ;;  %v5168_v3 = vpack.c.bf16 %v3362_v62, %v3360_v15  ;;  %v3364_v6 = vld [vmem:[%s6107_s3 + $0x20] sm:$0xff]  ;;  %v3369_v9 = vld [vmem:[%s6107_s3 + $0x48] sm:$0xff]  ;;  %v3371_v11 = vld [vmem:[%s6107_s3 + $0x58] sm:$0xff] }
 0x369   :  { %v3531_v14 = vld [vmem:[%s6108_s4 + $0x88] sm:$0xff] }
 0x36a   :  { %4889 = vmatpush1.bf16.msra.mxu0 %v4888_v23  ;;  %v5154_v23 = vpack.c.bf16 %v2173_v13, %v2165_v47  ;;  %v5174_v47 = vpack.c.bf16 %v3371_v11, %v3369_v9  ;;  %v3368_v13 = vld [vmem:[%s6107_s3 + $0x40] sm:$0xff]  ;;  %v3407_v9 = vld [vmem:[%s6107_s3 + $0x178] sm:$0xff]  ;;  %v5255_v17 = vpack.c.bf16 %v3531_v14, %v3530_v42 }
 0x36b   :  { %5137 = vmatpush1.bf16.msra.mxu1 %v5136_v24  ;;  %4891 = vmatprep.subr.bf16.mxu0 %v4890_v25  ;;  %v2172_v24 = vld [vmem:[#allocation5 + $0x1df0] sm:$0xff]  ;;  %v2179_v25 = vld [vmem:[#allocation5 + $0x1e28] sm:$0xff] }
 0x36c   :  { %5139 = vmatprep.subr.bf16.mxu1 %v5138_v29  ;;  %v4908_v29 = vpack.c.bf16 %v2170_v21, %v2162_v20  ;;  %v5156_v30 = vpack.c.bf16 %v2172_v24, %v2164_v22  ;;  %v4910_v48 = vpack.c.bf16 %v2187_v50, %v2179_v25  ;;  %v3372_v21 = vld [vmem:[%s6107_s3 + $0x60] sm:$0xff]  ;;  %v3374_v22 = vld [vmem:[%s6107_s3 + $0x70] sm:$0xff]  ;;  %v3379_v24 = vld [vmem:[%s6107_s3 + $0x98] sm:$0xff] }
 0x36d   :  { %v5180_v25 = vpack.c.bf16 %v3374_v22, %v3372_v21  ;;  %v3410_v21 = vld [vmem:[%s6107_s3 + $0x190] sm:$0xff]  ;;  %v3413_v22 = vld [vmem:[%s6107_s3 + $0x1a8] sm:$0xff] }
 0x36e   :  { %4893 = vmatpush1.bf16.msra.mxu0 %v4892_v35  ;;  %v5158_v35 = vpack.c.bf16 %v2189_v26, %v2181_v28  ;;  %v3376_v28 = vld [vmem:[%s6107_s3 + $0x80] sm:$0xff]  ;;  %v3378_v26 = vld [vmem:[%s6107_s3 + $0x90] sm:$0xff] }
 0x36f   :  { %5141 = vmatpush1.bf16.msra.mxu1 %v5140_v33  ;;  %4895 = vmatprep.subr.bf16.mxu0 %v4894_v53  ;;  %v2188_v33 = vld [vmem:[#allocation5 + $0x1e70] sm:$0xff]  ;;  %v2195_v53 = vld [vmem:[#allocation5 + $0x1ea8] sm:$0xff] }
 0x370   :  { %5143 = vmatprep.subr.bf16.mxu1 %v5142_v44  ;;  %v4912_v44 = vpack.c.bf16 %v2186_v32, %v2178_v31  ;;  %v5160_v45 = vpack.c.bf16 %v2188_v33, %v2180_v34  ;;  %v4914_v49 = vpack.c.bf16 %v2203_v40, %v2195_v53  ;;  %v3380_v32 = vld [vmem:[%s6107_s3 + $0xa0] sm:$0xff]  ;;  %v3382_v34 = vld [vmem:[%s6107_s3 + $0xb0] sm:$0xff]  ;;  %v3387_v33 = vld [vmem:[%s6107_s3 + $0xd8] sm:$0xff] }
 0x371   :  { %v5188_v53 = vpack.c.bf16 %v3382_v34, %v3380_v32  ;;  %v3418_v32 = vld [vmem:[%s6107_s3 + $0x1d0] sm:$0xff] }
 0x372   :  { %4897 = vmatpush1.bf16.msra.mxu0 %v4896_v55  ;;  %v2196_v55 = vld [vmem:[#allocation5 + $0x1eb0] sm:$0xff] }
 0x373   :  { %5145 = vmatpush1.bf16.msra.mxu1 %v5144_v56  ;;  %4899 = vmatprep.subr.bf16.mxu0 %v4898_v57  ;;  %v2204_v56 = vld [vmem:[#allocation5 + $0x1ef0] sm:$0xff]  ;;  %v4916_v57 = vpack.c.bf16 %v2202_v54, %v2194_v51  ;;  %v3388_v54 = vld [vmem:[%s6107_s3 + $0xe0] sm:$0xff] }
 0x374   :  { %5147 = vmatprep.subr.bf16.mxu1 %v5146_v61  ;;  %v5164_v58 = vpack.c.bf16 %v2204_v56, %v2196_v55  ;;  %v3361_v61 = vld [vmem:[%s6107_s3 + $0x8] sm:$0xff]  ;;  %v3395_v56 = vld [vmem:[%s6107_s3 + $0x118] sm:$0xff] }
 0x375   :  { %v3393_v55 = vld [vmem:[%s6107_s3 + $0x108] sm:$0xff] }
 0x376   :  { %4901 = vmatpush1.bf16.msra.mxu0 %v4900_v1  ;;  %v3367_v1 = vld [vmem:[%s6107_s3 + $0x38] sm:$0xff] }
 0x377   :  { %5149 = vmatpush1.bf16.msra.mxu1 %v5148_v16  ;;  %4903 = vmatprep.subr.bf16.mxu0 %v4902_v27  ;;  %v2212_v16 = vld [vmem:[#allocation5 + $0x1f30] sm:$0xff]  ;;  %v5166_v27 = vpack.c.bf16 %v3363_v10, %v3361_v61  ;;  %v5170_v4 = vpack.c.bf16 %v3367_v1, %v3365_v0  ;;  %v3397_v61 = vld [vmem:[%s6107_s3 + $0x128] sm:$0xff]  ;;  %v3399_v10 = vld [vmem:[%s6107_s3 + $0x138] sm:$0xff] }
 0x378   :  { %5151 = vmatprep.subr.bf16.mxu1 %v5150_v7  ;;  %v3366_v7 = vld [vmem:[%s6107_s3 + $0x30] sm:$0xff]  ;;  %v5202_v62 = vpack.c.bf16 %v3399_v10, %v3397_v61  ;;  %v3401_v1 = vld [vmem:[%s6107_s3 + $0x148] sm:$0xff]  ;;  %v3522_v10 = vld [vmem:[%s6108_s4 + $0x40] sm:$0xff] }
 0x379   :  { %v5172_v12 = vpack.c.bf16 %v3366_v7, %v3364_v6  ;;  %v3398_v0 = vld [vmem:[%s6107_s3 + $0x130] sm:$0xff]  ;;  %v3405_v7 = vld [vmem:[%s6107_s3 + $0x168] sm:$0xff] }
 0x37a   :  { %4905 = vmatpush1.bf16.msra.mxu0 %v4904_v18  ;;  %v3370_v18 = vld [vmem:[%s6107_s3 + $0x50] sm:$0xff] }
 0x37b   :  { %5153 = vmatpush1.bf16.msra.mxu1 %v5152_v52  ;;  %4907 = vmatprep.subr.bf16.mxu0 %v4906_v19  ;;  %v3373_v52 = vld [vmem:[%s6107_s3 + $0x68] sm:$0xff]  ;;  %v5176_v19 = vpack.c.bf16 %v3370_v18, %v3368_v13  ;;  %v3402_v6 = vld [vmem:[%s6107_s3 + $0x150] sm:$0xff] }
 0x37c   :  { %5155 = vmatprep.subr.bf16.mxu1 %v5154_v23  ;;  %v3377_v23 = vld [vmem:[%s6107_s3 + $0x88] sm:$0xff]  ;;  %v3406_v13 = vld [vmem:[%s6107_s3 + $0x170] sm:$0xff] }
 0x37d   :  { %v5182_v50 = vpack.c.bf16 %v3379_v24, %v3377_v23  ;;  %v3409_v18 = vld [vmem:[%s6107_s3 + $0x188] sm:$0xff]  ;;  %v3415_v23 = vld [vmem:[%s6107_s3 + $0x1b8] sm:$0xff] }
 0x37e   :  { %4909 = vmatpush1.bf16.msra.mxu0 %v4908_v29  ;;  %v3381_v29 = vld [vmem:[%s6107_s3 + $0xa8] sm:$0xff] }
 0x37f   :  { %5157 = vmatpush1.bf16.msra.mxu1 %v5156_v30  ;;  %4911 = vmatprep.subr.bf16.mxu0 %v4910_v48  ;;  %v3383_v30 = vld [vmem:[%s6107_s3 + $0xb8] sm:$0xff]  ;;  %v5184_v48 = vpack.c.bf16 %v3378_v26, %v3376_v28  ;;  %v3414_v28 = vld [vmem:[%s6107_s3 + $0x1b0] sm:$0xff]  ;;  %v3417_v26 = vld [vmem:[%s6107_s3 + $0x1c8] sm:$0xff] }
 0x380   :  { %5159 = vmatprep.subr.bf16.mxu1 %v5158_v35  ;;  %v5186_v31 = vpack.c.bf16 %v3383_v30, %v3381_v29  ;;  %v3385_v35 = vld [vmem:[%s6107_s3 + $0xc8] sm:$0xff]  ;;  %v3419_v29 = vld [vmem:[%s6107_s3 + $0x1d8] sm:$0xff] }
 0x381   :  { %v5190_v40 = vpack.c.bf16 %v3387_v33, %v3385_v35  ;;  %v3421_v35 = vld [vmem:[%s6107_s3 + $0x1e8] sm:$0xff]  ;;  %v3423_v33 = vld [vmem:[%s6107_s3 + $0x1f8] sm:$0xff] }
 0x382   :  { %4913 = vmatpush1.bf16.msra.mxu0 %v4912_v44  ;;  %v3389_v44 = vld [vmem:[%s6107_s3 + $0xe8] sm:$0xff] }
 0x383   :  { %5161 = vmatpush1.bf16.msra.mxu1 %v5160_v45  ;;  %4915 = vmatprep.subr.bf16.mxu0 %v4914_v49  ;;  %v3391_v45 = vld [vmem:[%s6107_s3 + $0xf8] sm:$0xff]  ;;  %v5192_v49 = vpack.c.bf16 %v3386_v43, %v3384_v41  ;;  %v3422_v41 = vld [vmem:[%s6107_s3 + $0x1f0] sm:$0xff] }
 0x384   :  { %5163 = vmatprep.subr.bf16.mxu1 %v5162_v5  ;;  %v5194_v51 = vpack.c.bf16 %v3391_v45, %v3389_v44  ;;  %v3390_v5 = vld [vmem:[%s6107_s3 + $0xf0] sm:$0xff]  ;;  %v3514_v44 = vld [vmem:[%s6108_s4] sm:$0xff]  ;;  %v3515_v45 = vld [vmem:[%s6108_s4 + $0x8] sm:$0xff] }
 0x386   :  { %4917 = vmatpush1.bf16.msra.mxu0 %v4916_v57  ;;  %v5196_v57 = vpack.c.bf16 %v3390_v5, %v3388_v54  ;;  %v5231_v54 = vpack.c.bf16 %v3515_v45, %v3514_v44  ;;  %v3517_v5 = vld [vmem:[%s6108_s4 + $0x18] sm:$0xff] }
 0x387   :  { %5165 = vmatpush1.bf16.msra.mxu1 %v5164_v58  ;;  %3055 = vmatprep.subr.mxu0 %v2211_v38  ;;  %v5198_v58 = vpack.c.bf16 %v3395_v56, %v3393_v55  ;;  %v3392_v38 = vld [vmem:[%s6107_s3 + $0x100] sm:$0xff] }
 0x388   :  { %3339 = vmatprep.subr.mxu1 %v2213_v60  ;;  %v3394_v60 = vld [vmem:[%s6107_s3 + $0x110] sm:$0xff]  ;;  %v3518_v56 = vld [vmem:[%s6108_s4 + $0x20] sm:$0xff] }
 0x389   :  { %v5200_v15 = vpack.c.bf16 %v3394_v60, %v3392_v38  ;;  %v3520_v38 = vld [vmem:[%s6108_s4 + $0x30] sm:$0xff]  ;;  %v3521_v60 = vld [vmem:[%s6108_s4 + $0x38] sm:$0xff] }
 0x38a   :  { %3056 = vmatpush1.msra.mxu0 %v2210_v63  ;;  %v3396_v63 = vld [vmem:[%s6107_s3 + $0x120] sm:$0xff]  ;;  %v5240_v61 = vpack.c.bf16 %v3521_v60, %v3520_v38 }
 0x38b   :  { %3340 = vmatpush1.msra.mxu1 %v2212_v16  ;;  %3064 = vmatmul.mubr.f32.vlgmr.msra.gmra.mrb[6].mxu0 %v5800_v46  ;;  %v3403_v16 = vld [vmem:[%s6107_s3 + $0x158] sm:$0xff] }
 0x38c   :  { %3348 = vmatmul.mubr.f32.vlgmr.msra.gmra.mrb[6].mxu1 %v5800_v46  ;;  %5167 = vmatprep.subr.bf16.mxu0 %v5166_v27  ;;  %v3375_v46 = vld [vmem:[%s6107_s3 + $0x78] sm:$0xff]  ;;  %v5204_v27 = vpack.c.bf16 %v3398_v0, %v3396_v63  ;;  %v3524_v63 = vld [vmem:[%s6108_s4 + $0x50] sm:$0xff] }
 0x38d   :  { %5169 = vmatpush1.bf16.msra.mxu0 %v5168_v3  ;;  %v5178_v20 = vpack.c.bf16 %v3375_v46, %v3373_v52  ;;  %v5206_v3 = vpack.c.bf16 %v3403_v16, %v3401_v1  ;;  %v3411_v52 = vld [vmem:[%s6107_s3 + $0x198] sm:$0xff]  ;;  %v3526_v16 = vld [vmem:[%s6108_s4 + $0x60] sm:$0xff] }
 0x38e   :  { %5171 = vmatprep.subr.bf16.mxu0 %v5170_v4  ;;  %v3400_v4 = vld [vmem:[%s6107_s3 + $0x140] sm:$0xff]  ;;  %v3525_v0 = vld [vmem:[%s6108_s4 + $0x58] sm:$0xff] }
 0x38f   :  { %v5208_v11 = vpack.c.bf16 %v3402_v6, %v3400_v4  ;;  %v5246_v1 = vpack.c.bf16 %v3525_v0, %v3524_v63 }
 0x391   :  { %5173 = vmatpush1.bf16.msra.mxu0 %v5172_v12  ;;  %v5210_v12 = vpack.c.bf16 %v3407_v9, %v3405_v7 }
 0x392   :  { %5175 = vmatprep.subr.bf16.mxu0 %v5174_v47  ;;  %v3404_v47 = vld [vmem:[%s6107_s3 + $0x160] sm:$0xff] }
 0x393   :  { %v5212_v46 = vpack.c.bf16 %v3406_v13, %v3404_v47 }
 0x395   :  { %5177 = vmatpush1.bf16.msra.mxu0 %v5176_v19  ;;  %v5214_v19 = vpack.c.bf16 %v3411_v52, %v3409_v18  ;;  %v3528_v18 = vld [vmem:[%s6108_s4 + $0x70] sm:$0xff]  ;;  %v3529_v52 = vld [vmem:[%s6108_s4 + $0x78] sm:$0xff] }
 0x396   :  { %5179 = vmatprep.subr.bf16.mxu0 %v5178_v20  ;;  %v3408_v20 = vld [vmem:[%s6107_s3 + $0x180] sm:$0xff] }
 0x397   :  { %v5216_v24 = vpack.c.bf16 %v3410_v21, %v3408_v20  ;;  %v3509_v20 = vstv %s3712_s5 }
 0x399   :  { %5181 = vmatpush1.bf16.msra.mxu0 %v5180_v25  ;;  %v5218_v25 = vpack.c.bf16 %v3415_v23, %v3413_v22 }
 0x39a   :  { %5183 = vmatprep.subr.bf16.mxu0 %v5182_v50  ;;  %v3412_v50 = vld [vmem:[%s6107_s3 + $0x1a0] sm:$0xff] }
 0x39b   :  { %v5220_v30 = vpack.c.bf16 %v3414_v28, %v3412_v50 }
 0x39d   :  { %5185 = vmatpush1.bf16.msra.mxu0 %v5184_v48  ;;  %v5222_v48 = vpack.c.bf16 %v3419_v29, %v3417_v26 }
 0x39e   :  { %5187 = vmatprep.subr.bf16.mxu0 %v5186_v31  ;;  %v3416_v31 = vld [vmem:[%s6107_s3 + $0x1c0] sm:$0xff] }
 0x39f   :  { %v5224_v34 = vpack.c.bf16 %v3418_v32, %v3416_v31  ;;  %v3722_v31 = vld [vmem:[#allocation11] ss:$0 sm:$0xff] }
 0x3a1   :  { %5189 = vmatpush1.bf16.msra.mxu0 %v5188_v53  ;;  %v5226_v53 = vpack.c.bf16 %v3423_v33, %v3421_v35 }
 0x3a2   :  { %5191 = vmatprep.subr.bf16.mxu0 %v5190_v40  ;;  %v3420_v40 = vld [vmem:[%s6107_s3 + $0x1e0] sm:$0xff] }
 0x3a3   :  { %v5228_v43 = vpack.c.bf16 %v3422_v41, %v3420_v40  ;;  %v3724_v41 = vld [vmem:[#allocation13] ss:$0 sm:$0xff] }
 0x3a5   :  { %5193 = vmatpush1.bf16.msra.mxu0 %v5192_v49  ;;  %v3516_v49 = vld [vmem:[%s6108_s4 + $0x10] sm:$0xff] }
 0x3a6   :  { %5195 = vmatprep.subr.bf16.mxu0 %v5194_v51  ;;  %v5505_v51 = vmov 0.0|0.0   ;;  %v5234_v55 = vpack.c.bf16 %v3517_v5, %v3516_v49 }
 0x3a7   :  { %5230 = vmatprep.subr.bf16.mxu1 %v5505_v51 }
 0x3a8   :  { %5232 = vmatpush1.bf16.msra.mxu1 %v5231_v54 }
 0x3a9   :  { %5197 = vmatpush1.bf16.msra.mxu0 %v5196_v57  ;;  %5233 = vmatprep.subr.bf16.mxu1 %v5505_v51  ;;  %v3519_v57 = vld [vmem:[%s6108_s4 + $0x28] sm:$0xff] }
 0x3aa   :  { %5199 = vmatprep.subr.bf16.mxu0 %v5198_v58  ;;  %v5237_v58 = vpack.c.bf16 %v3519_v57, %v3518_v56 }
 0x3ac   :  { %5235 = vmatpush1.bf16.msra.mxu1 %v5234_v55 }
 0x3ad   :  { %5201 = vmatpush1.bf16.msra.mxu0 %v5200_v15  ;;  %5236 = vmatprep.subr.bf16.mxu1 %v5505_v51  ;;  %v3523_v15 = vld [vmem:[%s6108_s4 + $0x48] sm:$0xff] }
 0x3ae   :  { %5203 = vmatprep.subr.bf16.mxu0 %v5202_v62  ;;  %v5243_v62 = vpack.c.bf16 %v3523_v15, %v3522_v10 }
 0x3b0   :  { %5238 = vmatpush1.bf16.msra.mxu1 %v5237_v58 }
 0x3b1   :  { %5205 = vmatpush1.bf16.msra.mxu0 %v5204_v27  ;;  %5239 = vmatprep.subr.bf16.mxu1 %v5505_v51  ;;  %v3527_v27 = vld [vmem:[%s6108_s4 + $0x68] sm:$0xff]  ;;  %s3713_s4 = sld [smem:[#allocation14 + $0x2]] }
 0x3b2   :  { %5207 = vmatprep.subr.bf16.mxu0 %v5206_v3  ;;  %v5249_v3 = vpack.c.bf16 %v3527_v27, %v3526_v16 }
 0x3b4   :  { %5241 = vmatpush1.bf16.msra.mxu1 %v5240_v61 }
 0x3b5   :  { %5209 = vmatpush1.bf16.msra.mxu0 %v5208_v11  ;;  %5242 = vmatprep.subr.bf16.mxu1 %v5505_v51 }
 0x3b6   :  { %5211 = vmatprep.subr.bf16.mxu0 %v5210_v12 }
 0x3b8   :  { %5244 = vmatpush1.bf16.msra.mxu1 %v5243_v62 }
 0x3b9   :  { %5213 = vmatpush1.bf16.msra.mxu0 %v5212_v46  ;;  %5245 = vmatprep.subr.bf16.mxu1 %v5505_v51  ;;  %v5252_v46 = vpack.c.bf16 %v3529_v52, %v3528_v18 }
 0x3ba   :  { %5215 = vmatprep.subr.bf16.mxu0 %v5214_v19 }
 0x3bc   :  { %5247 = vmatpush1.bf16.msra.mxu1 %v5246_v1 }
 0x3bd   :  { %5217 = vmatpush1.bf16.msra.mxu0 %v5216_v24  ;;  %5248 = vmatprep.subr.bf16.mxu1 %v5505_v51  ;;  %v3617_v24 = vld [vmem:[#allocation7] sm:$0xff] }
 0x3be   :  { %5219 = vmatprep.subr.bf16.mxu0 %v5218_v25  ;;  %v3618_v25 = vld [vmem:[#allocation7 + $0x8] sm:$0xff] }
 0x3bf   :  { %v5258_v26 = vpack.c.bf16 %v3618_v25, %v3617_v24 }
 0x3c0   :  { %5250 = vmatpush1.bf16.msra.mxu1 %v5249_v3 }
 0x3c1   :  { %5221 = vmatpush1.bf16.msra.mxu0 %v5220_v30  ;;  %5251 = vmatprep.subr.bf16.mxu1 %v5505_v51 }
 0x3c2   :  { %5223 = vmatprep.subr.bf16.mxu0 %v5222_v48  ;;  %v5507_v48 = vmov 0.0  }
 0x3c4   :  { %5253 = vmatpush1.bf16.msra.mxu1 %v5252_v46 }
 0x3c5   :  { %5225 = vmatpush1.bf16.msra.mxu0 %v5224_v34  ;;  %5254 = vmatprep.subr.bf16.mxu1 %v5505_v51  ;;  %v3614_v34 = vstv %s3713_s4 }
 0x3c6   :  { %5227 = vmatprep.subr.bf16.mxu0 %v5226_v53 }
 0x3c8   :  { %5256 = vmatpush1.bf16.msra.mxu1 %v5255_v17 }
 0x3c9   :  { %5229 = vmatpush1.bf16.msra.mxu0 %v5228_v43  ;;  %5257 = vmatprep.subr.bf16.mxu1 %v5505_v51 }
 0x45e   :  { %v3065_v4 = vpop.f32.mrb[6].mxu0 }
 0x45f   :  { %v3349_v6 = vpop.f32.mrb[6].mxu1  ;;  %v3067_v7 = vpop.f32.mrb[7].mxu0 }
 0x460   :  { %v3356_v9 = vmax.f32 %v3065_v4, %v3349_v6  ;;  %v3351_v11 = vpop.f32.mrb[7].mxu1 }
 0x461   :  { %v3357_v12 = vmax.f32 %v3067_v7, %v3351_v11 }
 0x462   :  { %v3358_v47 = vmax.f32 %v3354_v8, %v3356_v9  ;;  %v3424_v8 = vld [vmem:[#allocation10] sm:$0x3] }
 0x463   :  { %v3359_v13 = vmax.f32 %v3355_v2, %v3357_v12  ;;  %v3429_v59 = vrot.slane %v3424_v8, %v579_v37  ;;  %v3433_v2 = vrot.slane %v3424_v8, %v583_v39  ;;  %v3620_v37 = vld [vmem:[#allocation7 + $0x18] sm:$0xff] }
 0x464   :  { %v5261_v39 = vpack.c.bf16 %v3620_v37, %v3619_v36 }
 0x465   :  { %3500 = vmatprep.mubr.f32.mxu0 %v3359_v13 }
 0x466   :  { %3501 = vmatmul.mubr.f32.vlgmr.msra.gmra.mrb[8].mxu0 %v3358_v47 }
 0x539   :  { %v3502_v19 = vpop.f32.mrb[8].mxu0 }
 0x53a   :  { %v3503_v21 = vadd.f32 %v3502_v19, %v3429_v59  ;;  %v3504_v22 = vpop.f32.mrb[9].mxu0 }
 0x53b   :  { %v3505_v23 = vadd.f32 %v3504_v22, %v3433_v2 }
 0x53c   :  { %v3510_v50 = vmul.f32 %v3509_v20, %v3503_v21  ;;  %vm3507_vm10 = vcmp.ge.f32.partialorder %v3503_v21, 0.0 }
 0x53d   :  { %vm3508_vm11 = vcmp.ge.f32.partialorder %v3505_v23, 0.0  ;;  %v3511_v28 = vmul.f32 %v3509_v20, %v3505_v23 }
 0x53e   :  { %v3512_v30 = vsel %vm3507_vm10, %v3503_v21, %v3510_v50 }
 0x53f   :  { %v3513_v29 = vsel %vm3508_vm11, %v3505_v23, %v3511_v28 }
 0x540   :  { %3723 = vmatprep.mubr.msk.f32.mxu1 %vm3539_vm12, %v3513_v29 }
 0x541   :  { %3608 = vmatmul.mubr.f32.vlgmr.msra.gmra.mrb[8].mxu1 %v3512_v30 }
 0x542   :  { %5259 = vmatpush3.bf16.msra.mxu1 %v5258_v26  ;;  %3739 = vmatprep.mubr.msk.f32.mxu1 %vm5506_vm13, %v5507_v48 }
 0x543   :  { %5260 = vmatprep.subr.bf16.mxu1 %v5505_v51 }
 0x546   :  { %5262 = vmatpush3.bf16.msra.mxu1 %v5261_v39 }
 0x614   :  { %v3609_v32 = vpop.f32.mrb[8].mxu1 }
 0x615   :  { %v3610_v35 = vadd.f32 %v3722_v31, %v3609_v32  ;;  %v3611_v33 = vpop.f32.mrb[9].mxu1 }
 0x617   :  { %vm3613_vm14 = vcmp.ge.f32.partialorder %v3610_v35, 0.0  ;;  %v3615_v53 = vmul.f32 %v3614_v34, %v3610_v35 }
 0x619   :  { %v3616_v40 = vsel %vm3613_vm14, %v3610_v35, %v3615_v53 }
 0x61a   :  { %3740 = vmatmul.mubr.msk.f32.vlgmr.msra.gmra.mrb[10].mxu1 %vm3628_vm15, %v3616_v40 }
 0x6ed   :  { %v3698_v43 = vpop.f32.mrb[10].mxu1 }
 0x6ee   :  { %v3699_v44 = vadd.f32 %v3724_v41, %v3698_v43  ;;  %v3741_v45 = vpop.f32.mrb[11].mxu1 }
 0x6f0   :  { %3702 = vst [vmem:[%s6115_s11] sm:$0xff] %v3699_v44 }
 0x6f1   :  { %3707 = vsyncpa [#allocation3], 1 }
 0x6f2   :  { %3708 = vsyncpa [#allocation6], 1 }
 0x6f3   :  { %3709 = vsyncpa [#allocation9], 1 }
 0x6f4   :  { %3710 = vsyncpa [#allocation12], 1 }
 0x6f5   :  { %3711 = vsyncpa [#allocation4], 1 }

</bundles_post_ra>
